<compile_context>
chip_gen: v7x
topology: tpu7x:2x2x1
jax: 0.10.0
libtpu: 0.0.40
codegen_flags: <defaults>
</compile_context>

<pallas_src>
import functools

import jax
import jax.numpy as jnp
from jax.experimental import pallas as pl
from jax.experimental.pallas import tpu as pltpu

LANE = 128
SUBLANE = 8


def _round_up(n, m):
    return ((n + m - 1) // m) * m


def _vmem_spec():
    return pl.BlockSpec(memory_space=pltpu.MemorySpace.VMEM)


def _pad2(a, rows, cols):
    """Zero-pad a 2-D array up to (rows, cols)."""
    return jnp.pad(a, ((0, rows - a.shape[0]), (0, cols - a.shape[1])))


def _pad_gate_blocks(w, rows_p, h, h_p):
    """Pad a (rows, 4*h) LSTM gate matrix/bias to (rows_p, 4*h_p), keeping the
    PyTorch gate order (i, f, g, o) and padding each gate block separately so
    in-kernel gate slices gates[:, k*h_p:(k+1)*h_p] stay lane-aligned."""
    rows = w.shape[0]
    out = jnp.zeros((rows_p, 4 * h_p), w.dtype)
    for k in range(4):
        out = out.at[:rows, k * h_p:k * h_p + h].set(w[:, k * h:(k + 1) * h])
    return out


# ----------------------------------------------------------------------------
# Fused forward kernel:
#   init_hidden + embedding lookup + L-layer LSTM + LM_FC + softmax(dim=1)
# ----------------------------------------------------------------------------
def _fused_forward_kernel(n_layers, seq_len, b_pad, hidden_pad, *refs):
    """refs layout:
      inputs : x(Bp,IDp), wh_t, bh, wc_t, bc, y(T,Bp,1), emb_table(Vp,Ep),
               [w_ih_t, w_hh_t, bias] * n_layers, wfc_t(Hp,Vp), bfc(1,Vp)
      outputs: probs (T, Bp, Vp), h_n (L, Bp, Hp), c_n (L, Bp, Hp)
      scratch: xproj (T*Bp, 4*Hp) f32
    """
    f32, bf16 = jnp.float32, jnp.bfloat16
    T, Bp, Hp = seq_len, b_pad, hidden_pad
    n_in = 9 + 3 * n_layers

    x_ref, wh_ref, bh_ref, wc_ref, bc_ref, y_ref, table_ref = refs[0:7]
    w_refs = refs[7:7 + 3 * n_layers]
    wfc_ref = refs[7 + 3 * n_layers]
    bfc_ref = refs[8 + 3 * n_layers]
    o_ref = refs[n_in]
    h_out_ref = refs[n_in + 1]
    c_out_ref = refs[n_in + 2]
    xproj = refs[n_in + 3]

    # ---- init_hidden: computed ONCE; every layer shares it (== repeat(L,1,1))
    xb = x_ref[...].astype(bf16)
    h0 = jnp.dot(xb, wh_ref[...], preferred_element_type=f32) + bh_ref[...]
    c0 = jnp.dot(xb, wc_ref[...], preferred_element_type=f32) + bc_ref[...]

    # ---- embedding lookup, fused in-kernel as one-hot @ table on the MXU ----
    vt = table_ref.shape[0]
    ids = y_ref[...].reshape(T * Bp, 1)                         # t-major rows
    iota = jax.lax.broadcasted_iota(jnp.int32, (T * Bp, vt), 1)
    onehot = jnp.where(ids == iota, jnp.float32(1), jnp.float32(0)).astype(bf16)
    layer_in = jnp.dot(onehot, table_ref[...],
                       preferred_element_type=f32).astype(bf16)  # (T*Bp, Ep)

    # ---- multi-layer LSTM; per-step hidden states stay in vregs ----
    hs = []
    for l in range(n_layers):
        w_ih = w_refs[3 * l][...]        # (in_p, 4Hp) bf16
        w_hh = w_refs[3 * l + 1][...]    # (Hp,  4Hp) bf16
        bias = w_refs[3 * l + 2][...]    # (1,   4Hp) f32  (b_ih + b_hh)

        # hoisted input projection: one matmul for the whole sequence
        xproj[...] = jnp.dot(layer_in, w_ih,
                             preferred_element_type=f32) + bias  # (T*Bp, 4Hp)

        h, c = h0, c0
        hs = []
        for t in range(T):
            gates = (xproj[t * Bp:(t + 1) * Bp, :] +
                     jnp.dot(h.astype(bf16), w_hh,
                             preferred_element_type=f32))        # (Bp, 4Hp)
            i_g = jax.nn.sigmoid(gates[:, 0 * Hp:1 * Hp])
            f_g = jax.nn.sigmoid(gates[:, 1 * Hp:2 * Hp])
            g_g = jnp.tanh(gates[:, 2 * Hp:3 * Hp])
            o_g = jax.nn.sigmoid(gates[:, 3 * Hp:4 * Hp])
            c = f_g * c + i_g * g_g
            h = o_g * jnp.tanh(c)
            hs.append(h)

        h_out_ref[l, :, :] = h
        c_out_ref[l, :, :] = c
        if l + 1 < n_layers:
            layer_in = jnp.concatenate(hs, axis=0).astype(bf16)  # (T*Bp, Hp)

    # ---- LM_FC + softmax over the sequence axis (nn.Softmax(dim=1)) ----
    head_in = jnp.concatenate(hs, axis=0).astype(bf16)           # (T*Bp, Hp)
    logits = (jnp.dot(head_in, wfc_ref[...], preferred_element_type=f32)
              + bfc_ref[...])                                    # (T*Bp, Vp)
    logits = logits.reshape(T, Bp, logits.shape[-1])
    m = jnp.max(logits, axis=0, keepdims=True)
    e = jnp.exp(logits - m)
    o_ref[...] = e / jnp.sum(e, axis=0, keepdims=True)           # (T, Bp, Vp)


# ----------------------------------------------------------------------------
# Model wrapper: deterministic param init (padded/pre-transposed/pre-cast once)
# and a jitted forward (pad -> one pallas_call -> slice).
# ----------------------------------------------------------------------------
class LSTMModelSeeOncePallas:
    def __init__(self, input_dim, vocab_size, emb_dim, hidden_dim, n_layers,
                 key):
        f32, bf16 = jnp.float32, jnp.bfloat16

        self.input_dim = input_dim
        self.vocab_size = vocab_size
        self.emb_dim = emb_dim
        self.hidden_dim = hidden_dim
        self.n_layers = n_layers

        # hardware-tile-aligned (padded) dims
        self.id_p = _round_up(input_dim, LANE)
        self.e_p = _round_up(emb_dim, LANE)
        self.h_p = _round_up(hidden_dim, LANE)
        self.v_p = _round_up(vocab_size, LANE)

        def uni(k, shape, bound):
            return jax.random.uniform(k, shape, f32, -bound, bound)

        keys = jax.random.split(key, 8 + n_layers)
        k_in = 1.0 / float(input_dim) ** 0.5    # nn.Linear fan_in = input_dim
        k_h = 1.0 / float(hidden_dim) ** 0.5    # LSTM / LM_FC bounds

        H, ID, E, V = hidden_dim, input_dim, emb_dim, vocab_size

        # imf2lstm_h / imf2lstm_c  (nn.Linear(input_dim, hidden_dim))
        w_h = uni(keys[0], (H, ID), k_in)
        b_h = uni(keys[1], (H,), k_in)
        w_c = uni(keys[2], (H, ID), k_in)
        b_c = uni(keys[3], (H,), k_in)
        self.wh_t = _pad2(w_h.T, self.id_p, self.h_p).astype(bf16)
        self.bh = _pad2(b_h[None, :], 1, self.h_p)
        self.wc_t = _pad2(w_c.T, self.id_p, self.h_p).astype(bf16)
        self.bc = _pad2(b_c[None, :], 1, self.h_p)

        # embedding table (vocab_size, emb_dim)
        table = jax.random.normal(keys[4], (V, E), f32)
        self.table = _pad2(table, self.v_p, self.e_p).astype(bf16)

        # LSTM layers (PyTorch layout (4H, in)/(4H, H), gate order i,f,g,o);
        # stored transposed, per-gate padded, biases pre-summed (b_ih + b_hh).
        self.lstm_params = []
        for l in range(n_layers):
            in_dim = E if l == 0 else H
            in_p = self.e_p if l == 0 else self.h_p
            k0, k1, k2, k3 = jax.random.split(keys[5 + l], 4)
            w_ih = uni(k0, (4 * H, in_dim), k_h)
            w_hh = uni(k1, (4 * H, H), k_h)
            b_ih = uni(k2, (4 * H,), k_h)
            b_hh = uni(k3, (4 * H,), k_h)
            self.lstm_params += [
                _pad_gate_blocks(w_ih.T, in_p, H, self.h_p).astype(bf16),
                _pad_gate_blocks(w_hh.T, self.h_p, H, self.h_p).astype(bf16),
                _pad_gate_blocks((b_ih + b_hh)[None, :], 1, H, self.h_p),
            ]

        # LM_FC: nn.Linear(hidden_dim, vocab_size)
        w_fc = uni(keys[5 + n_layers], (V, H), k_h)
        b_fc = uni(keys[6 + n_layers], (V,), k_h)
        self.wfc_t = _pad2(w_fc.T, self.h_p, self.v_p).astype(bf16)
        self.bfc = _pad2(b_fc[None, :], 1, self.v_p)

        self._forward = jax.jit(self._forward_impl)

    def _forward_impl(self, x, y):
        f32 = jnp.float32
        B = x.shape[0]
        T = y.shape[1]
        L = self.n_layers
        Hp, Vp = self.h_p, self.v_p
        Bp = _round_up(B, SUBLANE)

        # pad activations to hardware tiles (sliced off after the kernel)
        x_p = _pad2(x.astype(f32), Bp, self.id_p)                 # (Bp, IDp)
        y_p = jnp.pad(y.astype(jnp.int32), ((0, Bp - B), (0, 0)))  # (Bp, T)
        y_t = jnp.transpose(y_p)[:, :, None]                       # (T, Bp, 1)

        kernel = functools.partial(_fused_forward_kernel, L, T, Bp, Hp)
        n_in = 9 + 3 * L

        o_pad, h_pad, c_pad = pl.pallas_call(
            kernel,
            out_shape=(
                jax.ShapeDtypeStruct((T, Bp, Vp), f32),
                jax.ShapeDtypeStruct((L, Bp, Hp), f32),
                jax.ShapeDtypeStruct((L, Bp, Hp), f32),
            ),
            in_specs=[_vmem_spec()] * n_in,
            out_specs=(_vmem_spec(), _vmem_spec(), _vmem_spec()),
            scratch_shapes=[pltpu.VMEM((T * Bp, 4 * Hp), f32)],
        )(x_p, self.wh_t, self.bh, self.wc_t, self.bc, y_t, self.table,
          *self.lstm_params, self.wfc_t, self.bfc)

        # wrapper-side layout plumbing: drop padding, restore (B, T, V) order
        probs = jnp.transpose(o_pad, (1, 0, 2))[:B, :, :self.vocab_size]
        h_n = h_pad[:, :B, :self.hidden_dim]
        c_n = c_pad[:, :B, :self.hidden_dim]
        return probs, h_n, c_n

    def __call__(self, x, y):
        # train=True path of the PyTorch module (h, c re-initialised from x).
        # TODO(synk): train=False path (caller-provided h, c) and inter-layer
        # dropout (drop_prob > 0; module default is 0.0) are not implemented.
        return self._forward(x, y)


if __name__ == "__main__":
    key = jax.random.PRNGKey(0)
    k_model, k_x, k_y = jax.random.split(key, 3)

    B, INPUT_DIM, HIDDEN, EMB, VOCAB, SEQ, LAYERS = 2, 16, 32, 32, 64, 8, 2

    model = LSTMModelSeeOncePallas(
        input_dim=INPUT_DIM, vocab_size=VOCAB, emb_dim=EMB,
        hidden_dim=HIDDEN, n_layers=LAYERS, key=k_model)

    x = jax.random.normal(k_x, (B, INPUT_DIM), jnp.float32)
    y = jax.random.randint(k_y, (B, SEQ), 0, VOCAB, jnp.int32)

    out, h, c = model(x, y)
    jax.block_until_ready((out, h, c))

    assert out.shape == (B, SEQ, VOCAB)
    assert h.shape == (LAYERS, B, HIDDEN)
    assert c.shape == (LAYERS, B, HIDDEN)
    # softmax is over dim=1 (the sequence axis): each (b, v) column sums to 1
    assert bool(jnp.all(jnp.isfinite(out)))
    assert bool(jnp.allclose(jnp.sum(out, axis=1), 1.0, atol=1e-3))

    print("KERNEL_OK")
</pallas_src>

<mosaic_0001>
module attributes {stable_mosaic.version = 11 : i64} {
  func.func @_fused_forward_kernel(%arg0: memref<8x128xf32, #tpu.memory_space<vmem>>, %arg1: memref<128x128xbf16, #tpu.memory_space<vmem>>, %arg2: memref<1x128xf32, #tpu.memory_space<vmem>>, %arg3: memref<128x128xbf16, #tpu.memory_space<vmem>>, %arg4: memref<1x128xf32, #tpu.memory_space<vmem>>, %arg5: memref<8x8x1xi32, #tpu.memory_space<vmem>>, %arg6: memref<128x128xbf16, #tpu.memory_space<vmem>>, %arg7: memref<128x512xbf16, #tpu.memory_space<vmem>>, %arg8: memref<128x512xbf16, #tpu.memory_space<vmem>>, %arg9: memref<1x512xf32, #tpu.memory_space<vmem>>, %arg10: memref<128x512xbf16, #tpu.memory_space<vmem>>, %arg11: memref<128x512xbf16, #tpu.memory_space<vmem>>, %arg12: memref<1x512xf32, #tpu.memory_space<vmem>>, %arg13: memref<128x128xbf16, #tpu.memory_space<vmem>>, %arg14: memref<1x128xf32, #tpu.memory_space<vmem>>, %arg15: memref<8x8x128xf32, #tpu.memory_space<vmem>>, %arg16: memref<2x8x128xf32, #tpu.memory_space<vmem>>, %arg17: memref<2x8x128xf32, #tpu.memory_space<vmem>>, %arg18: memref<64x512xf32, #tpu.memory_space<vmem>>) attributes {dimension_semantics = [], scalar_prefetch = 0 : i64, scratch_operands = 1 : i64, tpu.core_type = #tpu.core_type<tc>} {
    %c0 = arith.constant 0 : index
    %c0_0 = arith.constant 0 : index
    %0 = vector.load %arg0[%c0, %c0_0] : memref<8x128xf32, #tpu.memory_space<vmem>>, vector<8x128xf32>
    %1 = arith.truncf %0 : vector<8x128xf32> to vector<8x128xbf16>
    %c0_1 = arith.constant 0 : index
    %c0_2 = arith.constant 0 : index
    %2 = vector.load %arg1[%c0_1, %c0_2] : memref<128x128xbf16, #tpu.memory_space<vmem>>, vector<128x128xbf16>
    %cst = arith.constant dense<0.000000e+00> : vector<8x128xf32>
    %3 = tpu.matmul %1, %2, %cst {dimension_numbers = #tpu.dot_dimension_numbers<[1], [0], [0], [1], [0, 0, 1, 1], [], []>} : vector<8x128xbf16>, vector<128x128xbf16>, vector<8x128xf32> -> vector<8x128xf32>
    %c0_3 = arith.constant 0 : index
    %c0_4 = arith.constant 0 : index
    %4 = vector.load %arg2[%c0_3, %c0_4] : memref<1x128xf32, #tpu.memory_space<vmem>>, vector<1x128xf32>
    %5 = vector.broadcast %4 : vector<1x128xf32> to vector<8x128xf32>
    %6 = arith.addf %3, %5 : vector<8x128xf32>
    %c0_5 = arith.constant 0 : index
    %c0_6 = arith.constant 0 : index
    %7 = vector.load %arg3[%c0_5, %c0_6] : memref<128x128xbf16, #tpu.memory_space<vmem>>, vector<128x128xbf16>
    %cst_7 = arith.constant dense<0.000000e+00> : vector<8x128xf32>
    %8 = tpu.matmul %1, %7, %cst_7 {dimension_numbers = #tpu.dot_dimension_numbers<[1], [0], [0], [1], [0, 0, 1, 1], [], []>} : vector<8x128xbf16>, vector<128x128xbf16>, vector<8x128xf32> -> vector<8x128xf32>
    %c0_8 = arith.constant 0 : index
    %c0_9 = arith.constant 0 : index
    %9 = vector.load %arg4[%c0_8, %c0_9] : memref<1x128xf32, #tpu.memory_space<vmem>>, vector<1x128xf32>
    %10 = vector.broadcast %9 : vector<1x128xf32> to vector<8x128xf32>
    %11 = arith.addf %8, %10 : vector<8x128xf32>
    %c0_10 = arith.constant 0 : index
    %c0_11 = arith.constant 0 : index
    %c0_12 = arith.constant 0 : index
    %12 = vector.load %arg5[%c0_10, %c0_11, %c0_12] : memref<8x8x1xi32, #tpu.memory_space<vmem>>, vector<8x8x1xi32>
    %13 = vector.shape_cast %12 : vector<8x8x1xi32> to vector<64x1xi32>
    %14 = tpu.iota {dimensions = array<i32: 1>} : vector<64x128xi32>
    %15 = vector.broadcast %13 : vector<64x1xi32> to vector<64x128xi32>
    %16 = arith.cmpi eq, %15, %14 : vector<64x128xi32>
    %cst_13 = arith.constant 1.000000e+00 : f32
    %cst_14 = arith.constant 0.000000e+00 : f32
    %17 = vector.broadcast %cst_13 : f32 to vector<64x128xf32>
    %18 = vector.broadcast %cst_14 : f32 to vector<64x128xf32>
    %19 = arith.select %16, %17, %18 : vector<64x128xi1>, vector<64x128xf32>
    %20 = arith.truncf %19 : vector<64x128xf32> to vector<64x128xbf16>
    %c0_15 = arith.constant 0 : index
    %c0_16 = arith.constant 0 : index
    %21 = vector.load %arg6[%c0_15, %c0_16] : memref<128x128xbf16, #tpu.memory_space<vmem>>, vector<128x128xbf16>
    %cst_17 = arith.constant dense<0.000000e+00> : vector<64x128xf32>
    %22 = tpu.matmul %20, %21, %cst_17 {dimension_numbers = #tpu.dot_dimension_numbers<[1], [0], [0], [1], [0, 0, 1, 1], [], []>} : vector<64x128xbf16>, vector<128x128xbf16>, vector<64x128xf32> -> vector<64x128xf32>
    %23 = arith.truncf %22 : vector<64x128xf32> to vector<64x128xbf16>
    %c0_18 = arith.constant 0 : index
    %c0_19 = arith.constant 0 : index
    %24 = vector.load %arg7[%c0_18, %c0_19] : memref<128x512xbf16, #tpu.memory_space<vmem>>, vector<128x512xbf16>
    %c0_20 = arith.constant 0 : index
    %c0_21 = arith.constant 0 : index
    %25 = vector.load %arg8[%c0_20, %c0_21] : memref<128x512xbf16, #tpu.memory_space<vmem>>, vector<128x512xbf16>
    %c0_22 = arith.constant 0 : index
    %c0_23 = arith.constant 0 : index
    %26 = vector.load %arg9[%c0_22, %c0_23] : memref<1x512xf32, #tpu.memory_space<vmem>>, vector<1x512xf32>
    %cst_24 = arith.constant dense<0.000000e+00> : vector<64x512xf32>
    %27 = tpu.matmul %23, %24, %cst_24 {dimension_numbers = #tpu.dot_dimension_numbers<[1], [0], [0], [1], [0, 0, 1, 1], [], []>} : vector<64x128xbf16>, vector<128x512xbf16>, vector<64x512xf32> -> vector<64x512xf32>
    %28 = vector.broadcast %26 : vector<1x512xf32> to vector<64x512xf32>
    %29 = arith.addf %27, %28 : vector<64x512xf32>
    %c0_25 = arith.constant 0 : index
    %c0_26 = arith.constant 0 : index
    %30 = vector.load %arg18[%c0_25, %c0_26] : memref<64x512xf32, #tpu.memory_space<vmem>>, vector<64x512xf32>
    tpu.vector_store %arg18[%c0_25, %c0_26], %29 {strides = array<i32>} : memref<64x512xf32, #tpu.memory_space<vmem>>, vector<64x512xf32>,
    %c0_27 = arith.constant 0 : index
    %c0_28 = arith.constant 0 : index
    %31 = vector.load %arg18[%c0_27, %c0_28] : memref<64x512xf32, #tpu.memory_space<vmem>>, vector<8x512xf32>
    %32 = arith.truncf %6 : vector<8x128xf32> to vector<8x128xbf16>
    %cst_29 = arith.constant dense<0.000000e+00> : vector<8x512xf32>
    %33 = tpu.matmul %32, %25, %cst_29 {dimension_numbers = #tpu.dot_dimension_numbers<[1], [0], [0], [1], [0, 0, 1, 1], [], []>} : vector<8x128xbf16>, vector<128x512xbf16>, vector<8x512xf32> -> vector<8x512xf32>
    %34 = arith.addf %31, %33 : vector<8x512xf32>
    %35 = vector.extract_strided_slice %34 {offsets = [0, 0], sizes = [8, 128], strides = [1, 1]} : vector<8x512xf32> to vector<8x128xf32>
    %36 = arith.negf %35 : vector<8x128xf32>
    %37 = math.exp %36 : vector<8x128xf32>
    %cst_30 = arith.constant 1.000000e+00 : f32
    %38 = vector.broadcast %cst_30 : f32 to vector<8x128xf32>
    %39 = arith.addf %38, %37 : vector<8x128xf32>
    %40 = arith.divf %38, %39 : vector<8x128xf32>
    %41 = vector.extract_strided_slice %34 {offsets = [0, 128], sizes = [8, 128], strides = [1, 1]} : vector<8x512xf32> to vector<8x128xf32>
    %42 = arith.negf %41 : vector<8x128xf32>
    %43 = math.exp %42 : vector<8x128xf32>
    %cst_31 = arith.constant 1.000000e+00 : f32
    %44 = vector.broadcast %cst_31 : f32 to vector<8x128xf32>
    %45 = arith.addf %44, %43 : vector<8x128xf32>
    %46 = arith.divf %44, %45 : vector<8x128xf32>
    %47 = vector.extract_strided_slice %34 {offsets = [0, 256], sizes = [8, 128], strides = [1, 1]} : vector<8x512xf32> to vector<8x128xf32>
    %48 = math.tanh %47 : vector<8x128xf32>
    %49 = vector.extract_strided_slice %34 {offsets = [0, 384], sizes = [8, 128], strides = [1, 1]} : vector<8x512xf32> to vector<8x128xf32>
    %50 = arith.negf %49 : vector<8x128xf32>
    %51 = math.exp %50 : vector<8x128xf32>
    %cst_32 = arith.constant 1.000000e+00 : f32
    %52 = vector.broadcast %cst_32 : f32 to vector<8x128xf32>
    %53 = arith.addf %52, %51 : vector<8x128xf32>
    %54 = arith.divf %52, %53 : vector<8x128xf32>
    %55 = arith.mulf %46, %11 : vector<8x128xf32>
    %56 = arith.mulf %40, %48 : vector<8x128xf32>
    %57 = arith.addf %55, %56 : vector<8x128xf32>
    %58 = math.tanh %57 : vector<8x128xf32>
    %59 = arith.mulf %54, %58 : vector<8x128xf32>
    %c8 = arith.constant 8 : index
    %c0_33 = arith.constant 0 : index
    %60 = vector.load %arg18[%c8, %c0_33] : memref<64x512xf32, #tpu.memory_space<vmem>>, vector<8x512xf32>
    %61 = arith.truncf %59 : vector<8x128xf32> to vector<8x128xbf16>
    %cst_34 = arith.constant dense<0.000000e+00> : vector<8x512xf32>
    %62 = tpu.matmul %61, %25, %cst_34 {dimension_numbers = #tpu.dot_dimension_numbers<[1], [0], [0], [1], [0, 0, 1, 1], [], []>} : vector<8x128xbf16>, vector<128x512xbf16>, vector<8x512xf32> -> vector<8x512xf32>
    %63 = arith.addf %60, %62 : vector<8x512xf32>
    %64 = vector.extract_strided_slice %63 {offsets = [0, 0], sizes = [8, 128], strides = [1, 1]} : vector<8x512xf32> to vector<8x128xf32>
    %65 = arith.negf %64 : vector<8x128xf32>
    %66 = math.exp %65 : vector<8x128xf32>
    %cst_35 = arith.constant 1.000000e+00 : f32
    %67 = vector.broadcast %cst_35 : f32 to vector<8x128xf32>
    %68 = arith.addf %67, %66 : vector<8x128xf32>
    %69 = arith.divf %67, %68 : vector<8x128xf32>
    %70 = vector.extract_strided_slice %63 {offsets = [0, 128], sizes = [8, 128], strides = [1, 1]} : vector<8x512xf32> to vector<8x128xf32>
    %71 = arith.negf %70 : vector<8x128xf32>
    %72 = math.exp %71 : vector<8x128xf32>
    %cst_36 = arith.constant 1.000000e+00 : f32
    %73 = vector.broadcast %cst_36 : f32 to vector<8x128xf32>
    %74 = arith.addf %73, %72 : vector<8x128xf32>
    %75 = arith.divf %73, %74 : vector<8x128xf32>
    %76 = vector.extract_strided_slice %63 {offsets = [0, 256], sizes = [8, 128], strides = [1, 1]} : vector<8x512xf32> to vector<8x128xf32>
    %77 = math.tanh %76 : vector<8x128xf32>
    %78 = vector.extract_strided_slice %63 {offsets = [0, 384], sizes = [8, 128], strides = [1, 1]} : vector<8x512xf32> to vector<8x128xf32>
    %79 = arith.negf %78 : vector<8x128xf32>
    %80 = math.exp %79 : vector<8x128xf32>
    %cst_37 = arith.constant 1.000000e+00 : f32
    %81 = vector.broadcast %cst_37 : f32 to vector<8x128xf32>
    %82 = arith.addf %81, %80 : vector<8x128xf32>
    %83 = arith.divf %81, %82 : vector<8x128xf32>
    %84 = arith.mulf %75, %57 : vector<8x128xf32>
    %85 = arith.mulf %69, %77 : vector<8x128xf32>
    %86 = arith.addf %84, %85 : vector<8x128xf32>
    %87 = math.tanh %86 : vector<8x128xf32>
    %88 = arith.mulf %83, %87 : vector<8x128xf32>
    %c16 = arith.constant 16 : index
    %c0_38 = arith.constant 0 : index
    %89 = vector.load %arg18[%c16, %c0_38] : memref<64x512xf32, #tpu.memory_space<vmem>>, vector<8x512xf32>
    %90 = arith.truncf %88 : vector<8x128xf32> to vector<8x128xbf16>
    %cst_39 = arith.constant dense<0.000000e+00> : vector<8x512xf32>
    %91 = tpu.matmul %90, %25, %cst_39 {dimension_numbers = #tpu.dot_dimension_numbers<[1], [0], [0], [1], [0, 0, 1, 1], [], []>} : vector<8x128xbf16>, vector<128x512xbf16>, vector<8x512xf32> -> vector<8x512xf32>
    %92 = arith.addf %89, %91 : vector<8x512xf32>
    %93 = vector.extract_strided_slice %92 {offsets = [0, 0], sizes = [8, 128], strides = [1, 1]} : vector<8x512xf32> to vector<8x128xf32>
    %94 = arith.negf %93 : vector<8x128xf32>
    %95 = math.exp %94 : vector<8x128xf32>
    %cst_40 = arith.constant 1.000000e+00 : f32
    %96 = vector.broadcast %cst_40 : f32 to vector<8x128xf32>
    %97 = arith.addf %96, %95 : vector<8x128xf32>
    %98 = arith.divf %96, %97 : vector<8x128xf32>
    %99 = vector.extract_strided_slice %92 {offsets = [0, 128], sizes = [8, 128], strides = [1, 1]} : vector<8x512xf32> to vector<8x128xf32>
    %100 = arith.negf %99 : vector<8x128xf32>
    %101 = math.exp %100 : vector<8x128xf32>
    %cst_41 = arith.constant 1.000000e+00 : f32
    %102 = vector.broadcast %cst_41 : f32 to vector<8x128xf32>
    %103 = arith.addf %102, %101 : vector<8x128xf32>
    %104 = arith.divf %102, %103 : vector<8x128xf32>
    %105 = vector.extract_strided_slice %92 {offsets = [0, 256], sizes = [8, 128], strides = [1, 1]} : vector<8x512xf32> to vector<8x128xf32>
    %106 = math.tanh %105 : vector<8x128xf32>
    %107 = vector.extract_strided_slice %92 {offsets = [0, 384], sizes = [8, 128], strides = [1, 1]} : vector<8x512xf32> to vector<8x128xf32>
    %108 = arith.negf %107 : vector<8x128xf32>
    %109 = math.exp %108 : vector<8x128xf32>
    %cst_42 = arith.constant 1.000000e+00 : f32
    %110 = vector.broadcast %cst_42 : f32 to vector<8x128xf32>
    %111 = arith.addf %110, %109 : vector<8x128xf32>
    %112 = arith.divf %110, %111 : vector<8x128xf32>
    %113 = arith.mulf %104, %86 : vector<8x128xf32>
    %114 = arith.mulf %98, %106 : vector<8x128xf32>
    %115 = arith.addf %113, %114 : vector<8x128xf32>
    %116 = math.tanh %115 : vector<8x128xf32>
    %117 = arith.mulf %112, %116 : vector<8x128xf32>
    %c24 = arith.constant 24 : index
    %c0_43 = arith.constant 0 : index
    %118 = vector.load %arg18[%c24, %c0_43] : memref<64x512xf32, #tpu.memory_space<vmem>>, vector<8x512xf32>
    %119 = arith.truncf %117 : vector<8x128xf32> to vector<8x128xbf16>
    %cst_44 = arith.constant dense<0.000000e+00> : vector<8x512xf32>
    %120 = tpu.matmul %119, %25, %cst_44 {dimension_numbers = #tpu.dot_dimension_numbers<[1], [0], [0], [1], [0, 0, 1, 1], [], []>} : vector<8x128xbf16>, vector<128x512xbf16>, vector<8x512xf32> -> vector<8x512xf32>
    %121 = arith.addf %118, %120 : vector<8x512xf32>
    %122 = vector.extract_strided_slice %121 {offsets = [0, 0], sizes = [8, 128], strides = [1, 1]} : vector<8x512xf32> to vector<8x128xf32>
    %123 = arith.negf %122 : vector<8x128xf32>
    %124 = math.exp %123 : vector<8x128xf32>
    %cst_45 = arith.constant 1.000000e+00 : f32
    %125 = vector.broadcast %cst_45 : f32 to vector<8x128xf32>
    %126 = arith.addf %125, %124 : vector<8x128xf32>
    %127 = arith.divf %125, %126 : vector<8x128xf32>
    %128 = vector.extract_strided_slice %121 {offsets = [0, 128], sizes = [8, 128], strides = [1, 1]} : vector<8x512xf32> to vector<8x128xf32>
    %129 = arith.negf %128 : vector<8x128xf32>
    %130 = math.exp %129 : vector<8x128xf32>
    %cst_46 = arith.constant 1.000000e+00 : f32
    %131 = vector.broadcast %cst_46 : f32 to vector<8x128xf32>
    %132 = arith.addf %131, %130 : vector<8x128xf32>
    %133 = arith.divf %131, %132 : vector<8x128xf32>
    %134 = vector.extract_strided_slice %121 {offsets = [0, 256], sizes = [8, 128], strides = [1, 1]} : vector<8x512xf32> to vector<8x128xf32>
    %135 = math.tanh %134 : vector<8x128xf32>
    %136 = vector.extract_strided_slice %121 {offsets = [0, 384], sizes = [8, 128], strides = [1, 1]} : vector<8x512xf32> to vector<8x128xf32>
    %137 = arith.negf %136 : vector<8x128xf32>
    %138 = math.exp %137 : vector<8x128xf32>
    %cst_47 = arith.constant 1.000000e+00 : f32
    %139 = vector.broadcast %cst_47 : f32 to vector<8x128xf32>
    %140 = arith.addf %139, %138 : vector<8x128xf32>
    %141 = arith.divf %139, %140 : vector<8x128xf32>
    %142 = arith.mulf %133, %115 : vector<8x128xf32>
    %143 = arith.mulf %127, %135 : vector<8x128xf32>
    %144 = arith.addf %142, %143 : vector<8x128xf32>
    %145 = math.tanh %144 : vector<8x128xf32>
    %146 = arith.mulf %141, %145 : vector<8x128xf32>
    %c32 = arith.constant 32 : index
    %c0_48 = arith.constant 0 : index
    %147 = vector.load %arg18[%c32, %c0_48] : memref<64x512xf32, #tpu.memory_space<vmem>>, vector<8x512xf32>
    %148 = arith.truncf %146 : vector<8x128xf32> to vector<8x128xbf16>
    %cst_49 = arith.constant dense<0.000000e+00> : vector<8x512xf32>
    %149 = tpu.matmul %148, %25, %cst_49 {dimension_numbers = #tpu.dot_dimension_numbers<[1], [0], [0], [1], [0, 0, 1, 1], [], []>} : vector<8x128xbf16>, vector<128x512xbf16>, vector<8x512xf32> -> vector<8x512xf32>
    %150 = arith.addf %147, %149 : vector<8x512xf32>
    %151 = vector.extract_strided_slice %150 {offsets = [0, 0], sizes = [8, 128], strides = [1, 1]} : vector<8x512xf32> to vector<8x128xf32>
    %152 = arith.negf %151 : vector<8x128xf32>
    %153 = math.exp %152 : vector<8x128xf32>
    %cst_50 = arith.constant 1.000000e+00 : f32
    %154 = vector.broadcast %cst_50 : f32 to vector<8x128xf32>
    %155 = arith.addf %154, %153 : vector<8x128xf32>
    %156 = arith.divf %154, %155 : vector<8x128xf32>
    %157 = vector.extract_strided_slice %150 {offsets = [0, 128], sizes = [8, 128], strides = [1, 1]} : vector<8x512xf32> to vector<8x128xf32>
    %158 = arith.negf %157 : vector<8x128xf32>
    %159 = math.exp %158 : vector<8x128xf32>
    %cst_51 = arith.constant 1.000000e+00 : f32
    %160 = vector.broadcast %cst_51 : f32 to vector<8x128xf32>
    %161 = arith.addf %160, %159 : vector<8x128xf32>
    %162 = arith.divf %160, %161 : vector<8x128xf32>
    %163 = vector.extract_strided_slice %150 {offsets = [0, 256], sizes = [8, 128], strides = [1, 1]} : vector<8x512xf32> to vector<8x128xf32>
    %164 = math.tanh %163 : vector<8x128xf32>
    %165 = vector.extract_strided_slice %150 {offsets = [0, 384], sizes = [8, 128], strides = [1, 1]} : vector<8x512xf32> to vector<8x128xf32>
    %166 = arith.negf %165 : vector<8x128xf32>
    %167 = math.exp %166 : vector<8x128xf32>
    %cst_52 = arith.constant 1.000000e+00 : f32
    %168 = vector.broadcast %cst_52 : f32 to vector<8x128xf32>
    %169 = arith.addf %168, %167 : vector<8x128xf32>
    %170 = arith.divf %168, %169 : vector<8x128xf32>
    %171 = arith.mulf %162, %144 : vector<8x128xf32>
    %172 = arith.mulf %156, %164 : vector<8x128xf32>
    %173 = arith.addf %171, %172 : vector<8x128xf32>
    %174 = math.tanh %173 : vector<8x128xf32>
    %175 = arith.mulf %170, %174 : vector<8x128xf32>
    %c40 = arith.constant 40 : index
    %c0_53 = arith.constant 0 : index
    %176 = vector.load %arg18[%c40, %c0_53] : memref<64x512xf32, #tpu.memory_space<vmem>>, vector<8x512xf32>
    %177 = arith.truncf %175 : vector<8x128xf32> to vector<8x128xbf16>
    %cst_54 = arith.constant dense<0.000000e+00> : vector<8x512xf32>
    %178 = tpu.matmul %177, %25, %cst_54 {dimension_numbers = #tpu.dot_dimension_numbers<[1], [0], [0], [1], [0, 0, 1, 1], [], []>} : vector<8x128xbf16>, vector<128x512xbf16>, vector<8x512xf32> -> vector<8x512xf32>
    %179 = arith.addf %176, %178 : vector<8x512xf32>
    %180 = vector.extract_strided_slice %179 {offsets = [0, 0], sizes = [8, 128], strides = [1, 1]} : vector<8x512xf32> to vector<8x128xf32>
    %181 = arith.negf %180 : vector<8x128xf32>
    %182 = math.exp %181 : vector<8x128xf32>
    %cst_55 = arith.constant 1.000000e+00 : f32
    %183 = vector.broadcast %cst_55 : f32 to vector<8x128xf32>
    %184 = arith.addf %183, %182 : vector<8x128xf32>
    %185 = arith.divf %183, %184 : vector<8x128xf32>
    %186 = vector.extract_strided_slice %179 {offsets = [0, 128], sizes = [8, 128], strides = [1, 1]} : vector<8x512xf32> to vector<8x128xf32>
    %187 = arith.negf %186 : vector<8x128xf32>
    %188 = math.exp %187 : vector<8x128xf32>
    %cst_56 = arith.constant 1.000000e+00 : f32
    %189 = vector.broadcast %cst_56 : f32 to vector<8x128xf32>
    %190 = arith.addf %189, %188 : vector<8x128xf32>
    %191 = arith.divf %189, %190 : vector<8x128xf32>
    %192 = vector.extract_strided_slice %179 {offsets = [0, 256], sizes = [8, 128], strides = [1, 1]} : vector<8x512xf32> to vector<8x128xf32>
    %193 = math.tanh %192 : vector<8x128xf32>
    %194 = vector.extract_strided_slice %179 {offsets = [0, 384], sizes = [8, 128], strides = [1, 1]} : vector<8x512xf32> to vector<8x128xf32>
    %195 = arith.negf %194 : vector<8x128xf32>
    %196 = math.exp %195 : vector<8x128xf32>
    %cst_57 = arith.constant 1.000000e+00 : f32
    %197 = vector.broadcast %cst_57 : f32 to vector<8x128xf32>
    %198 = arith.addf %197, %196 : vector<8x128xf32>
    %199 = arith.divf %197, %198 : vector<8x128xf32>
    %200 = arith.mulf %191, %173 : vector<8x128xf32>
    %201 = arith.mulf %185, %193 : vector<8x128xf32>
    %202 = arith.addf %200, %201 : vector<8x128xf32>
    %203 = math.tanh %202 : vector<8x128xf32>
    %204 = arith.mulf %199, %203 : vector<8x128xf32>
    %c48 = arith.constant 48 : index
    %c0_58 = arith.constant 0 : index
    %205 = vector.load %arg18[%c48, %c0_58] : memref<64x512xf32, #tpu.memory_space<vmem>>, vector<8x512xf32>
    %206 = arith.truncf %204 : vector<8x128xf32> to vector<8x128xbf16>
    %cst_59 = arith.constant dense<0.000000e+00> : vector<8x512xf32>
    %207 = tpu.matmul %206, %25, %cst_59 {dimension_numbers = #tpu.dot_dimension_numbers<[1], [0], [0], [1], [0, 0, 1, 1], [], []>} : vector<8x128xbf16>, vector<128x512xbf16>, vector<8x512xf32> -> vector<8x512xf32>
    %208 = arith.addf %205, %207 : vector<8x512xf32>
    %209 = vector.extract_strided_slice %208 {offsets = [0, 0], sizes = [8, 128], strides = [1, 1]} : vector<8x512xf32> to vector<8x128xf32>
    %210 = arith.negf %209 : vector<8x128xf32>
    %211 = math.exp %210 : vector<8x128xf32>
    %cst_60 = arith.constant 1.000000e+00 : f32
    %212 = vector.broadcast %cst_60 : f32 to vector<8x128xf32>
    %213 = arith.addf %212, %211 : vector<8x128xf32>
    %214 = arith.divf %212, %213 : vector<8x128xf32>
    %215 = vector.extract_strided_slice %208 {offsets = [0, 128], sizes = [8, 128], strides = [1, 1]} : vector<8x512xf32> to vector<8x128xf32>
    %216 = arith.negf %215 : vector<8x128xf32>
    %217 = math.exp %216 : vector<8x128xf32>
    %cst_61 = arith.constant 1.000000e+00 : f32
    %218 = vector.broadcast %cst_61 : f32 to vector<8x128xf32>
    %219 = arith.addf %218, %217 : vector<8x128xf32>
    %220 = arith.divf %218, %219 : vector<8x128xf32>
    %221 = vector.extract_strided_slice %208 {offsets = [0, 256], sizes = [8, 128], strides = [1, 1]} : vector<8x512xf32> to vector<8x128xf32>
    %222 = math.tanh %221 : vector<8x128xf32>
    %223 = vector.extract_strided_slice %208 {offsets = [0, 384], sizes = [8, 128], strides = [1, 1]} : vector<8x512xf32> to vector<8x128xf32>
    %224 = arith.negf %223 : vector<8x128xf32>
    %225 = math.exp %224 : vector<8x128xf32>
    %cst_62 = arith.constant 1.000000e+00 : f32
    %226 = vector.broadcast %cst_62 : f32 to vector<8x128xf32>
    %227 = arith.addf %226, %225 : vector<8x128xf32>
    %228 = arith.divf %226, %227 : vector<8x128xf32>
    %229 = arith.mulf %220, %202 : vector<8x128xf32>
    %230 = arith.mulf %214, %222 : vector<8x128xf32>
    %231 = arith.addf %229, %230 : vector<8x128xf32>
    %232 = math.tanh %231 : vector<8x128xf32>
    %233 = arith.mulf %228, %232 : vector<8x128xf32>
    %c56 = arith.constant 56 : index
    %c0_63 = arith.constant 0 : index
    %234 = vector.load %arg18[%c56, %c0_63] : memref<64x512xf32, #tpu.memory_space<vmem>>, vector<8x512xf32>
    %235 = arith.truncf %233 : vector<8x128xf32> to vector<8x128xbf16>
    %cst_64 = arith.constant dense<0.000000e+00> : vector<8x512xf32>
    %236 = tpu.matmul %235, %25, %cst_64 {dimension_numbers = #tpu.dot_dimension_numbers<[1], [0], [0], [1], [0, 0, 1, 1], [], []>} : vector<8x128xbf16>, vector<128x512xbf16>, vector<8x512xf32> -> vector<8x512xf32>
    %237 = arith.addf %234, %236 : vector<8x512xf32>
    %238 = vector.extract_strided_slice %237 {offsets = [0, 0], sizes = [8, 128], strides = [1, 1]} : vector<8x512xf32> to vector<8x128xf32>
    %239 = arith.negf %238 : vector<8x128xf32>
    %240 = math.exp %239 : vector<8x128xf32>
    %cst_65 = arith.constant 1.000000e+00 : f32
    %241 = vector.broadcast %cst_65 : f32 to vector<8x128xf32>
    %242 = arith.addf %241, %240 : vector<8x128xf32>
    %243 = arith.divf %241, %242 : vector<8x128xf32>
    %244 = vector.extract_strided_slice %237 {offsets = [0, 128], sizes = [8, 128], strides = [1, 1]} : vector<8x512xf32> to vector<8x128xf32>
    %245 = arith.negf %244 : vector<8x128xf32>
    %246 = math.exp %245 : vector<8x128xf32>
    %cst_66 = arith.constant 1.000000e+00 : f32
    %247 = vector.broadcast %cst_66 : f32 to vector<8x128xf32>
    %248 = arith.addf %247, %246 : vector<8x128xf32>
    %249 = arith.divf %247, %248 : vector<8x128xf32>
    %250 = vector.extract_strided_slice %237 {offsets = [0, 256], sizes = [8, 128], strides = [1, 1]} : vector<8x512xf32> to vector<8x128xf32>
    %251 = math.tanh %250 : vector<8x128xf32>
    %252 = vector.extract_strided_slice %237 {offsets = [0, 384], sizes = [8, 128], strides = [1, 1]} : vector<8x512xf32> to vector<8x128xf32>
    %253 = arith.negf %252 : vector<8x128xf32>
    %254 = math.exp %253 : vector<8x128xf32>
    %cst_67 = arith.constant 1.000000e+00 : f32
    %255 = vector.broadcast %cst_67 : f32 to vector<8x128xf32>
    %256 = arith.addf %255, %254 : vector<8x128xf32>
    %257 = arith.divf %255, %256 : vector<8x128xf32>
    %258 = arith.mulf %249, %231 : vector<8x128xf32>
    %259 = arith.mulf %243, %251 : vector<8x128xf32>
    %260 = arith.addf %258, %259 : vector<8x128xf32>
    %261 = math.tanh %260 : vector<8x128xf32>
    %262 = arith.mulf %257, %261 : vector<8x128xf32>
    %c0_68 = arith.constant 0 : index
    %c0_69 = arith.constant 0 : index
    %c0_70 = arith.constant 0 : index
    %263 = vector.load %arg16[%c0_68, %c0_69, %c0_70] : memref<2x8x128xf32, #tpu.memory_space<vmem>>, vector<1x8x128xf32>
    %264 = vector.shape_cast %263 : vector<1x8x128xf32> to vector<8x128xf32>
    %265 = vector.shape_cast %262 : vector<8x128xf32> to vector<1x8x128xf32>
    tpu.vector_store %arg16[%c0_68, %c0_69, %c0_70], %265 {strides = array<i32>} : memref<2x8x128xf32, #tpu.memory_space<vmem>>, vector<1x8x128xf32>,
    %c0_71 = arith.constant 0 : index
    %c0_72 = arith.constant 0 : index
    %c0_73 = arith.constant 0 : index
    %266 = vector.load %arg17[%c0_71, %c0_72, %c0_73] : memref<2x8x128xf32, #tpu.memory_space<vmem>>, vector<1x8x128xf32>
    %267 = vector.shape_cast %266 : vector<1x8x128xf32> to vector<8x128xf32>
    %268 = vector.shape_cast %260 : vector<8x128xf32> to vector<1x8x128xf32>
    tpu.vector_store %arg17[%c0_71, %c0_72, %c0_73], %268 {strides = array<i32>} : memref<2x8x128xf32, #tpu.memory_space<vmem>>, vector<1x8x128xf32>,
    %269 = tpu.concatenate %59, %88, %117, %146, %175, %204, %233, %262 in 0 : vector<8x128xf32>, vector<8x128xf32>, vector<8x128xf32>, vector<8x128xf32>, vector<8x128xf32>, vector<8x128xf32>, vector<8x128xf32>, vector<8x128xf32> -> vector<64x128xf32>
    %270 = arith.truncf %269 : vector<64x128xf32> to vector<64x128xbf16>
    %c0_74 = arith.constant 0 : index
    %c0_75 = arith.constant 0 : index
    %271 = vector.load %arg10[%c0_74, %c0_75] : memref<128x512xbf16, #tpu.memory_space<vmem>>, vector<128x512xbf16>
    %c0_76 = arith.constant 0 : index
    %c0_77 = arith.constant 0 : index
    %272 = vector.load %arg11[%c0_76, %c0_77] : memref<128x512xbf16, #tpu.memory_space<vmem>>, vector<128x512xbf16>
    %c0_78 = arith.constant 0 : index
    %c0_79 = arith.constant 0 : index
    %273 = vector.load %arg12[%c0_78, %c0_79] : memref<1x512xf32, #tpu.memory_space<vmem>>, vector<1x512xf32>
    %cst_80 = arith.constant dense<0.000000e+00> : vector<64x512xf32>
    %274 = tpu.matmul %270, %271, %cst_80 {dimension_numbers = #tpu.dot_dimension_numbers<[1], [0], [0], [1], [0, 0, 1, 1], [], []>} : vector<64x128xbf16>, vector<128x512xbf16>, vector<64x512xf32> -> vector<64x512xf32>
    %275 = vector.broadcast %273 : vector<1x512xf32> to vector<64x512xf32>
    %276 = arith.addf %274, %275 : vector<64x512xf32>
    %c0_81 = arith.constant 0 : index
    %c0_82 = arith.constant 0 : index
    %277 = vector.load %arg18[%c0_81, %c0_82] : memref<64x512xf32, #tpu.memory_space<vmem>>, vector<64x512xf32>
    tpu.vector_store %arg18[%c0_81, %c0_82], %276 {strides = array<i32>} : memref<64x512xf32, #tpu.memory_space<vmem>>, vector<64x512xf32>,
    %c0_83 = arith.constant 0 : index
    %c0_84 = arith.constant 0 : index
    %278 = vector.load %arg18[%c0_83, %c0_84] : memref<64x512xf32, #tpu.memory_space<vmem>>, vector<8x512xf32>
    %279 = arith.truncf %6 : vector<8x128xf32> to vector<8x128xbf16>
    %cst_85 = arith.constant dense<0.000000e+00> : vector<8x512xf32>
    %280 = tpu.matmul %279, %272, %cst_85 {dimension_numbers = #tpu.dot_dimension_numbers<[1], [0], [0], [1], [0, 0, 1, 1], [], []>} : vector<8x128xbf16>, vector<128x512xbf16>, vector<8x512xf32> -> vector<8x512xf32>
    %281 = arith.addf %278, %280 : vector<8x512xf32>
    %282 = vector.extract_strided_slice %281 {offsets = [0, 0], sizes = [8, 128], strides = [1, 1]} : vector<8x512xf32> to vector<8x128xf32>
    %283 = arith.negf %282 : vector<8x128xf32>
    %284 = math.exp %283 : vector<8x128xf32>
    %cst_86 = arith.constant 1.000000e+00 : f32
    %285 = vector.broadcast %cst_86 : f32 to vector<8x128xf32>
    %286 = arith.addf %285, %284 : vector<8x128xf32>
    %287 = arith.divf %285, %286 : vector<8x128xf32>
    %288 = vector.extract_strided_slice %281 {offsets = [0, 128], sizes = [8, 128], strides = [1, 1]} : vector<8x512xf32> to vector<8x128xf32>
    %289 = arith.negf %288 : vector<8x128xf32>
    %290 = math.exp %289 : vector<8x128xf32>
    %cst_87 = arith.constant 1.000000e+00 : f32
    %291 = vector.broadcast %cst_87 : f32 to vector<8x128xf32>
    %292 = arith.addf %291, %290 : vector<8x128xf32>
    %293 = arith.divf %291, %292 : vector<8x128xf32>
    %294 = vector.extract_strided_slice %281 {offsets = [0, 256], sizes = [8, 128], strides = [1, 1]} : vector<8x512xf32> to vector<8x128xf32>
    %295 = math.tanh %294 : vector<8x128xf32>
    %296 = vector.extract_strided_slice %281 {offsets = [0, 384], sizes = [8, 128], strides = [1, 1]} : vector<8x512xf32> to vector<8x128xf32>
    %297 = arith.negf %296 : vector<8x128xf32>
    %298 = math.exp %297 : vector<8x128xf32>
    %cst_88 = arith.constant 1.000000e+00 : f32
    %299 = vector.broadcast %cst_88 : f32 to vector<8x128xf32>
    %300 = arith.addf %299, %298 : vector<8x128xf32>
    %301 = arith.divf %299, %300 : vector<8x128xf32>
    %302 = arith.mulf %293, %11 : vector<8x128xf32>
    %303 = arith.mulf %287, %295 : vector<8x128xf32>
    %304 = arith.addf %302, %303 : vector<8x128xf32>
    %305 = math.tanh %304 : vector<8x128xf32>
    %306 = arith.mulf %301, %305 : vector<8x128xf32>
    %c8_89 = arith.constant 8 : index
    %c0_90 = arith.constant 0 : index
    %307 = vector.load %arg18[%c8_89, %c0_90] : memref<64x512xf32, #tpu.memory_space<vmem>>, vector<8x512xf32>
    %308 = arith.truncf %306 : vector<8x128xf32> to vector<8x128xbf16>
    %cst_91 = arith.constant dense<0.000000e+00> : vector<8x512xf32>
    %309 = tpu.matmul %308, %272, %cst_91 {dimension_numbers = #tpu.dot_dimension_numbers<[1], [0], [0], [1], [0, 0, 1, 1], [], []>} : vector<8x128xbf16>, vector<128x512xbf16>, vector<8x512xf32> -> vector<8x512xf32>
    %310 = arith.addf %307, %309 : vector<8x512xf32>
    %311 = vector.extract_strided_slice %310 {offsets = [0, 0], sizes = [8, 128], strides = [1, 1]} : vector<8x512xf32> to vector<8x128xf32>
    %312 = arith.negf %311 : vector<8x128xf32>
    %313 = math.exp %312 : vector<8x128xf32>
    %cst_92 = arith.constant 1.000000e+00 : f32
    %314 = vector.broadcast %cst_92 : f32 to vector<8x128xf32>
    %315 = arith.addf %314, %313 : vector<8x128xf32>
    %316 = arith.divf %314, %315 : vector<8x128xf32>
    %317 = vector.extract_strided_slice %310 {offsets = [0, 128], sizes = [8, 128], strides = [1, 1]} : vector<8x512xf32> to vector<8x128xf32>
    %318 = arith.negf %317 : vector<8x128xf32>
    %319 = math.exp %318 : vector<8x128xf32>
    %cst_93 = arith.constant 1.000000e+00 : f32
    %320 = vector.broadcast %cst_93 : f32 to vector<8x128xf32>
    %321 = arith.addf %320, %319 : vector<8x128xf32>
    %322 = arith.divf %320, %321 : vector<8x128xf32>
    %323 = vector.extract_strided_slice %310 {offsets = [0, 256], sizes = [8, 128], strides = [1, 1]} : vector<8x512xf32> to vector<8x128xf32>
    %324 = math.tanh %323 : vector<8x128xf32>
    %325 = vector.extract_strided_slice %310 {offsets = [0, 384], sizes = [8, 128], strides = [1, 1]} : vector<8x512xf32> to vector<8x128xf32>
    %326 = arith.negf %325 : vector<8x128xf32>
    %327 = math.exp %326 : vector<8x128xf32>
    %cst_94 = arith.constant 1.000000e+00 : f32
    %328 = vector.broadcast %cst_94 : f32 to vector<8x128xf32>
    %329 = arith.addf %328, %327 : vector<8x128xf32>
    %330 = arith.divf %328, %329 : vector<8x128xf32>
    %331 = arith.mulf %322, %304 : vector<8x128xf32>
    %332 = arith.mulf %316, %324 : vector<8x128xf32>
    %333 = arith.addf %331, %332 : vector<8x128xf32>
    %334 = math.tanh %333 : vector<8x128xf32>
    %335 = arith.mulf %330, %334 : vector<8x128xf32>
    %c16_95 = arith.constant 16 : index
    %c0_96 = arith.constant 0 : index
    %336 = vector.load %arg18[%c16_95, %c0_96] : memref<64x512xf32, #tpu.memory_space<vmem>>, vector<8x512xf32>
    %337 = arith.truncf %335 : vector<8x128xf32> to vector<8x128xbf16>
    %cst_97 = arith.constant dense<0.000000e+00> : vector<8x512xf32>
    %338 = tpu.matmul %337, %272, %cst_97 {dimension_numbers = #tpu.dot_dimension_numbers<[1], [0], [0], [1], [0, 0, 1, 1], [], []>} : vector<8x128xbf16>, vector<128x512xbf16>, vector<8x512xf32> -> vector<8x512xf32>
    %339 = arith.addf %336, %338 : vector<8x512xf32>
    %340 = vector.extract_strided_slice %339 {offsets = [0, 0], sizes = [8, 128], strides = [1, 1]} : vector<8x512xf32> to vector<8x128xf32>
    %341 = arith.negf %340 : vector<8x128xf32>
    %342 = math.exp %341 : vector<8x128xf32>
    %cst_98 = arith.constant 1.000000e+00 : f32
    %343 = vector.broadcast %cst_98 : f32 to vector<8x128xf32>
    %344 = arith.addf %343, %342 : vector<8x128xf32>
    %345 = arith.divf %343, %344 : vector<8x128xf32>
    %346 = vector.extract_strided_slice %339 {offsets = [0, 128], sizes = [8, 128], strides = [1, 1]} : vector<8x512xf32> to vector<8x128xf32>
    %347 = arith.negf %346 : vector<8x128xf32>
    %348 = math.exp %347 : vector<8x128xf32>
    %cst_99 = arith.constant 1.000000e+00 : f32
    %349 = vector.broadcast %cst_99 : f32 to vector<8x128xf32>
    %350 = arith.addf %349, %348 : vector<8x128xf32>
    %351 = arith.divf %349, %350 : vector<8x128xf32>
    %352 = vector.extract_strided_slice %339 {offsets = [0, 256], sizes = [8, 128], strides = [1, 1]} : vector<8x512xf32> to vector<8x128xf32>
    %353 = math.tanh %352 : vector<8x128xf32>
    %354 = vector.extract_strided_slice %339 {offsets = [0, 384], sizes = [8, 128], strides = [1, 1]} : vector<8x512xf32> to vector<8x128xf32>
    %355 = arith.negf %354 : vector<8x128xf32>
    %356 = math.exp %355 : vector<8x128xf32>
    %cst_100 = arith.constant 1.000000e+00 : f32
    %357 = vector.broadcast %cst_100 : f32 to vector<8x128xf32>
    %358 = arith.addf %357, %356 : vector<8x128xf32>
    %359 = arith.divf %357, %358 : vector<8x128xf32>
    %360 = arith.mulf %351, %333 : vector<8x128xf32>
    %361 = arith.mulf %345, %353 : vector<8x128xf32>
    %362 = arith.addf %360, %361 : vector<8x128xf32>
    %363 = math.tanh %362 : vector<8x128xf32>
    %364 = arith.mulf %359, %363 : vector<8x128xf32>
    %c24_101 = arith.constant 24 : index
    %c0_102 = arith.constant 0 : index
    %365 = vector.load %arg18[%c24_101, %c0_102] : memref<64x512xf32, #tpu.memory_space<vmem>>, vector<8x512xf32>
    %366 = arith.truncf %364 : vector<8x128xf32> to vector<8x128xbf16>
    %cst_103 = arith.constant dense<0.000000e+00> : vector<8x512xf32>
    %367 = tpu.matmul %366, %272, %cst_103 {dimension_numbers = #tpu.dot_dimension_numbers<[1], [0], [0], [1], [0, 0, 1, 1], [], []>} : vector<8x128xbf16>, vector<128x512xbf16>, vector<8x512xf32> -> vector<8x512xf32>
    %368 = arith.addf %365, %367 : vector<8x512xf32>
    %369 = vector.extract_strided_slice %368 {offsets = [0, 0], sizes = [8, 128], strides = [1, 1]} : vector<8x512xf32> to vector<8x128xf32>
    %370 = arith.negf %369 : vector<8x128xf32>
    %371 = math.exp %370 : vector<8x128xf32>
    %cst_104 = arith.constant 1.000000e+00 : f32
    %372 = vector.broadcast %cst_104 : f32 to vector<8x128xf32>
    %373 = arith.addf %372, %371 : vector<8x128xf32>
    %374 = arith.divf %372, %373 : vector<8x128xf32>
    %375 = vector.extract_strided_slice %368 {offsets = [0, 128], sizes = [8, 128], strides = [1, 1]} : vector<8x512xf32> to vector<8x128xf32>
    %376 = arith.negf %375 : vector<8x128xf32>
    %377 = math.exp %376 : vector<8x128xf32>
    %cst_105 = arith.constant 1.000000e+00 : f32
    %378 = vector.broadcast %cst_105 : f32 to vector<8x128xf32>
    %379 = arith.addf %378, %377 : vector<8x128xf32>
    %380 = arith.divf %378, %379 : vector<8x128xf32>
    %381 = vector.extract_strided_slice %368 {offsets = [0, 256], sizes = [8, 128], strides = [1, 1]} : vector<8x512xf32> to vector<8x128xf32>
    %382 = math.tanh %381 : vector<8x128xf32>
    %383 = vector.extract_strided_slice %368 {offsets = [0, 384], sizes = [8, 128], strides = [1, 1]} : vector<8x512xf32> to vector<8x128xf32>
    %384 = arith.negf %383 : vector<8x128xf32>
    %385 = math.exp %384 : vector<8x128xf32>
    %cst_106 = arith.constant 1.000000e+00 : f32
    %386 = vector.broadcast %cst_106 : f32 to vector<8x128xf32>
    %387 = arith.addf %386, %385 : vector<8x128xf32>
    %388 = arith.divf %386, %387 : vector<8x128xf32>
    %389 = arith.mulf %380, %362 : vector<8x128xf32>
    %390 = arith.mulf %374, %382 : vector<8x128xf32>
    %391 = arith.addf %389, %390 : vector<8x128xf32>
    %392 = math.tanh %391 : vector<8x128xf32>
    %393 = arith.mulf %388, %392 : vector<8x128xf32>
    %c32_107 = arith.constant 32 : index
    %c0_108 = arith.constant 0 : index
    %394 = vector.load %arg18[%c32_107, %c0_108] : memref<64x512xf32, #tpu.memory_space<vmem>>, vector<8x512xf32>
    %395 = arith.truncf %393 : vector<8x128xf32> to vector<8x128xbf16>
    %cst_109 = arith.constant dense<0.000000e+00> : vector<8x512xf32>
    %396 = tpu.matmul %395, %272, %cst_109 {dimension_numbers = #tpu.dot_dimension_numbers<[1], [0], [0], [1], [0, 0, 1, 1], [], []>} : vector<8x128xbf16>, vector<128x512xbf16>, vector<8x512xf32> -> vector<8x512xf32>
    %397 = arith.addf %394, %396 : vector<8x512xf32>
    %398 = vector.extract_strided_slice %397 {offsets = [0, 0], sizes = [8, 128], strides = [1, 1]} : vector<8x512xf32> to vector<8x128xf32>
    %399 = arith.negf %398 : vector<8x128xf32>
    %400 = math.exp %399 : vector<8x128xf32>
    %cst_110 = arith.constant 1.000000e+00 : f32
    %401 = vector.broadcast %cst_110 : f32 to vector<8x128xf32>
    %402 = arith.addf %401, %400 : vector<8x128xf32>
    %403 = arith.divf %401, %402 : vector<8x128xf32>
    %404 = vector.extract_strided_slice %397 {offsets = [0, 128], sizes = [8, 128], strides = [1, 1]} : vector<8x512xf32> to vector<8x128xf32>
    %405 = arith.negf %404 : vector<8x128xf32>
    %406 = math.exp %405 : vector<8x128xf32>
    %cst_111 = arith.constant 1.000000e+00 : f32
    %407 = vector.broadcast %cst_111 : f32 to vector<8x128xf32>
    %408 = arith.addf %407, %406 : vector<8x128xf32>
    %409 = arith.divf %407, %408 : vector<8x128xf32>
    %410 = vector.extract_strided_slice %397 {offsets = [0, 256], sizes = [8, 128], strides = [1, 1]} : vector<8x512xf32> to vector<8x128xf32>
    %411 = math.tanh %410 : vector<8x128xf32>
    %412 = vector.extract_strided_slice %397 {offsets = [0, 384], sizes = [8, 128], strides = [1, 1]} : vector<8x512xf32> to vector<8x128xf32>
    %413 = arith.negf %412 : vector<8x128xf32>
    %414 = math.exp %413 : vector<8x128xf32>
    %cst_112 = arith.constant 1.000000e+00 : f32
    %415 = vector.broadcast %cst_112 : f32 to vector<8x128xf32>
    %416 = arith.addf %415, %414 : vector<8x128xf32>
    %417 = arith.divf %415, %416 : vector<8x128xf32>
    %418 = arith.mulf %409, %391 : vector<8x128xf32>
    %419 = arith.mulf %403, %411 : vector<8x128xf32>
    %420 = arith.addf %418, %419 : vector<8x128xf32>
    %421 = math.tanh %420 : vector<8x128xf32>
    %422 = arith.mulf %417, %421 : vector<8x128xf32>
    %c40_113 = arith.constant 40 : index
    %c0_114 = arith.constant 0 : index
    %423 = vector.load %arg18[%c40_113, %c0_114] : memref<64x512xf32, #tpu.memory_space<vmem>>, vector<8x512xf32>
    %424 = arith.truncf %422 : vector<8x128xf32> to vector<8x128xbf16>
    %cst_115 = arith.constant dense<0.000000e+00> : vector<8x512xf32>
    %425 = tpu.matmul %424, %272, %cst_115 {dimension_numbers = #tpu.dot_dimension_numbers<[1], [0], [0], [1], [0, 0, 1, 1], [], []>} : vector<8x128xbf16>, vector<128x512xbf16>, vector<8x512xf32> -> vector<8x512xf32>
    %426 = arith.addf %423, %425 : vector<8x512xf32>
    %427 = vector.extract_strided_slice %426 {offsets = [0, 0], sizes = [8, 128], strides = [1, 1]} : vector<8x512xf32> to vector<8x128xf32>
    %428 = arith.negf %427 : vector<8x128xf32>
    %429 = math.exp %428 : vector<8x128xf32>
    %cst_116 = arith.constant 1.000000e+00 : f32
    %430 = vector.broadcast %cst_116 : f32 to vector<8x128xf32>
    %431 = arith.addf %430, %429 : vector<8x128xf32>
    %432 = arith.divf %430, %431 : vector<8x128xf32>
    %433 = vector.extract_strided_slice %426 {offsets = [0, 128], sizes = [8, 128], strides = [1, 1]} : vector<8x512xf32> to vector<8x128xf32>
    %434 = arith.negf %433 : vector<8x128xf32>
    %435 = math.exp %434 : vector<8x128xf32>
    %cst_117 = arith.constant 1.000000e+00 : f32
    %436 = vector.broadcast %cst_117 : f32 to vector<8x128xf32>
    %437 = arith.addf %436, %435 : vector<8x128xf32>
    %438 = arith.divf %436, %437 : vector<8x128xf32>
    %439 = vector.extract_strided_slice %426 {offsets = [0, 256], sizes = [8, 128], strides = [1, 1]} : vector<8x512xf32> to vector<8x128xf32>
    %440 = math.tanh %439 : vector<8x128xf32>
    %441 = vector.extract_strided_slice %426 {offsets = [0, 384], sizes = [8, 128], strides = [1, 1]} : vector<8x512xf32> to vector<8x128xf32>
    %442 = arith.negf %441 : vector<8x128xf32>
    %443 = math.exp %442 : vector<8x128xf32>
    %cst_118 = arith.constant 1.000000e+00 : f32
    %444 = vector.broadcast %cst_118 : f32 to vector<8x128xf32>
    %445 = arith.addf %444, %443 : vector<8x128xf32>
    %446 = arith.divf %444, %445 : vector<8x128xf32>
    %447 = arith.mulf %438, %420 : vector<8x128xf32>
    %448 = arith.mulf %432, %440 : vector<8x128xf32>
    %449 = arith.addf %447, %448 : vector<8x128xf32>
    %450 = math.tanh %449 : vector<8x128xf32>
    %451 = arith.mulf %446, %450 : vector<8x128xf32>
    %c48_119 = arith.constant 48 : index
    %c0_120 = arith.constant 0 : index
    %452 = vector.load %arg18[%c48_119, %c0_120] : memref<64x512xf32, #tpu.memory_space<vmem>>, vector<8x512xf32>
    %453 = arith.truncf %451 : vector<8x128xf32> to vector<8x128xbf16>
    %cst_121 = arith.constant dense<0.000000e+00> : vector<8x512xf32>
    %454 = tpu.matmul %453, %272, %cst_121 {dimension_numbers = #tpu.dot_dimension_numbers<[1], [0], [0], [1], [0, 0, 1, 1], [], []>} : vector<8x128xbf16>, vector<128x512xbf16>, vector<8x512xf32> -> vector<8x512xf32>
    %455 = arith.addf %452, %454 : vector<8x512xf32>
    %456 = vector.extract_strided_slice %455 {offsets = [0, 0], sizes = [8, 128], strides = [1, 1]} : vector<8x512xf32> to vector<8x128xf32>
    %457 = arith.negf %456 : vector<8x128xf32>
    %458 = math.exp %457 : vector<8x128xf32>
    %cst_122 = arith.constant 1.000000e+00 : f32
    %459 = vector.broadcast %cst_122 : f32 to vector<8x128xf32>
    %460 = arith.addf %459, %458 : vector<8x128xf32>
    %461 = arith.divf %459, %460 : vector<8x128xf32>
    %462 = vector.extract_strided_slice %455 {offsets = [0, 128], sizes = [8, 128], strides = [1, 1]} : vector<8x512xf32> to vector<8x128xf32>
    %463 = arith.negf %462 : vector<8x128xf32>
    %464 = math.exp %463 : vector<8x128xf32>
    %cst_123 = arith.constant 1.000000e+00 : f32
    %465 = vector.broadcast %cst_123 : f32 to vector<8x128xf32>
    %466 = arith.addf %465, %464 : vector<8x128xf32>
    %467 = arith.divf %465, %466 : vector<8x128xf32>
    %468 = vector.extract_strided_slice %455 {offsets = [0, 256], sizes = [8, 128], strides = [1, 1]} : vector<8x512xf32> to vector<8x128xf32>
    %469 = math.tanh %468 : vector<8x128xf32>
    %470 = vector.extract_strided_slice %455 {offsets = [0, 384], sizes = [8, 128], strides = [1, 1]} : vector<8x512xf32> to vector<8x128xf32>
    %471 = arith.negf %470 : vector<8x128xf32>
    %472 = math.exp %471 : vector<8x128xf32>
    %cst_124 = arith.constant 1.000000e+00 : f32
    %473 = vector.broadcast %cst_124 : f32 to vector<8x128xf32>
    %474 = arith.addf %473, %472 : vector<8x128xf32>
    %475 = arith.divf %473, %474 : vector<8x128xf32>
    %476 = arith.mulf %467, %449 : vector<8x128xf32>
    %477 = arith.mulf %461, %469 : vector<8x128xf32>
    %478 = arith.addf %476, %477 : vector<8x128xf32>
    %479 = math.tanh %478 : vector<8x128xf32>
    %480 = arith.mulf %475, %479 : vector<8x128xf32>
    %c56_125 = arith.constant 56 : index
    %c0_126 = arith.constant 0 : index
    %481 = vector.load %arg18[%c56_125, %c0_126] : memref<64x512xf32, #tpu.memory_space<vmem>>, vector<8x512xf32>
    %482 = arith.truncf %480 : vector<8x128xf32> to vector<8x128xbf16>
    %cst_127 = arith.constant dense<0.000000e+00> : vector<8x512xf32>
    %483 = tpu.matmul %482, %272, %cst_127 {dimension_numbers = #tpu.dot_dimension_numbers<[1], [0], [0], [1], [0, 0, 1, 1], [], []>} : vector<8x128xbf16>, vector<128x512xbf16>, vector<8x512xf32> -> vector<8x512xf32>
    %484 = arith.addf %481, %483 : vector<8x512xf32>
    %485 = vector.extract_strided_slice %484 {offsets = [0, 0], sizes = [8, 128], strides = [1, 1]} : vector<8x512xf32> to vector<8x128xf32>
    %486 = arith.negf %485 : vector<8x128xf32>
    %487 = math.exp %486 : vector<8x128xf32>
    %cst_128 = arith.constant 1.000000e+00 : f32
    %488 = vector.broadcast %cst_128 : f32 to vector<8x128xf32>
    %489 = arith.addf %488, %487 : vector<8x128xf32>
    %490 = arith.divf %488, %489 : vector<8x128xf32>
    %491 = vector.extract_strided_slice %484 {offsets = [0, 128], sizes = [8, 128], strides = [1, 1]} : vector<8x512xf32> to vector<8x128xf32>
    %492 = arith.negf %491 : vector<8x128xf32>
    %493 = math.exp %492 : vector<8x128xf32>
    %cst_129 = arith.constant 1.000000e+00 : f32
    %494 = vector.broadcast %cst_129 : f32 to vector<8x128xf32>
    %495 = arith.addf %494, %493 : vector<8x128xf32>
    %496 = arith.divf %494, %495 : vector<8x128xf32>
    %497 = vector.extract_strided_slice %484 {offsets = [0, 256], sizes = [8, 128], strides = [1, 1]} : vector<8x512xf32> to vector<8x128xf32>
    %498 = math.tanh %497 : vector<8x128xf32>
    %499 = vector.extract_strided_slice %484 {offsets = [0, 384], sizes = [8, 128], strides = [1, 1]} : vector<8x512xf32> to vector<8x128xf32>
    %500 = arith.negf %499 : vector<8x128xf32>
    %501 = math.exp %500 : vector<8x128xf32>
    %cst_130 = arith.constant 1.000000e+00 : f32
    %502 = vector.broadcast %cst_130 : f32 to vector<8x128xf32>
    %503 = arith.addf %502, %501 : vector<8x128xf32>
    %504 = arith.divf %502, %503 : vector<8x128xf32>
    %505 = arith.mulf %496, %478 : vector<8x128xf32>
    %506 = arith.mulf %490, %498 : vector<8x128xf32>
    %507 = arith.addf %505, %506 : vector<8x128xf32>
    %508 = math.tanh %507 : vector<8x128xf32>
    %509 = arith.mulf %504, %508 : vector<8x128xf32>
    %c1 = arith.constant 1 : index
    %c0_131 = arith.constant 0 : index
    %c0_132 = arith.constant 0 : index
    %510 = vector.load %arg16[%c1, %c0_131, %c0_132] : memref<2x8x128xf32, #tpu.memory_space<vmem>>, vector<1x8x128xf32>
    %511 = vector.shape_cast %510 : vector<1x8x128xf32> to vector<8x128xf32>
    %512 = vector.shape_cast %509 : vector<8x128xf32> to vector<1x8x128xf32>
    tpu.vector_store %arg16[%c1, %c0_131, %c0_132], %512 {strides = array<i32>} : memref<2x8x128xf32, #tpu.memory_space<vmem>>, vector<1x8x128xf32>,
    %c1_133 = arith.constant 1 : index
    %c0_134 = arith.constant 0 : index
    %c0_135 = arith.constant 0 : index
    %513 = vector.load %arg17[%c1_133, %c0_134, %c0_135] : memref<2x8x128xf32, #tpu.memory_space<vmem>>, vector<1x8x128xf32>
    %514 = vector.shape_cast %513 : vector<1x8x128xf32> to vector<8x128xf32>
    %515 = vector.shape_cast %507 : vector<8x128xf32> to vector<1x8x128xf32>
    tpu.vector_store %arg17[%c1_133, %c0_134, %c0_135], %515 {strides = array<i32>} : memref<2x8x128xf32, #tpu.memory_space<vmem>>, vector<1x8x128xf32>,
    %516 = tpu.concatenate %306, %335, %364, %393, %422, %451, %480, %509 in 0 : vector<8x128xf32>, vector<8x128xf32>, vector<8x128xf32>, vector<8x128xf32>, vector<8x128xf32>, vector<8x128xf32>, vector<8x128xf32>, vector<8x128xf32> -> vector<64x128xf32>
    %517 = arith.truncf %516 : vector<64x128xf32> to vector<64x128xbf16>
    %c0_136 = arith.constant 0 : index
    %c0_137 = arith.constant 0 : index
    %518 = vector.load %arg13[%c0_136, %c0_137] : memref<128x128xbf16, #tpu.memory_space<vmem>>, vector<128x128xbf16>
    %cst_138 = arith.constant dense<0.000000e+00> : vector<64x128xf32>
    %519 = tpu.matmul %517, %518, %cst_138 {dimension_numbers = #tpu.dot_dimension_numbers<[1], [0], [0], [1], [0, 0, 1, 1], [], []>} : vector<64x128xbf16>, vector<128x128xbf16>, vector<64x128xf32> -> vector<64x128xf32>
    %c0_139 = arith.constant 0 : index
    %c0_140 = arith.constant 0 : index
    %520 = vector.load %arg14[%c0_139, %c0_140] : memref<1x128xf32, #tpu.memory_space<vmem>>, vector<1x128xf32>
    %521 = vector.broadcast %520 : vector<1x128xf32> to vector<64x128xf32>
    %522 = arith.addf %519, %521 : vector<64x128xf32>
    %523 = vector.shape_cast %522 : vector<64x128xf32> to vector<8x8x128xf32>
    %cst_141 = arith.constant dense<0xFF800000> : vector<8x128xf32>
    %524 = vector.multi_reduction <maximumf>, %523, %cst_141 [0] : vector<8x8x128xf32> to vector<8x128xf32>
    %525 = vector.shape_cast %524 : vector<8x128xf32> to vector<1x8x128xf32>
    %526 = vector.broadcast %525 : vector<1x8x128xf32> to vector<8x8x128xf32>
    %527 = arith.subf %523, %526 : vector<8x8x128xf32>
    %528 = math.exp %527 : vector<8x8x128xf32>
    %cst_142 = arith.constant dense<0.000000e+00> : vector<8x128xf32>
    %529 = vector.multi_reduction <add>, %528, %cst_142 [0] : vector<8x8x128xf32> to vector<8x128xf32>
    %530 = vector.shape_cast %529 : vector<8x128xf32> to vector<1x8x128xf32>
    %531 = vector.broadcast %530 : vector<1x8x128xf32> to vector<8x8x128xf32>
    %532 = arith.divf %528, %531 : vector<8x8x128xf32>
    %c0_143 = arith.constant 0 : index
    %c0_144 = arith.constant 0 : index
    %c0_145 = arith.constant 0 : index
    %533 = vector.load %arg15[%c0_143, %c0_144, %c0_145] : memref<8x8x128xf32, #tpu.memory_space<vmem>>, vector<8x8x128xf32>
    tpu.vector_store %arg15[%c0_143, %c0_144, %c0_145], %532 {strides = array<i32>} : memref<8x8x128xf32, #tpu.memory_space<vmem>>, vector<8x8x128xf32>,
    return
  }
}

</mosaic_0001>

<bundles_post_ra>
// kernel: _forward_impl.1
= control target key start
LH: loop header
LB: loop body
LE: loop exit
PB: predicated region body
PF: predicated region fallthrough
CT: control target
= control target key end

     0   :  { %v6674_v0 = vmov 0   ;;  %v4609_v5 = vmov 0.0   ;;  %vm4610_vm0 = vmmov 0   ;;  %v286_v37 = vlaneseq  ;;  %s6650_s5 = inlined_call_operand.vmem [shape: s32[8,8,1], index: 5, kind: input, shape index: {}]   ;;  %s6651_s1 = inlined_call_operand.vmem [shape: bf16[128,128], index: 1, kind: input, shape index: {}]   ;;  %s6652_s6 = inlined_call_operand.vmem [shape: bf16[128,128], index: 6, kind: input, shape index: {}]   ;;  %s6653_s3 = inlined_call_operand.vmem [shape: bf16[128,128], index: 3, kind: input, shape index: {}]   ;;  %s6654_s0 = inlined_call_operand.vmem [shape: f32[8,128], index: 0, kind: input, shape index: {}]   ;;  %s6655_s7 = inlined_call_operand.vmem [shape: bf16[128,512], index: 7, kind: input, shape index: {}]   ;;  %s6656_s8 = inlined_call_operand.vmem [shape: bf16[128,512], index: 8, kind: input, shape index: {}]   ;;  %s6657_s2 = inlined_call_operand.vmem [shape: f32[1,128], index: 2, kind: input, shape index: {}]   ;;  %s6658_s9 = inlined_call_operand.vmem [shape: f32[1,512], index: 9, kind: input, shape index: {}]   ;;  %s6659_s4 = inlined_call_operand.vmem [shape: f32[1,128], index: 4, kind: input, shape index: {}]   ;;  %s6660_s10 = inlined_call_operand.vmem [shape: bf16[128,512], index: 10, kind: input, shape index: {}]   ;;  %s6661_s11 = inlined_call_operand.vmem [shape: bf16[128,512], index: 11, kind: input, shape index: {}]   ;;  %s6662_s17 = inlined_call_operand.vmem [shape: f32[2,8,128], index: 17, kind: output, shape index: {2}]   ;;  %s6663_s16 = inlined_call_operand.vmem [shape: f32[2,8,128], index: 16, kind: output, shape index: {1}]   ;;  %s6664_s12 = inlined_call_operand.vmem [shape: f32[1,512], index: 12, kind: input, shape index: {}]   ;;  %s6665_s13 = inlined_call_operand.vmem [shape: bf16[128,128], index: 13, kind: input, shape index: {}]   ;;  %s6666_s14 = inlined_call_operand.vmem [shape: f32[1,128], index: 14, kind: input, shape index: {}]   ;;  %s6667_s15 = inlined_call_operand.vmem [shape: f32[8,8,128], index: 15, kind: output, shape index: {0}]  }
   0x1   :  { %6680 = sst [smem:[#allocation28_spill]] %s6650_s5  ;;  %4045 = vset.pattern.permute.xlu1 %v6674_v0  ;;  %4044 = vset.pattern.permute.xlu0 %v6674_v0  ;;  %v4062_v15 = vld [vmem:[%s6653_s3] sm:$0xff]   ;;  %v4063_v16 = vld [vmem:[%s6653_s3 + $0x8] sm:$0xff]   ;;  %v4064_v18 = vld [vmem:[%s6653_s3 + $0x10] sm:$0xff]   ;;  %v4611_v52 = vmov 1.0|1.0  }
   0x2   :  { %6681 = sst [smem:[#allocation29_spill]] %s6651_s1  ;;  %s6682_s26 = sld [smem:[#allocation28_spill]]  ;;  %3952 = vmatprep.subr.bf16.mxu0 %v4609_v5  ;;  %3968 = vmatprep.mubr.msk.bf16.mxu0 %vm4610_vm0, %v4609_v5  ;;  %v4065_v20 = vld [vmem:[%s6653_s3 + $0x18] sm:$0xff]   ;;  %v54_v22 = vld [vmem:[%s6654_s0] sm:$0xff]  ;;  %v4055_v26 = vld [vmem:[%s6652_s6 + $0x8] sm:$0xff]   ;;  %v287_v43 = vand.u32 127, %v286_v37 }
   0x3   :  { %s6683_s20 = sld [smem:[#allocation29_spill]]  ;;  %3972 = vmatprep.subr.bf16.mxu1 %v4609_v5  ;;  %3988 = vmatprep.mubr.msk.bf16.mxu1 %vm4610_vm0, %v4609_v5  ;;  %v4054_v23 = vld [vmem:[%s6652_s6] sm:$0xff]   ;;  %v55_v24 = vpack.c.bf16 %v54_v22, %v54_v22  ;;  %v4067_v27 = vld [vmem:[%s6653_s3 + $0x28] sm:$0xff]   ;;  %v4056_v28 = vld [vmem:[%s6652_s6 + $0x10] sm:$0xff]  }
   0x4   :  { %3973 = vmatpush3.bf16.msra.mxu1 %v4062_v15  ;;  %v4066_v25 = vld [vmem:[%s6653_s3 + $0x20] sm:$0xff]   ;;  %v4068_v29 = vld [vmem:[%s6653_s3 + $0x30] sm:$0xff]   ;;  %v4057_v30 = vld [vmem:[%s6652_s6 + $0x18] sm:$0xff]  }
   0x5   :  { %3974 = vmatprep.subr.bf16.mxu1 %v4609_v5  ;;  %v4058_v31 = vld [vmem:[%s6652_s6 + $0x20] sm:$0xff]   ;;  %v4059_v32 = vld [vmem:[%s6652_s6 + $0x28] sm:$0xff]   ;;  %v4060_v33 = vld [vmem:[%s6652_s6 + $0x30] sm:$0xff]  }
   0x6   :  { %v4061_v34 = vld [vmem:[%s6652_s6 + $0x38] sm:$0xff]   ;;  %v4070_v36 = vld [vmem:[%s6655_s7] ss:$16 sps:$4 sm:$0xff]   ;;  %v4072_v38 = vld [vmem:[%s6655_s7 + $0x4] ss:$16 sps:$4 sm:$0xff]  }
   0x7   :  { %v4069_v35 = vld [vmem:[%s6653_s3 + $0x38] sm:$0xff]   ;;  %v4078_v40 = vld [vmem:[%s6655_s7 + $0x24] ss:$16 sps:$4 sm:$0xff]   ;;  %v4076_v44 = vld [vmem:[%s6655_s7 + $0x20] ss:$16 sps:$4 sm:$0xff]  }
   0x8   :  { %v280_v1 = vld [vmem:[%s6682_s26 + $0x10] sm:$0xff]  ;;  %v278_v2 = vld [vmem:[%s6682_s26] sm:$0xff]  ;;  %v281_v3 = vld [vmem:[%s6682_s26 + $0x18] sm:$0xff]  ;;  %3975 = vmatpush3.bf16.msra.mxu1 %v4063_v16 }
   0x9   :  { %295 = vperm.xlu1 %4045, %v280_v1   ;;  %289 = vperm.xlu0 %4044, %v278_v2   ;;  %v279_v4 = vld [vmem:[%s6682_s26 + $0x8] sm:$0xff]  ;;  %v4046_v6 = vld [vmem:[%s6683_s20] sm:$0xff]   ;;  %v285_v10 = vld [vmem:[%s6682_s26 + $0x38] sm:$0xff] }
   0xa   :  { %v283_v7 = vld [vmem:[%s6682_s26 + $0x28] sm:$0xff]  ;;  %v282_v8 = vld [vmem:[%s6682_s26 + $0x20] sm:$0xff]  ;;  %3953 = vmatpush3.bf16.msra.mxu0 %v4046_v6  ;;  %v284_v11 = vld [vmem:[%s6682_s26 + $0x30] sm:$0xff]  ;;  %3976 = vmatprep.subr.bf16.mxu1 %v4609_v5 }
   0xb   :  { %v4047_v9 = vld [vmem:[%s6683_s20 + $0x8] sm:$0xff]   ;;  %3954 = vmatprep.subr.bf16.mxu0 %v4609_v5  ;;  %v4048_v12 = vld [vmem:[%s6683_s20 + $0x10] sm:$0xff]   ;;  %v4049_v13 = vld [vmem:[%s6683_s20 + $0x18] sm:$0xff]  }
   0xc   :  { %v4050_v14 = vld [vmem:[%s6683_s20 + $0x20] sm:$0xff]   ;;  %v4051_v17 = vld [vmem:[%s6683_s20 + $0x28] sm:$0xff]   ;;  %v4052_v19 = vld [vmem:[%s6683_s20 + $0x30] sm:$0xff]   ;;  %3977 = vmatpush3.bf16.msra.mxu1 %v4064_v18 }
   0xd   :  { %298 = vperm.xlu1 %4045, %v281_v3   ;;  %292 = vperm.xlu0 %4044, %v279_v4   ;;  %v4053_v21 = vld [vmem:[%s6683_s20 + $0x38] sm:$0xff]   ;;  %v4084_v45 = vld [vmem:[%s6655_s7 + $0x44] ss:$16 sps:$4 sm:$0xff]   ;;  %v4082_v49 = vld [vmem:[%s6655_s7 + $0x40] ss:$16 sps:$4 sm:$0xff]  }
   0xe   :  { %3955 = vmatpush3.bf16.msra.mxu0 %v4047_v9  ;;  %3978 = vmatprep.subr.bf16.mxu1 %v4609_v5  ;;  %v4075_v39 = vld [vmem:[%s6655_s7 + $0xc] ss:$16 sps:$4 sm:$0xff]   ;;  %v4073_v48 = vld [vmem:[%s6655_s7 + $0x8] ss:$16 sps:$4 sm:$0xff]   ;;  %v4090_v51 = vld [vmem:[%s6655_s7 + $0x64] ss:$16 sps:$4 sm:$0xff]  }
   0xf   :  { %3956 = vmatprep.subr.bf16.mxu0 %v4609_v5  ;;  %v4081_v50 = vld [vmem:[%s6655_s7 + $0x2c] ss:$16 sps:$4 sm:$0xff]   ;;  %v4079_v55 = vld [vmem:[%s6655_s7 + $0x28] ss:$16 sps:$4 sm:$0xff]   ;;  %v4088_v56 = vld [vmem:[%s6655_s7 + $0x60] ss:$16 sps:$4 sm:$0xff]  }
  0x10   :  { %3979 = vmatpush3.bf16.msra.mxu1 %v4065_v20  ;;  %v4096_v57 = vld [vmem:[%s6655_s7 + $0x84] ss:$16 sps:$4 sm:$0xff]   ;;  %v4087_v58 = vld [vmem:[%s6655_s7 + $0x4c] ss:$16 sps:$4 sm:$0xff]   ;;  %v4085_v61 = vld [vmem:[%s6655_s7 + $0x48] ss:$16 sps:$4 sm:$0xff]  }
  0x11   :  { %304 = vperm.xlu1 %4045, %v283_v7   ;;  %301 = vperm.xlu0 %4044, %v282_v8   ;;  %v4094_v62 = vld [vmem:[%s6655_s7 + $0x80] ss:$16 sps:$4 sm:$0xff]   ;;  %v4102_v63 = vld [vmem:[%s6655_s7 + $0xa4] ss:$16 sps:$4 sm:$0xff]   ;;  %v4093_v1 = vld [vmem:[%s6655_s7 + $0x6c] ss:$16 sps:$4 sm:$0xff]  }
  0x12   :  { %3957 = vmatpush3.bf16.msra.mxu0 %v4048_v12  ;;  %3980 = vmatprep.subr.bf16.mxu1 %v4609_v5  ;;  %v4100_v2 = vld [vmem:[%s6655_s7 + $0xa0] ss:$16 sps:$4 sm:$0xff]   ;;  %v4091_v3 = vld [vmem:[%s6655_s7 + $0x68] ss:$16 sps:$4 sm:$0xff]   ;;  %v4108_v4 = vld [vmem:[%s6655_s7 + $0xc4] ss:$16 sps:$4 sm:$0xff]  }
  0x13   :  { %3958 = vmatprep.subr.bf16.mxu0 %v4609_v5  ;;  %v4106_v6 = vld [vmem:[%s6655_s7 + $0xc0] ss:$16 sps:$4 sm:$0xff]   ;;  %v4097_v7 = vld [vmem:[%s6655_s7 + $0x88] ss:$16 sps:$4 sm:$0xff]   ;;  %v4105_v8 = vld [vmem:[%s6655_s7 + $0xac] ss:$16 sps:$4 sm:$0xff]  }
  0x14   :  { %3981 = vmatpush3.bf16.msra.mxu1 %v4066_v25  ;;  %v4103_v9 = vld [vmem:[%s6655_s7 + $0xa8] ss:$16 sps:$4 sm:$0xff]   ;;  %v4114_v12 = vld [vmem:[%s6655_s7 + $0xe4] ss:$16 sps:$4 sm:$0xff]  }
  0x15   :  { %310 = vperm.xlu1 %4045, %v285_v10   ;;  %307 = vperm.xlu0 %4044, %v284_v11   ;;  %v4111_v10 = vld [vmem:[%s6655_s7 + $0xcc] ss:$16 sps:$4 sm:$0xff]   ;;  %v4109_v11 = vld [vmem:[%s6655_s7 + $0xc8] ss:$16 sps:$4 sm:$0xff]   ;;  %v4923_v16 = vld [vmem:[%s6656_s8 + $0x4] ss:$16 sps:$4 sm:$0xff]  }
  0x16   :  { %3959 = vmatpush3.bf16.msra.mxu0 %v4049_v13  ;;  %3982 = vmatprep.subr.bf16.mxu1 %v4609_v5  ;;  %v4117_v13 = vld [vmem:[%s6655_s7 + $0xec] ss:$16 sps:$4 sm:$0xff]   ;;  %v4115_v15 = vld [vmem:[%s6655_s7 + $0xe8] ss:$16 sps:$4 sm:$0xff]  }
  0x17   :  { %3960 = vmatprep.subr.bf16.mxu0 %v4609_v5 }
  0x18   :  { %3983 = vmatpush3.bf16.msra.mxu1 %v4067_v27 }
  0x19   :  { %3984 = vmatprep.subr.bf16.mxu1 %v4609_v5 }
  0x1a   :  { %3961 = vmatpush3.bf16.msra.mxu0 %v4050_v14  ;;  %v4112_v14 = vld [vmem:[%s6655_s7 + $0xe0] ss:$16 sps:$4 sm:$0xff]  }
  0x1b   :  { %3962 = vmatprep.subr.bf16.mxu0 %v4609_v5 }
  0x1c   :  { %3985 = vmatpush3.bf16.msra.mxu1 %v4068_v29 }
  0x1d   :  { %3986 = vmatprep.subr.bf16.mxu1 %v4609_v5 }
  0x1e   :  { %3963 = vmatpush3.bf16.msra.mxu0 %v4051_v17  ;;  %v4929_v17 = vld [vmem:[%s6656_s8 + $0xc] ss:$16 sps:$4 sm:$0xff]  }
  0x1f   :  { %3964 = vmatprep.subr.bf16.mxu0 %v4609_v5 }
  0x20   :  { %3987 = vmatpush3.bf16.msra.mxu1 %v4069_v35  ;;  %v4954_v35 = vld [vmem:[%s6656_s8 + $0x2c] ss:$16 sps:$4 sm:$0xff]  }
  0x21   :  { %711 = vmatprep.subr.bf16.mxu1 %v4072_v38  ;;  %v4966_v38 = vld [vmem:[%s6656_s8 + $0x28] ss:$16 sps:$4 sm:$0xff]  }
  0x22   :  { %3965 = vmatpush3.bf16.msra.mxu0 %v4052_v19 }
  0x23   :  { %3966 = vmatprep.subr.bf16.mxu0 %v4609_v5  ;;  %3989 = vmatmul.mubr.bf16.vlgmr.msra.gmra.mrb[0].mxu1 %v55_v24  ;;  %v4099_v5 = vld [vmem:[%s6655_s7 + $0x8c] ss:$16 sps:$4 sm:$0xff]  }
  0x24   :  { %712 = vmatpush1.bf16.msra.mxu1 %v4070_v36  ;;  %743 = vmatprep.mubr.bf16.mxu1 %v6674_v0  ;;  %v4961_v36 = vld [vmem:[%s6656_s8 + $0x20] ss:$16 sps:$4 sm:$0xff]  }
  0x25   :  { %713 = vmatprep.subr.bf16.mxu1 %v4078_v40  ;;  %v4973_v40 = vld [vmem:[%s6656_s8 + $0x44] ss:$16 sps:$4 sm:$0xff]  }
  0x26   :  { %3967 = vmatpush3.bf16.msra.mxu0 %v4053_v21 }
  0x27   :  { %3992 = vmatprep.subr.bf16.mxu0 %v4054_v23 }
  0x28   :  { %714 = vmatpush1.bf16.msra.mxu1 %v4076_v44 }
  0x29   :  { %3969 = vmatmul.mubr.bf16.vlgmr.msra.gmra.mrb[0].mxu0 %v55_v24  ;;  %715 = vmatprep.subr.bf16.mxu1 %v4084_v45 }
  0x2a   :  { %3993 = vmatpush3.bf16.msra.mxu0 %v4054_v23 }
  0x2b   :  { %3994 = vmatprep.subr.bf16.mxu0 %v4055_v26 }
  0x2c   :  { %716 = vmatpush1.bf16.msra.mxu1 %v4082_v49  ;;  %v4999_v49 = vld [vmem:[%s6656_s8 + $0x64] ss:$16 sps:$4 sm:$0xff]  }
  0x2d   :  { %717 = vmatprep.subr.bf16.mxu1 %v4090_v51  ;;  %v5011_v51 = vld [vmem:[%s6656_s8 + $0x60] ss:$16 sps:$4 sm:$0xff]  }
  0x2e   :  { %3995 = vmatpush3.bf16.msra.mxu0 %v4055_v26 }
  0x2f   :  { %3996 = vmatprep.subr.bf16.mxu0 %v4056_v28 }
  0x30   :  { %718 = vmatpush1.bf16.msra.mxu1 %v4088_v56  ;;  %v5042_v56 = vld [vmem:[%s6656_s8 + $0x88] ss:$16 sps:$4 sm:$0xff]  }
  0x31   :  { %719 = vmatprep.subr.bf16.mxu1 %v4096_v57  ;;  %v5049_v57 = vld [vmem:[%s6656_s8 + $0xa4] ss:$16 sps:$4 sm:$0xff]  }
  0x32   :  { %3997 = vmatpush3.bf16.msra.mxu0 %v4056_v28 }
  0x33   :  { %3998 = vmatprep.subr.bf16.mxu0 %v4057_v30 }
  0x34   :  { %720 = vmatpush1.bf16.msra.mxu1 %v4094_v62  ;;  %v5078_v62 = vld [vmem:[%s6656_s8 + $0xcc] ss:$16 sps:$4 sm:$0xff]  }
  0x35   :  { %721 = vmatprep.subr.bf16.mxu1 %v4102_v63  ;;  %v5087_v63 = vld [vmem:[%s6656_s8 + $0xc0] ss:$16 sps:$4 sm:$0xff]  }
  0x36   :  { %3999 = vmatpush3.bf16.msra.mxu0 %v4057_v30 }
  0x37   :  { %4000 = vmatprep.subr.bf16.mxu0 %v4058_v31 }
  0x38   :  { %722 = vmatpush1.bf16.msra.mxu1 %v4100_v2  ;;  %v5099_v2 = vld [vmem:[%s6656_s8 + $0xe4] ss:$16 sps:$4 sm:$0xff]  }
  0x39   :  { %723 = vmatprep.subr.bf16.mxu1 %v4108_v4  ;;  %v3689_v4 = vld [vmem:[%s6657_s2] ss:$0 sm:$0xff] }
  0x3a   :  { %4001 = vmatpush3.bf16.msra.mxu0 %v4058_v31  ;;  %v4939_v31 = vld [vmem:[%s6656_s8] ss:$16 sps:$4 sm:$0xff]  }
  0x3b   :  { %4002 = vmatprep.subr.bf16.mxu0 %v4059_v32 }
  0x3c   :  { %724 = vmatpush1.bf16.msra.mxu1 %v4106_v6  ;;  %v5119_v6 = vld [vmem:[%s6656_s8 + $0xe8] ss:$16 sps:$4 sm:$0xff]  }
  0x3d   :  { %725 = vmatprep.subr.bf16.mxu1 %v4114_v12  ;;  %v529_v12 = vld [vmem:[%s6658_s9] sm:$0xf] }
  0x3e   :  { %4003 = vmatpush3.bf16.msra.mxu0 %v4059_v32  ;;  %v4944_v32 = vld [vmem:[%s6656_s8 + $0x8] ss:$16 sps:$4 sm:$0xff]  }
  0x3f   :  { %4004 = vmatprep.subr.bf16.mxu0 %v4060_v33 }
  0x40   :  { %726 = vmatpush1.bf16.msra.mxu1 %v4112_v14 }
  0x41   :  { %1054 = vmatprep.subr.bf16.mxu1 %v4923_v16 }
  0x42   :  { %4005 = vmatpush3.bf16.msra.mxu0 %v4060_v33 }
  0x43   :  { %4006 = vmatprep.subr.bf16.mxu0 %v4061_v34 }
  0x46   :  { %4007 = vmatpush3.bf16.msra.mxu0 %v4061_v34  ;;  %v4949_v34 = vld [vmem:[%s6656_s8 + $0x24] ss:$16 sps:$4 sm:$0xff]  }
  0x47   :  { %784 = vmatprep.subr.bf16.mxu0 %v4075_v39 }
  0x88   :  { %v296_v41 = vpop.permute.xlu1 %295  ;;  %v290_v42 = vpop.permute.xlu0 %289 }
  0x89   :  { %vm314_vm1 = vcmp.eq.s32.totalorder %v296_v41, %v287_v43  ;;  %vm312_vm4 = vcmp.eq.s32.totalorder %v290_v42, %v287_v43  ;;  %v4978_v41 = vld [vmem:[%s6656_s8 + $0x4c] ss:$16 sps:$4 sm:$0xff]  }
  0x8c   :  { %v299_v46 = vpop.permute.xlu1 %298  ;;  %v293_v47 = vpop.permute.xlu0 %292 }
  0x8d   :  { %vm315_vm2 = vcmp.eq.s32.totalorder %v299_v46, %v287_v43  ;;  %vm313_vm3 = vcmp.eq.s32.totalorder %v293_v47, %v287_v43  ;;  %v4987_v46 = vld [vmem:[%s6656_s8 + $0x40] ss:$16 sps:$4 sm:$0xff]   ;;  %v4992_v47 = vld [vmem:[%s6656_s8 + $0x48] ss:$16 sps:$4 sm:$0xff]  }
  0x8e   :  { %vm3717_vm5 = vmpackc.low %vm315_vm2, %vm314_vm1 }
  0x8f   :  { %vm3715_vm6 = vmpackc.low %vm313_vm3, %vm312_vm4 }
  0x90   :  { %4008 = vmatprep.mubr.msk.bf16.mxu0 %vm3715_vm6, %v4611_v52  ;;  %v305_v53 = vpop.permute.xlu1 %304  ;;  %v302_v54 = vpop.permute.xlu0 %301 }
  0x91   :  { %vm317_vm7 = vcmp.eq.s32.totalorder %v305_v53, %v287_v43  ;;  %vm316_vm8 = vcmp.eq.s32.totalorder %v302_v54, %v287_v43  ;;  %4009 = vmatmul.mubr.msk.bf16.vlgmr.msra.gmra.mrb[4].mxu0 %vm3717_vm5, %v4611_v52  ;;  %v5023_v53 = vld [vmem:[%s6656_s8 + $0x84] ss:$16 sps:$4 sm:$0xff]   ;;  %v5028_v54 = vld [vmem:[%s6656_s8 + $0x8c] ss:$16 sps:$4 sm:$0xff]  }
  0x92   :  { %vm3719_vm9 = vmpackc.low %vm317_vm7, %vm316_vm8  ;;  %785 = vmatpush1.bf16.msra.mxu0 %v4073_v48 }
  0x93   :  { %4012 = vmatprep.mubr.msk.bf16.mxu0 %vm3719_vm9, %v4611_v52  ;;  %786 = vmatprep.subr.bf16.mxu0 %v4081_v50  ;;  %v5004_v50 = vld [vmem:[%s6656_s8 + $0x6c] ss:$16 sps:$4 sm:$0xff]  }
  0x94   :  { %v311_v59 = vpop.permute.xlu1 %310  ;;  %v308_v60 = vpop.permute.xlu0 %307 }
  0x95   :  { %vm319_vm10 = vcmp.eq.s32.totalorder %v311_v59, %v287_v43  ;;  %vm318_vm11 = vcmp.eq.s32.totalorder %v308_v60, %v287_v43  ;;  %v5061_v59 = vld [vmem:[%s6656_s8 + $0xa0] ss:$16 sps:$4 sm:$0xff]   ;;  %v5066_v60 = vld [vmem:[%s6656_s8 + $0xa8] ss:$16 sps:$4 sm:$0xff]  }
  0x96   :  { %vm3721_vm12 = vmpackc.low %vm319_vm10, %vm318_vm11  ;;  %787 = vmatpush1.bf16.msra.mxu0 %v4079_v55  ;;  %v5037_v55 = vld [vmem:[%s6656_s8 + $0x80] ss:$16 sps:$4 sm:$0xff]  }
  0x97   :  { %788 = vmatprep.subr.bf16.mxu0 %v4087_v58  ;;  %v5054_v58 = vld [vmem:[%s6656_s8 + $0xac] ss:$16 sps:$4 sm:$0xff]  }
  0x99   :  { %4013 = vmatmul.mubr.msk.bf16.gmra.mrb[8].mxu0 %vm3721_vm12, %v4611_v52  ;;  %v5016_v52 = vld [vmem:[%s6656_s8 + $0x68] ss:$16 sps:$4 sm:$0xff]  }
  0x9a   :  { %789 = vmatpush1.bf16.msra.mxu0 %v4085_v61  ;;  %816 = vmatprep.mubr.bf16.mxu0 %v6674_v0  ;;  %v5073_v61 = vld [vmem:[%s6656_s8 + $0xc4] ss:$16 sps:$4 sm:$0xff]  }
  0x9b   :  { %790 = vmatprep.subr.bf16.mxu0 %v4093_v1  ;;  %v5092_v1 = vld [vmem:[%s6656_s8 + $0xc8] ss:$16 sps:$4 sm:$0xff]  }
  0x9e   :  { %791 = vmatpush1.bf16.msra.mxu0 %v4091_v3  ;;  %v5104_v3 = vld [vmem:[%s6656_s8 + $0xec] ss:$16 sps:$4 sm:$0xff]  }
  0x9f   :  { %792 = vmatprep.subr.bf16.mxu0 %v4099_v5  ;;  %v5114_v5 = vld [vmem:[%s6656_s8 + $0xe0] ss:$16 sps:$4 sm:$0xff]  }
  0xa2   :  { %793 = vmatpush1.bf16.msra.mxu0 %v4097_v7 }
  0xa3   :  { %794 = vmatprep.subr.bf16.mxu0 %v4105_v8 }
  0xa6   :  { %795 = vmatpush1.bf16.msra.mxu0 %v4103_v9  ;;  %v5169_v9 = vshrl.u32 %v286_v37, 7 }
  0xa7   :  { %796 = vmatprep.subr.bf16.mxu0 %v4111_v10 }
  0xa8   :  { %6685 = vst [vmem:[#allocation4_spill] sm:$0xff] %v5169_v9  ;;  %v6673_v10 = vsub.s32 0, %v5169_v9  ;;  %v6670_v14 = vsub.s32 3, %v5169_v9 }
  0xaa   :  { %797 = vmatpush1.bf16.msra.mxu0 %v4109_v11  ;;  %v6672_v11 = vsub.s32 2, %v5169_v9  ;;  %v534_v37 = vrot.slane %v529_v12, %v6673_v10 }
  0xab   :  { %798 = vmatprep.subr.bf16.mxu0 %v4117_v13  ;;  %v6671_v13 = vsub.s32 1, %v5169_v9 }
  0xae   :  { %799 = vmatpush1.bf16.msra.mxu0 %v4115_v15 }
  0xaf   :  { %1095 = vmatprep.subr.bf16.mxu0 %v4929_v17 }
  0xf6   :  { %v4934_v22 = vpop.f32.mrb[0].mxu1 }
  0xf7   :  { %v3990_v23 = vpop.f32.mrb[1].mxu1 }
  0xf8   :  { %v275_v24 = vpop.f32.mrb[2].mxu1  ;;  %v538_v23 = vrot.slane %v529_v12, %v6671_v13 }
  0xf9   :  { %v3991_v25 = vpop.f32.mrb[3].mxu1  ;;  %v546_v24 = vrot.slane %v529_v12, %v6670_v14 }
  0xfc   :  { %v4932_v18 = vpop.f32.mrb[0].mxu0 }
  0xfd   :  { %v3970_v19 = vpop.f32.mrb[1].mxu0  ;;  %v162_v7 = vadd.f32 %v3689_v4, %v4932_v18 }
  0xfe   :  { %v164_v20 = vpop.f32.mrb[2].mxu0  ;;  %v542_v19 = vrot.slane %v529_v12, %v6672_v11 }
  0xff   :  { %v3971_v21 = vpop.f32.mrb[3].mxu0  ;;  %v5128_v8 = vpack.c.bf16 %v162_v7, %v162_v7 }
 0x101   :  { %6684 = vst [vmem:[#allocation3_spill] sm:$0xff] %v5128_v8 }
 0x164   :  { %v4010_v26 = vpop.f32.mrb[4].mxu0 }
 0x165   :  { %v430_v27 = vpop.f32.mrb[5].mxu0 }
 0x166   :  { %v4011_v28 = vpop.f32.mrb[6].mxu0 }
 0x167   :  { %v462_v29 = vpack.c.bf16 %v4011_v28, %v4010_v26  ;;  %v433_v30 = vpop.f32.mrb[7].mxu0 }
 0x168   :  { %v461_v33 = vpack.c.bf16 %v433_v30, %v430_v27 }
 0x16a   :  { %744 = vmatmul.mubr.bf16.vlgmr.msra.gmra.mrb[4].mxu1 %v461_v33  ;;  %817 = vmatmul.mubr.bf16.vlgmr.msra.gmra.mrb[12].mxu0 %v461_v33 }
 0x16b   :  { %1055 = vmatpush1.bf16.msra.mxu1 %v4939_v31  ;;  %1096 = vmatpush1.bf16.msra.mxu0 %v4944_v32 }
 0x16c   :  { %v4014_v39 = vpop.f32.mrb[8].mxu0  ;;  %1056 = vmatprep.subr.bf16.mxu1 %v4949_v34  ;;  %1097 = vmatprep.subr.bf16.mxu0 %v4954_v35 }
 0x16d   :  { %v446_v42 = vpop.f32.mrb[9].mxu0  ;;  %753 = vmatprep.mubr.bf16.mxu1 %v6674_v0  ;;  %826 = vmatprep.mubr.bf16.mxu0 %v6674_v0 }
 0x16e   :  { %v4015_v43 = vpop.f32.mrb[10].mxu0 }
 0x16f   :  { %v464_v44 = vpack.c.bf16 %v4015_v43, %v4014_v39  ;;  %1057 = vmatpush1.bf16.msra.mxu1 %v4961_v36  ;;  %v449_v45 = vpop.f32.mrb[11].mxu0  ;;  %1098 = vmatpush1.bf16.msra.mxu0 %v4966_v38 }
 0x170   :  { %v463_v48 = vpack.c.bf16 %v449_v45, %v446_v42  ;;  %1058 = vmatprep.subr.bf16.mxu1 %v4973_v40  ;;  %1099 = vmatprep.subr.bf16.mxu0 %v4978_v41 }
 0x172   :  { %754 = vmatmul.mubr.bf16.gmra.mrb[8].mxu1 %v462_v29  ;;  %827 = vmatmul.mubr.bf16.gmra.mrb[16].mxu0 %v462_v29 }
 0x173   :  { %1059 = vmatpush1.bf16.msra.mxu1 %v4987_v46  ;;  %1100 = vmatpush1.bf16.msra.mxu0 %v4992_v47 }
 0x174   :  { %1060 = vmatprep.subr.bf16.mxu1 %v4999_v49  ;;  %1101 = vmatprep.subr.bf16.mxu0 %v5004_v50 }
 0x175   :  { %763 = vmatprep.mubr.bf16.mxu1 %v6674_v0  ;;  %836 = vmatprep.mubr.bf16.mxu0 %v6674_v0 }
 0x177   :  { %1061 = vmatpush1.bf16.msra.mxu1 %v5011_v51  ;;  %1102 = vmatpush1.bf16.msra.mxu0 %v5016_v52 }
 0x178   :  { %1062 = vmatprep.subr.bf16.mxu1 %v5023_v53  ;;  %1103 = vmatprep.subr.bf16.mxu0 %v5028_v54 }
 0x17a   :  { %764 = vmatmul.mubr.bf16.gmra.mrb[12].mxu1 %v463_v48  ;;  %837 = vmatmul.mubr.bf16.gmra.mrb[20].mxu0 %v463_v48 }
 0x17b   :  { %1063 = vmatpush1.bf16.msra.mxu1 %v5037_v55  ;;  %1104 = vmatpush1.bf16.msra.mxu0 %v5042_v56 }
 0x17c   :  { %1064 = vmatprep.subr.bf16.mxu1 %v5049_v57  ;;  %1105 = vmatprep.subr.bf16.mxu0 %v5054_v58 }
 0x17d   :  { %773 = vmatprep.mubr.bf16.mxu1 %v6674_v0  ;;  %846 = vmatprep.mubr.bf16.mxu0 %v6674_v0 }
 0x17f   :  { %1065 = vmatpush1.bf16.msra.mxu1 %v5061_v59  ;;  %1106 = vmatpush1.bf16.msra.mxu0 %v5066_v60 }
 0x180   :  { %1066 = vmatprep.subr.bf16.mxu1 %v5073_v61  ;;  %1107 = vmatprep.subr.bf16.mxu0 %v5078_v62 }
 0x182   :  { %774 = vmatmul.mubr.bf16.gmra.mrb[16].mxu1 %v464_v44  ;;  %847 = vmatmul.mubr.bf16.gmra.mrb[24].mxu0 %v464_v44 }
 0x183   :  { %1067 = vmatpush1.bf16.msra.mxu1 %v5087_v63  ;;  %1108 = vmatpush1.bf16.msra.mxu0 %v5092_v1 }
 0x184   :  { %1068 = vmatprep.subr.bf16.mxu1 %v5099_v2  ;;  %1109 = vmatprep.subr.bf16.mxu0 %v5104_v3 }
 0x185   :  { %1086 = vmatprep.mubr.bf16.mxu1 %v6674_v0  ;;  %1127 = vmatprep.mubr.bf16.mxu0 %v6674_v0 }
 0x187   :  { %1069 = vmatpush1.bf16.msra.mxu1 %v5114_v5  ;;  %1110 = vmatpush1.bf16.msra.mxu0 %v5119_v6 }
 0x188   :  { %1169 = vmatprep.subr.bf16.mxu1 %v4923_v16  ;;  %1210 = vmatprep.subr.bf16.mxu0 %v4929_v17 }
 0x18a   :  { %1087 = vmatmul.mubr.bf16.vlgmr.msra.gmra.mrb[20].mxu1 %v5128_v8  ;;  %1128 = vmatmul.mubr.bf16.vlgmr.msra.gmra.mrb[28].mxu0 %v5128_v8 }
 0x18b   :  { %1170 = vmatpush1.bf16.msra.mxu1 %v4939_v31  ;;  %1211 = vmatpush1.bf16.msra.mxu0 %v4944_v32 }
 0x18c   :  { %1171 = vmatprep.subr.bf16.mxu1 %v4949_v34  ;;  %1212 = vmatprep.subr.bf16.mxu0 %v4954_v35 }
 0x18d   :  { %1201 = vmatprep.mubr.bf16.mxu1 %v6674_v0  ;;  %1242 = vmatprep.mubr.bf16.mxu0 %v6674_v0 }
 0x18f   :  { %1172 = vmatpush1.bf16.msra.mxu1 %v4961_v36  ;;  %1213 = vmatpush1.bf16.msra.mxu0 %v4966_v38 }
 0x190   :  { %1173 = vmatprep.subr.bf16.mxu1 %v4973_v40  ;;  %1214 = vmatprep.subr.bf16.mxu0 %v4978_v41 }
 0x193   :  { %1174 = vmatpush1.bf16.msra.mxu1 %v4987_v46  ;;  %1215 = vmatpush1.bf16.msra.mxu0 %v4992_v47 }
 0x194   :  { %1175 = vmatprep.subr.bf16.mxu1 %v4999_v49  ;;  %1216 = vmatprep.subr.bf16.mxu0 %v5004_v50 }
 0x197   :  { %1176 = vmatpush1.bf16.msra.mxu1 %v5011_v51  ;;  %1217 = vmatpush1.bf16.msra.mxu0 %v5016_v52 }
 0x198   :  { %1177 = vmatprep.subr.bf16.mxu1 %v5023_v53  ;;  %1218 = vmatprep.subr.bf16.mxu0 %v5028_v54 }
 0x19b   :  { %1178 = vmatpush1.bf16.msra.mxu1 %v5037_v55  ;;  %1219 = vmatpush1.bf16.msra.mxu0 %v5042_v56 }
 0x19c   :  { %1179 = vmatprep.subr.bf16.mxu1 %v5049_v57  ;;  %1220 = vmatprep.subr.bf16.mxu0 %v5054_v58 }
 0x19f   :  { %1180 = vmatpush1.bf16.msra.mxu1 %v5061_v59  ;;  %1221 = vmatpush1.bf16.msra.mxu0 %v5066_v60 }
 0x1a0   :  { %1181 = vmatprep.subr.bf16.mxu1 %v5073_v61  ;;  %1222 = vmatprep.subr.bf16.mxu0 %v5078_v62 }
 0x1a3   :  { %1182 = vmatpush1.bf16.msra.mxu1 %v5087_v63  ;;  %1223 = vmatpush1.bf16.msra.mxu0 %v5092_v1 }
 0x1a4   :  { %1183 = vmatprep.subr.bf16.mxu1 %v5099_v2  ;;  %1224 = vmatprep.subr.bf16.mxu0 %v5104_v3 }
 0x1a7   :  { %1184 = vmatpush1.bf16.msra.mxu1 %v5114_v5  ;;  %1225 = vmatpush1.bf16.msra.mxu0 %v5119_v6 }
 0x1a8   :  { %1284 = vmatprep.subr.bf16.mxu1 %v4923_v16  ;;  %1325 = vmatprep.subr.bf16.mxu0 %v4929_v17 }
 0x23d   :  { %v5178_v15 = vpop.f32.mrb[4].mxu1  ;;  %v5180_v18 = vpop.f32.mrb[12].mxu0 }
 0x23e   :  { %v747_v20 = vpop.f32.mrb[5].mxu1  ;;  %v820_v21 = vpop.f32.mrb[13].mxu0 }
 0x23f   :  { %v749_v25 = vpop.f32.mrb[6].mxu1  ;;  %v822_v26 = vpop.f32.mrb[14].mxu0 }
 0x240   :  { %v5190_v27 = vadd.f32 %v749_v25, %v534_v37  ;;  %v5192_v28 = vadd.f32 %v822_v26, %v542_v19  ;;  %v751_v29 = vpop.f32.mrb[7].mxu1  ;;  %v824_v30 = vpop.f32.mrb[15].mxu0 }
 0x241   :  { %v5194_v33 = vadd.f32 %v751_v29, %v538_v23  ;;  %v5196_v39 = vadd.f32 %v824_v30, %v546_v24 }
 0x245   :  { %v755_v42 = vpop.f32.mrb[8].mxu1  ;;  %v828_v43 = vpop.f32.mrb[16].mxu0 }
 0x246   :  { %v5198_v44 = vadd.f32 %v755_v42, %v534_v37  ;;  %v5200_v45 = vadd.f32 %v828_v43, %v542_v19  ;;  %v757_v48 = vpop.f32.mrb[9].mxu1  ;;  %v830_v4 = vpop.f32.mrb[17].mxu0 }
 0x247   :  { %v5202_v7 = vadd.f32 %v757_v48, %v538_v23  ;;  %v5204_v12 = vadd.f32 %v830_v4, %v546_v24  ;;  %v759_v25 = vpop.f32.mrb[10].mxu1  ;;  %v832_v26 = vpop.f32.mrb[18].mxu0 }
 0x248   :  { %6686 = vst [vmem:[#allocation5_spill] sm:$0xff] %v5200_v45  ;;  %v5206_v14 = vadd.f32 %v759_v25, %v534_v37  ;;  %v5208_v29 = vadd.f32 %v832_v26, %v542_v19  ;;  %v761_v30 = vpop.f32.mrb[11].mxu1  ;;  %v834_v13 = vpop.f32.mrb[19].mxu0 }
 0x249   :  { %6687 = vst [vmem:[#allocation6_spill] sm:$0xff] %v5202_v7  ;;  %6688 = vst [vmem:[#allocation7_spill] sm:$0xff] %v5204_v12  ;;  %v5210_v11 = vadd.f32 %v761_v30, %v538_v23  ;;  %v5212_v42 = vadd.f32 %v834_v13, %v546_v24 }
 0x24a   :  { %6689 = vst [vmem:[#allocation8_spill] sm:$0xff] %v5206_v14  ;;  %6690 = vst [vmem:[#allocation9_spill] sm:$0xff] %v5208_v29 }
 0x24b   :  { %6691 = vst [vmem:[#allocation10_spill] sm:$0xff] %v5210_v11  ;;  %6692 = vst [vmem:[#allocation11_spill] sm:$0xff] %v5212_v42 }
 0x24d   :  { %v765_v43 = vpop.f32.mrb[12].mxu1  ;;  %v838_v10 = vpop.f32.mrb[20].mxu0 }
 0x24e   :  { %v5214_v0 = vadd.f32 %v765_v43, %v534_v37  ;;  %v5216_v48 = vadd.f32 %v838_v10, %v542_v19  ;;  %v767_v4 = vpop.f32.mrb[13].mxu1  ;;  %v840_v9 = vpop.f32.mrb[21].mxu0 }
 0x24f   :  { %v5218_v8 = vadd.f32 %v767_v4, %v538_v23  ;;  %v5220_v25 = vadd.f32 %v840_v9, %v546_v24  ;;  %v769_v26 = vpop.f32.mrb[14].mxu1  ;;  %v842_v29 = vpop.f32.mrb[22].mxu0 }
 0x250   :  { %6693 = vst [vmem:[#allocation12_spill] sm:$0xff] %v5214_v0  ;;  %6694 = vst [vmem:[#allocation13_spill] sm:$0xff] %v5216_v48  ;;  %v5222_v14 = vadd.f32 %v769_v26, %v534_v37  ;;  %v5224_v30 = vadd.f32 %v842_v29, %v542_v19  ;;  %v771_v13 = vpop.f32.mrb[15].mxu1  ;;  %v844_v42 = vpop.f32.mrb[23].mxu0 }
 0x251   :  { %6695 = vst [vmem:[#allocation14_spill] sm:$0xff] %v5218_v8  ;;  %6696 = vst [vmem:[#allocation15_spill] sm:$0xff] %v5220_v25  ;;  %v5226_v11 = vadd.f32 %v771_v13, %v538_v23  ;;  %v5228_v43 = vadd.f32 %v844_v42, %v546_v24 }
 0x252   :  { %6697 = vst [vmem:[#allocation16_spill] sm:$0xff] %v5222_v14  ;;  %6698 = vst [vmem:[#allocation17_spill] sm:$0xff] %v5224_v30 }
 0x253   :  { %6699 = vst [vmem:[#allocation18_spill] sm:$0xff] %v5226_v11  ;;  %6700 = vst [vmem:[#allocation19_spill] sm:$0xff] %v5228_v43 }
 0x255   :  { %v775_v10 = vpop.f32.mrb[16].mxu1  ;;  %v848_v48 = vpop.f32.mrb[24].mxu0 }
 0x256   :  { %v5230_v0 = vadd.f32 %v775_v10, %v534_v37  ;;  %v5232_v4 = vadd.f32 %v848_v48, %v542_v19  ;;  %v777_v9 = vpop.f32.mrb[17].mxu1  ;;  %v850_v25 = vpop.f32.mrb[25].mxu0  ;;  %v746_v48 = vadd.f32 %v5178_v15, %v534_v37 }
 0x257   :  { %v5234_v8 = vadd.f32 %v777_v9, %v538_v23  ;;  %v5236_v26 = vadd.f32 %v850_v25, %v546_v24  ;;  %v779_v29 = vpop.f32.mrb[18].mxu1  ;;  %v852_v30 = vpop.f32.mrb[26].mxu0  ;;  %v748_v9 = vadd.f32 %v747_v20, %v538_v23 }
 0x258   :  { %6701 = vst [vmem:[#allocation20_spill] sm:$0xff] %v5230_v0  ;;  %6702 = vst [vmem:[#allocation21_spill] sm:$0xff] %v5232_v4  ;;  %v5238_v14 = vadd.f32 %v779_v29, %v534_v37  ;;  %v5240_v13 = vadd.f32 %v852_v30, %v542_v19  ;;  %v781_v42 = vpop.f32.mrb[19].mxu1  ;;  %v854_v43 = vpop.f32.mrb[27].mxu0  ;;  %v819_v4 = vadd.f32 %v5180_v18, %v542_v19 }
 0x259   :  { %6703 = vst [vmem:[#allocation22_spill] sm:$0xff] %v5234_v8  ;;  %6704 = vst [vmem:[#allocation23_spill] sm:$0xff] %v5236_v26  ;;  %v5242_v11 = vadd.f32 %v781_v42, %v538_v23  ;;  %v5244_v10 = vadd.f32 %v854_v43, %v546_v24  ;;  %v821_v8 = vadd.f32 %v820_v21, %v546_v24 }
 0x25a   :  { %6705 = vst [vmem:[#allocation24_spill] sm:$0xff] %v5238_v14  ;;  %6706 = vst [vmem:[#allocation25_spill] sm:$0xff] %v5240_v13 }
 0x25b   :  { %6707 = vst [vmem:[#allocation26_spill] sm:$0xff] %v5242_v11  ;;  %6708 = vst [vmem:[#allocation27_spill] sm:$0xff] %v5244_v10 }
 0x25d   :  { %v1088_v25 = vpop.f32.mrb[20].mxu1  ;;  %v1129_v26 = vpop.f32.mrb[28].mxu0 }
 0x25e   :  { %v1136_v0 = vadd.f32 %v1088_v25, %v746_v48  ;;  %v1138_v12 = vadd.f32 %v1129_v26, %v819_v4  ;;  %v1090_v29 = vpop.f32.mrb[21].mxu1  ;;  %v1131_v14 = vpop.f32.mrb[29].mxu0 }
 0x25f   :  { %v1137_v30 = vadd.f32 %v1090_v29, %v748_v9  ;;  %v1139_v13 = vadd.f32 %v1131_v14, %v821_v8  ;;  %v1092_v7 = vpop.f32.mrb[22].mxu1  ;;  %v1133_v45 = vpop.f32.mrb[30].mxu0  ;;  %v3698_v8 = vld [vmem:[%s6659_s4] ss:$0 sm:$0xff] }
 0x260   :  { %v3787_v42 = vmul.f32 -1.442695, %v1136_v0  ;;  %v1093_v11 = vpop.f32.mrb[23].mxu1  ;;  %v1134_v43 = vpop.f32.mrb[31].mxu0  ;;  %v5252_v21 = vadd.f32 %v3698_v8, %v4934_v22  ;;  %v6709_v22 = vmov 0  }
 0x261   :  { %v3788_v10 = vmul.f32 -1.442695, %v1137_v30  ;;  %v3789_v15 = vmul.f32 -1.442695, %v1139_v13 }
 0x262   :  { %4270 = vpow2.f32 %v3787_v42 }
 0x263   :  { %4272 = vpow2.f32 %v3788_v10 }
 0x264   :  { %4274 = vpow2.f32 %v3789_v15 }
 0x265   :  { %4276 = vtanh.f32 %v1138_v12 }
 0x26c   :  { %v4271_v18 = vpop.eup %4270 }
 0x26d   :  { %v4273_v37 = vpop.eup %4272  ;;  %v1143_v19 = vadd.f32 1.0, %v4271_v18 }
 0x26e   :  { %v1149_v20 = vadd.f32 1.0, %v4273_v37  ;;  %v4275_v14 = vpop.eup %4274 }
 0x26f   :  { %4278 = vrcp.f32 %v1143_v19  ;;  %v4277_v0 = vpop.eup %4276  ;;  %v1156_v45 = vadd.f32 1.0, %v4275_v14 }
 0x270   :  { %4280 = vrcp.f32 %v1149_v20 }
 0x271   :  { %4282 = vrcp.f32 %v1156_v45 }
 0x279   :  { %v4279_v11 = vpop.eup %4278 }
 0x27a   :  { %v4281_v23 = vpop.eup %4280  ;;  %v1160_v24 = vmul.f32 %v4279_v11, %v4277_v0 }
 0x27b   :  { %v1159_v7 = vmul.f32 %v4281_v23, %v5252_v21  ;;  %v4283_v12 = vpop.eup %4282 }
 0x27d   :  { %v5255_v4 = vadd.f32 %v1160_v24, %v1159_v7 }
 0x27f   :  { %4284 = vtanh.f32 %v5255_v4 }
 0x289   :  { %v4285_v26 = vpop.eup %4284 }
 0x28a   :  { %v5258_v13 = vmul.f32 %v4285_v26, %v4283_v12 }
 0x28c   :  { %v1168_v10 = vpack.c.bf16 %v5258_v13, %v5258_v13 }
 0x28e   :  { %1202 = vmatmul.mubr.bf16.vlgmr.msra.gmra.mrb[24].mxu1 %v1168_v10  ;;  %1243 = vmatmul.mubr.bf16.vlgmr.msra.gmra.mrb[32].mxu0 %v1168_v10 }
 0x28f   :  { %1285 = vmatpush1.bf16.msra.mxu1 %v4939_v31  ;;  %1326 = vmatpush1.bf16.msra.mxu0 %v4944_v32 }
 0x290   :  { %1286 = vmatprep.subr.bf16.mxu1 %v4949_v34  ;;  %1327 = vmatprep.subr.bf16.mxu0 %v4954_v35 }
 0x291   :  { %1316 = vmatprep.mubr.bf16.mxu1 %v6709_v22  ;;  %1357 = vmatprep.mubr.bf16.mxu0 %v6709_v22 }
 0x293   :  { %1287 = vmatpush1.bf16.msra.mxu1 %v4961_v36  ;;  %1328 = vmatpush1.bf16.msra.mxu0 %v4966_v38 }
 0x294   :  { %1288 = vmatprep.subr.bf16.mxu1 %v4973_v40  ;;  %1329 = vmatprep.subr.bf16.mxu0 %v4978_v41 }
 0x297   :  { %1289 = vmatpush1.bf16.msra.mxu1 %v4987_v46  ;;  %1330 = vmatpush1.bf16.msra.mxu0 %v4992_v47 }
 0x298   :  { %1290 = vmatprep.subr.bf16.mxu1 %v4999_v49  ;;  %1331 = vmatprep.subr.bf16.mxu0 %v5004_v50 }
 0x29b   :  { %1291 = vmatpush1.bf16.msra.mxu1 %v5011_v51  ;;  %1332 = vmatpush1.bf16.msra.mxu0 %v5016_v52 }
 0x29c   :  { %1292 = vmatprep.subr.bf16.mxu1 %v5023_v53  ;;  %1333 = vmatprep.subr.bf16.mxu0 %v5028_v54 }
 0x29f   :  { %1293 = vmatpush1.bf16.msra.mxu1 %v5037_v55  ;;  %1334 = vmatpush1.bf16.msra.mxu0 %v5042_v56 }
 0x2a0   :  { %1294 = vmatprep.subr.bf16.mxu1 %v5049_v57  ;;  %1335 = vmatprep.subr.bf16.mxu0 %v5054_v58 }
 0x2a3   :  { %1295 = vmatpush1.bf16.msra.mxu1 %v5061_v59  ;;  %1336 = vmatpush1.bf16.msra.mxu0 %v5066_v60 }
 0x2a4   :  { %1296 = vmatprep.subr.bf16.mxu1 %v5073_v61  ;;  %1337 = vmatprep.subr.bf16.mxu0 %v5078_v62 }
 0x2a7   :  { %1297 = vmatpush1.bf16.msra.mxu1 %v5087_v63  ;;  %1338 = vmatpush1.bf16.msra.mxu0 %v5092_v1 }
 0x2a8   :  { %1298 = vmatprep.subr.bf16.mxu1 %v5099_v2  ;;  %1339 = vmatprep.subr.bf16.mxu0 %v5104_v3 }
 0x2ab   :  { %1299 = vmatpush1.bf16.msra.mxu1 %v5114_v5  ;;  %1340 = vmatpush1.bf16.msra.mxu0 %v5119_v6 }
 0x2ac   :  { %1399 = vmatprep.subr.bf16.mxu1 %v4923_v16  ;;  %1440 = vmatprep.subr.bf16.mxu0 %v4929_v17 }
 0x361   :  { %v1203_v48 = vpop.f32.mrb[24].mxu1  ;;  %v1244_v9 = vpop.f32.mrb[32].mxu0 }
 0x362   :  { %v1251_v25 = vadd.f32 %v1203_v48, %v5190_v27  ;;  %v1253_v29 = vadd.f32 %v1244_v9, %v5192_v28  ;;  %v1205_v30 = vpop.f32.mrb[25].mxu1  ;;  %v1246_v42 = vpop.f32.mrb[33].mxu0 }
 0x363   :  { %v1252_v43 = vadd.f32 %v1205_v30, %v5194_v33  ;;  %v1254_v15 = vadd.f32 %v1246_v42, %v5196_v39  ;;  %v1207_v18 = vpop.f32.mrb[26].mxu1  ;;  %v1248_v37 = vpop.f32.mrb[34].mxu0 }
 0x364   :  { %v3790_v19 = vmul.f32 -1.442695, %v1251_v25  ;;  %v1208_v20 = vpop.f32.mrb[27].mxu1  ;;  %v1249_v8 = vpop.f32.mrb[35].mxu0 }
 0x365   :  { %v3791_v14 = vmul.f32 -1.442695, %v1252_v43  ;;  %v3792_v0 = vmul.f32 -1.442695, %v1254_v15  ;;  %v6710_v43 = vld [vmem:[#allocation5_spill] sm:$0xff]  ;;  %v6712_v8 = vld [vmem:[#allocation7_spill] sm:$0xff] }
 0x366   :  { %4286 = vpow2.f32 %v3790_v19  ;;  %v6711_v19 = vld [vmem:[#allocation6_spill] sm:$0xff] }
 0x367   :  { %4288 = vpow2.f32 %v3791_v14 }
 0x368   :  { %4290 = vpow2.f32 %v3792_v0 }
 0x369   :  { %4292 = vtanh.f32 %v1253_v29 }
 0x370   :  { %v4287_v11 = vpop.eup %4286 }
 0x371   :  { %v4289_v23 = vpop.eup %4288  ;;  %v1258_v27 = vadd.f32 1.0, %v4287_v11 }
 0x372   :  { %v1264_v28 = vadd.f32 1.0, %v4289_v23  ;;  %v4291_v33 = vpop.eup %4290 }
 0x373   :  { %4294 = vrcp.f32 %v1258_v27  ;;  %v4293_v24 = vpop.eup %4292  ;;  %v1271_v12 = vadd.f32 1.0, %v4291_v33 }
 0x374   :  { %4296 = vrcp.f32 %v1264_v28 }
 0x375   :  { %4298 = vrcp.f32 %v1271_v12 }
 0x37d   :  { %v4295_v39 = vpop.eup %4294 }
 0x37e   :  { %v4297_v45 = vpop.eup %4296  ;;  %v1275_v7 = vmul.f32 %v4295_v39, %v4293_v24 }
 0x37f   :  { %v1274_v26 = vmul.f32 %v4297_v45, %v5255_v4  ;;  %v4299_v48 = vpop.eup %4298 }
 0x381   :  { %v5301_v10 = vadd.f32 %v1275_v7, %v1274_v26 }
 0x383   :  { %4300 = vtanh.f32 %v5301_v10 }
 0x38d   :  { %v4301_v9 = vpop.eup %4300 }
 0x38e   :  { %v5304_v25 = vmul.f32 %v4301_v9, %v4299_v48 }
 0x390   :  { %v1283_v29 = vpack.c.bf16 %v5304_v25, %v5304_v25 }
 0x392   :  { %1317 = vmatmul.mubr.bf16.vlgmr.msra.gmra.mrb[28].mxu1 %v1283_v29  ;;  %1358 = vmatmul.mubr.bf16.vlgmr.msra.gmra.mrb[36].mxu0 %v1283_v29 }
 0x393   :  { %1400 = vmatpush1.bf16.msra.mxu1 %v4939_v31  ;;  %1441 = vmatpush1.bf16.msra.mxu0 %v4944_v32 }
 0x394   :  { %1401 = vmatprep.subr.bf16.mxu1 %v4949_v34  ;;  %1442 = vmatprep.subr.bf16.mxu0 %v4954_v35 }
 0x395   :  { %1431 = vmatprep.mubr.bf16.mxu1 %v6709_v22  ;;  %1472 = vmatprep.mubr.bf16.mxu0 %v6709_v22 }
 0x397   :  { %1402 = vmatpush1.bf16.msra.mxu1 %v4961_v36  ;;  %1443 = vmatpush1.bf16.msra.mxu0 %v4966_v38 }
 0x398   :  { %1403 = vmatprep.subr.bf16.mxu1 %v4973_v40  ;;  %1444 = vmatprep.subr.bf16.mxu0 %v4978_v41 }
 0x39b   :  { %1404 = vmatpush1.bf16.msra.mxu1 %v4987_v46  ;;  %1445 = vmatpush1.bf16.msra.mxu0 %v4992_v47 }
 0x39c   :  { %1405 = vmatprep.subr.bf16.mxu1 %v4999_v49  ;;  %1446 = vmatprep.subr.bf16.mxu0 %v5004_v50 }
 0x39f   :  { %1406 = vmatpush1.bf16.msra.mxu1 %v5011_v51  ;;  %1447 = vmatpush1.bf16.msra.mxu0 %v5016_v52 }
 0x3a0   :  { %1407 = vmatprep.subr.bf16.mxu1 %v5023_v53  ;;  %1448 = vmatprep.subr.bf16.mxu0 %v5028_v54 }
 0x3a3   :  { %1408 = vmatpush1.bf16.msra.mxu1 %v5037_v55  ;;  %1449 = vmatpush1.bf16.msra.mxu0 %v5042_v56 }
 0x3a4   :  { %1409 = vmatprep.subr.bf16.mxu1 %v5049_v57  ;;  %1450 = vmatprep.subr.bf16.mxu0 %v5054_v58 }
 0x3a7   :  { %1410 = vmatpush1.bf16.msra.mxu1 %v5061_v59  ;;  %1451 = vmatpush1.bf16.msra.mxu0 %v5066_v60 }
 0x3a8   :  { %1411 = vmatprep.subr.bf16.mxu1 %v5073_v61  ;;  %1452 = vmatprep.subr.bf16.mxu0 %v5078_v62 }
 0x3ab   :  { %1412 = vmatpush1.bf16.msra.mxu1 %v5087_v63  ;;  %1453 = vmatpush1.bf16.msra.mxu0 %v5092_v1 }
 0x3ac   :  { %1413 = vmatprep.subr.bf16.mxu1 %v5099_v2  ;;  %1454 = vmatprep.subr.bf16.mxu0 %v5104_v3 }
 0x3af   :  { %1414 = vmatpush1.bf16.msra.mxu1 %v5114_v5  ;;  %1455 = vmatpush1.bf16.msra.mxu0 %v5119_v6 }
 0x3b0   :  { %1514 = vmatprep.subr.bf16.mxu1 %v4923_v16  ;;  %1555 = vmatprep.subr.bf16.mxu0 %v4929_v17 }
 0x465   :  { %v1318_v4 = vpop.f32.mrb[28].mxu1  ;;  %v1359_v30 = vpop.f32.mrb[36].mxu0 }
 0x466   :  { %v1366_v42 = vadd.f32 %v1318_v4, %v5198_v44  ;;  %v1368_v15 = vadd.f32 %v1359_v30, %v6710_v43  ;;  %v1320_v18 = vpop.f32.mrb[29].mxu1  ;;  %v1361_v37 = vpop.f32.mrb[37].mxu0 }
 0x467   :  { %v1367_v20 = vadd.f32 %v1320_v18, %v6711_v19  ;;  %v1369_v14 = vadd.f32 %v1361_v37, %v6712_v8  ;;  %v1322_v0 = vpop.f32.mrb[30].mxu1  ;;  %v1363_v11 = vpop.f32.mrb[38].mxu0 }
 0x468   :  { %v3793_v23 = vmul.f32 -1.442695, %v1366_v42  ;;  %v1323_v27 = vpop.f32.mrb[31].mxu1  ;;  %v1364_v28 = vpop.f32.mrb[39].mxu0 }
 0x469   :  { %v3794_v33 = vmul.f32 -1.442695, %v1367_v20  ;;  %v3795_v24 = vmul.f32 -1.442695, %v1369_v14  ;;  %v6713_v20 = vld [vmem:[#allocation8_spill] sm:$0xff]  ;;  %v6714_v14 = vld [vmem:[#allocation9_spill] sm:$0xff] }
 0x46a   :  { %4302 = vpow2.f32 %v3793_v23  ;;  %v6715_v27 = vld [vmem:[#allocation10_spill] sm:$0xff] }
 0x46b   :  { %4304 = vpow2.f32 %v3794_v33  ;;  %v6716_v33 = vld [vmem:[#allocation11_spill] sm:$0xff] }
 0x46c   :  { %4306 = vpow2.f32 %v3795_v24 }
 0x46d   :  { %4308 = vtanh.f32 %v1368_v15 }
 0x474   :  { %v4303_v39 = vpop.eup %4302 }
 0x475   :  { %v4305_v45 = vpop.eup %4304  ;;  %v1373_v44 = vadd.f32 1.0, %v4303_v39 }
 0x476   :  { %v1379_v7 = vadd.f32 1.0, %v4305_v45  ;;  %v4307_v12 = vpop.eup %4306 }
 0x477   :  { %4310 = vrcp.f32 %v1373_v44  ;;  %v4309_v26 = vpop.eup %4308  ;;  %v1386_v4 = vadd.f32 1.0, %v4307_v12 }
 0x478   :  { %4312 = vrcp.f32 %v1379_v7 }
 0x479   :  { %4314 = vrcp.f32 %v1386_v4 }
 0x481   :  { %v4311_v48 = vpop.eup %4310 }
 0x482   :  { %v4313_v9 = vpop.eup %4312  ;;  %v1390_v29 = vmul.f32 %v4311_v48, %v4309_v26 }
 0x483   :  { %v1389_v30 = vmul.f32 %v4313_v9, %v5301_v10  ;;  %v4315_v43 = vpop.eup %4314 }
 0x485   :  { %v5347_v42 = vadd.f32 %v1390_v29, %v1389_v30 }
 0x487   :  { %4316 = vtanh.f32 %v5347_v42 }
 0x491   :  { %v4317_v18 = vpop.eup %4316 }
 0x492   :  { %v5350_v37 = vmul.f32 %v4317_v18, %v4315_v43 }
 0x494   :  { %v1398_v15 = vpack.c.bf16 %v5350_v37, %v5350_v37 }
 0x496   :  { %1432 = vmatmul.mubr.bf16.vlgmr.msra.gmra.mrb[32].mxu1 %v1398_v15  ;;  %1473 = vmatmul.mubr.bf16.vlgmr.msra.gmra.mrb[40].mxu0 %v1398_v15 }
 0x497   :  { %1515 = vmatpush1.bf16.msra.mxu1 %v4939_v31  ;;  %1556 = vmatpush1.bf16.msra.mxu0 %v4944_v32 }
 0x498   :  { %1516 = vmatprep.subr.bf16.mxu1 %v4949_v34  ;;  %1557 = vmatprep.subr.bf16.mxu0 %v4954_v35 }
 0x499   :  { %1546 = vmatprep.mubr.bf16.mxu1 %v6709_v22  ;;  %1587 = vmatprep.mubr.bf16.mxu0 %v6709_v22 }
 0x49b   :  { %1517 = vmatpush1.bf16.msra.mxu1 %v4961_v36  ;;  %1558 = vmatpush1.bf16.msra.mxu0 %v4966_v38 }
 0x49c   :  { %1518 = vmatprep.subr.bf16.mxu1 %v4973_v40  ;;  %1559 = vmatprep.subr.bf16.mxu0 %v4978_v41 }
 0x49f   :  { %1519 = vmatpush1.bf16.msra.mxu1 %v4987_v46  ;;  %1560 = vmatpush1.bf16.msra.mxu0 %v4992_v47 }
 0x4a0   :  { %1520 = vmatprep.subr.bf16.mxu1 %v4999_v49  ;;  %1561 = vmatprep.subr.bf16.mxu0 %v5004_v50 }
 0x4a3   :  { %1521 = vmatpush1.bf16.msra.mxu1 %v5011_v51  ;;  %1562 = vmatpush1.bf16.msra.mxu0 %v5016_v52 }
 0x4a4   :  { %1522 = vmatprep.subr.bf16.mxu1 %v5023_v53  ;;  %1563 = vmatprep.subr.bf16.mxu0 %v5028_v54 }
 0x4a7   :  { %1523 = vmatpush1.bf16.msra.mxu1 %v5037_v55  ;;  %1564 = vmatpush1.bf16.msra.mxu0 %v5042_v56 }
 0x4a8   :  { %1524 = vmatprep.subr.bf16.mxu1 %v5049_v57  ;;  %1565 = vmatprep.subr.bf16.mxu0 %v5054_v58 }
 0x4ab   :  { %1525 = vmatpush1.bf16.msra.mxu1 %v5061_v59  ;;  %1566 = vmatpush1.bf16.msra.mxu0 %v5066_v60 }
 0x4ac   :  { %1526 = vmatprep.subr.bf16.mxu1 %v5073_v61  ;;  %1567 = vmatprep.subr.bf16.mxu0 %v5078_v62 }
 0x4af   :  { %1527 = vmatpush1.bf16.msra.mxu1 %v5087_v63  ;;  %1568 = vmatpush1.bf16.msra.mxu0 %v5092_v1 }
 0x4b0   :  { %1528 = vmatprep.subr.bf16.mxu1 %v5099_v2  ;;  %1569 = vmatprep.subr.bf16.mxu0 %v5104_v3 }
 0x4b3   :  { %1529 = vmatpush1.bf16.msra.mxu1 %v5114_v5  ;;  %1570 = vmatpush1.bf16.msra.mxu0 %v5119_v6 }
 0x4b4   :  { %1629 = vmatprep.subr.bf16.mxu1 %v4923_v16  ;;  %1670 = vmatprep.subr.bf16.mxu0 %v4929_v17 }
 0x569   :  { %v1433_v10 = vpop.f32.mrb[32].mxu1  ;;  %v1474_v19 = vpop.f32.mrb[40].mxu0 }
 0x56a   :  { %v1481_v8 = vadd.f32 %v1433_v10, %v6713_v20  ;;  %v1483_v0 = vadd.f32 %v1474_v19, %v6714_v14  ;;  %v1435_v11 = vpop.f32.mrb[33].mxu1  ;;  %v1476_v23 = vpop.f32.mrb[41].mxu0 }
 0x56b   :  { %v1482_v28 = vadd.f32 %v1435_v11, %v6715_v27  ;;  %v1484_v24 = vadd.f32 %v1476_v23, %v6716_v33  ;;  %v1437_v39 = vpop.f32.mrb[34].mxu1  ;;  %v1478_v45 = vpop.f32.mrb[42].mxu0 }
 0x56c   :  { %v3796_v44 = vmul.f32 -1.442695, %v1481_v8  ;;  %v1438_v7 = vpop.f32.mrb[35].mxu1  ;;  %v1479_v12 = vpop.f32.mrb[43].mxu0 }
 0x56d   :  { %v3797_v16 = vmul.f32 -1.442695, %v1482_v28  ;;  %v3798_v17 = vmul.f32 -1.442695, %v1484_v24 }
 0x56e   :  { %4318 = vpow2.f32 %v3796_v44 }
 0x56f   :  { %4320 = vpow2.f32 %v3797_v16 }
 0x570   :  { %4322 = vpow2.f32 %v3798_v17 }
 0x571   :  { %4324 = vtanh.f32 %v1483_v0 }
 0x578   :  { %v4319_v26 = vpop.eup %4318 }
 0x579   :  { %v4321_v48 = vpop.eup %4320  ;;  %v1488_v9 = vadd.f32 1.0, %v4319_v26 }
 0x57a   :  { %v1494_v29 = vadd.f32 1.0, %v4321_v48  ;;  %v4323_v4 = vpop.eup %4322 }
 0x57b   :  { %4326 = vrcp.f32 %v1488_v9  ;;  %v4325_v30 = vpop.eup %4324  ;;  %v1501_v10 = vadd.f32 1.0, %v4323_v4  ;;  %v5459_v4 = vld [vmem:[%s6656_s8] ss:$16 sps:$4 sm:$0xff]  }
 0x57c   :  { %4328 = vrcp.f32 %v1494_v29 }
 0x57d   :  { %4330 = vrcp.f32 %v1501_v10  ;;  %v5491_v10 = vld [vmem:[%s6656_s8 + $0x28] ss:$16 sps:$4 sm:$0xff]  }
 0x585   :  { %v4327_v43 = vpop.eup %4326 }
 0x586   :  { %v4329_v18 = vpop.eup %4328  ;;  %v1505_v15 = vmul.f32 %v4327_v43, %v4325_v30  ;;  %v5465_v30 = vld [vmem:[%s6656_s8 + $0x8] ss:$16 sps:$4 sm:$0xff]   ;;  %v5471_v43 = vld [vmem:[%s6656_s8 + $0x24] ss:$16 sps:$4 sm:$0xff]  }
 0x587   :  { %v1504_v19 = vmul.f32 %v4329_v18, %v5347_v42  ;;  %v4331_v8 = vpop.eup %4330  ;;  %v5477_v18 = vld [vmem:[%s6656_s8 + $0x2c] ss:$16 sps:$4 sm:$0xff]  }
 0x589   :  { %v5393_v20 = vadd.f32 %v1505_v15, %v1504_v19  ;;  %v5485_v15 = vld [vmem:[%s6656_s8 + $0x20] ss:$16 sps:$4 sm:$0xff]   ;;  %v5497_v19 = vld [vmem:[%s6656_s8 + $0x44] ss:$16 sps:$4 sm:$0xff]  }
 0x58b   :  { %4332 = vtanh.f32 %v5393_v20 }
 0x595   :  { %v4333_v14 = vpop.eup %4332 }
 0x596   :  { %v5396_v11 = vmul.f32 %v4333_v14, %v4331_v8  ;;  %v5509_v8 = vld [vmem:[%s6656_s8 + $0x40] ss:$16 sps:$4 sm:$0xff]   ;;  %v5515_v14 = vld [vmem:[%s6656_s8 + $0x48] ss:$16 sps:$4 sm:$0xff]  }
 0x598   :  { %v1513_v0 = vpack.c.bf16 %v5396_v11, %v5396_v11 }
 0x59a   :  { %1547 = vmatmul.mubr.bf16.vlgmr.msra.gmra.mrb[36].mxu1 %v1513_v0  ;;  %1588 = vmatmul.mubr.bf16.vlgmr.msra.gmra.mrb[44].mxu0 %v1513_v0  ;;  %v5521_v0 = vld [vmem:[%s6656_s8 + $0x64] ss:$16 sps:$4 sm:$0xff]  }
 0x59b   :  { %1630 = vmatpush1.bf16.msra.mxu1 %v4939_v31  ;;  %1671 = vmatpush1.bf16.msra.mxu0 %v4944_v32  ;;  %v5435_v31 = vld [vmem:[%s6656_s8 + $0x4] ss:$16 sps:$4 sm:$0xff]   ;;  %v5441_v32 = vld [vmem:[%s6656_s8 + $0xc] ss:$16 sps:$4 sm:$0xff]  }
 0x59c   :  { %1631 = vmatprep.subr.bf16.mxu1 %v4949_v34  ;;  %1672 = vmatprep.subr.bf16.mxu0 %v4954_v35 }
 0x59d   :  { %1661 = vmatprep.mubr.bf16.mxu1 %v6709_v22  ;;  %1702 = vmatprep.mubr.bf16.mxu0 %v6709_v22 }
 0x59f   :  { %1632 = vmatpush1.bf16.msra.mxu1 %v4961_v36  ;;  %1673 = vmatpush1.bf16.msra.mxu0 %v4966_v38  ;;  %v6717_v36 = vld [vmem:[#allocation12_spill] sm:$0xff] }
 0x5a0   :  { %1633 = vmatprep.subr.bf16.mxu1 %v4973_v40  ;;  %1674 = vmatprep.subr.bf16.mxu0 %v4978_v41  ;;  %v6718_v40 = vld [vmem:[#allocation13_spill] sm:$0xff] }
 0x5a3   :  { %1634 = vmatpush1.bf16.msra.mxu1 %v4987_v46  ;;  %1675 = vmatpush1.bf16.msra.mxu0 %v4992_v47 }
 0x5a4   :  { %1635 = vmatprep.subr.bf16.mxu1 %v4999_v49  ;;  %1676 = vmatprep.subr.bf16.mxu0 %v5004_v50  ;;  %v6719_v49 = vld [vmem:[#allocation14_spill] sm:$0xff] }
 0x5a7   :  { %1636 = vmatpush1.bf16.msra.mxu1 %v5011_v51  ;;  %1677 = vmatpush1.bf16.msra.mxu0 %v5016_v52  ;;  %v6720_v51 = vld [vmem:[#allocation15_spill] sm:$0xff] }
 0x5a8   :  { %1637 = vmatprep.subr.bf16.mxu1 %v5023_v53  ;;  %1678 = vmatprep.subr.bf16.mxu0 %v5028_v54 }
 0x5ab   :  { %1638 = vmatpush1.bf16.msra.mxu1 %v5037_v55  ;;  %1679 = vmatpush1.bf16.msra.mxu0 %v5042_v56 }
 0x5ac   :  { %1639 = vmatprep.subr.bf16.mxu1 %v5049_v57  ;;  %1680 = vmatprep.subr.bf16.mxu0 %v5054_v58 }
 0x5af   :  { %1640 = vmatpush1.bf16.msra.mxu1 %v5061_v59  ;;  %1681 = vmatpush1.bf16.msra.mxu0 %v5066_v60 }
 0x5b0   :  { %1641 = vmatprep.subr.bf16.mxu1 %v5073_v61  ;;  %1682 = vmatprep.subr.bf16.mxu0 %v5078_v62 }
 0x5b3   :  { %1642 = vmatpush1.bf16.msra.mxu1 %v5087_v63  ;;  %1683 = vmatpush1.bf16.msra.mxu0 %v5092_v1 }
 0x5b4   :  { %1643 = vmatprep.subr.bf16.mxu1 %v5099_v2  ;;  %1684 = vmatprep.subr.bf16.mxu0 %v5104_v3 }
 0x5b7   :  { %1644 = vmatpush1.bf16.msra.mxu1 %v5114_v5  ;;  %1685 = vmatpush1.bf16.msra.mxu0 %v5119_v6 }
 0x5b8   :  { %1744 = vmatprep.subr.bf16.mxu1 %v5435_v31  ;;  %1785 = vmatprep.subr.bf16.mxu0 %v5441_v32 }
 0x66d   :  { %v1548_v34 = vpop.f32.mrb[36].mxu1  ;;  %v1589_v35 = vpop.f32.mrb[44].mxu0 }
 0x66e   :  { %v1596_v38 = vadd.f32 %v1548_v34, %v6717_v36  ;;  %v1598_v41 = vadd.f32 %v1589_v35, %v6718_v40  ;;  %v1550_v46 = vpop.f32.mrb[37].mxu1  ;;  %v1591_v47 = vpop.f32.mrb[45].mxu0  ;;  %v5527_v34 = vld [vmem:[%s6656_s8 + $0x6c] ss:$16 sps:$4 sm:$0xff]   ;;  %v5533_v35 = vld [vmem:[%s6656_s8 + $0x60] ss:$16 sps:$4 sm:$0xff]  }
 0x66f   :  { %v1597_v50 = vadd.f32 %v1550_v46, %v6719_v49  ;;  %v1599_v52 = vadd.f32 %v1591_v47, %v6720_v51  ;;  %v1552_v53 = vpop.f32.mrb[38].mxu1  ;;  %v1593_v54 = vpop.f32.mrb[46].mxu0  ;;  %v5539_v36 = vld [vmem:[%s6656_s8 + $0x68] ss:$16 sps:$4 sm:$0xff]   ;;  %v5551_v40 = vld [vmem:[%s6656_s8 + $0x8c] ss:$16 sps:$4 sm:$0xff]  }
 0x670   :  { %v3799_v55 = vmul.f32 -1.442695, %v1596_v38  ;;  %v1553_v56 = vpop.f32.mrb[39].mxu1  ;;  %v1594_v57 = vpop.f32.mrb[47].mxu0  ;;  %v5545_v38 = vld [vmem:[%s6656_s8 + $0x84] ss:$16 sps:$4 sm:$0xff]  }
 0x671   :  { %v3800_v58 = vmul.f32 -1.442695, %v1597_v50  ;;  %v3801_v42 = vmul.f32 -1.442695, %v1599_v52  ;;  %v5563_v46 = vld [vmem:[%s6656_s8 + $0x88] ss:$16 sps:$4 sm:$0xff]  }
 0x672   :  { %4334 = vpow2.f32 %v3799_v55  ;;  %v5569_v47 = vld [vmem:[%s6656_s8 + $0xa4] ss:$16 sps:$4 sm:$0xff]   ;;  %v5575_v49 = vld [vmem:[%s6656_s8 + $0xac] ss:$16 sps:$4 sm:$0xff]  }
 0x673   :  { %4336 = vpow2.f32 %v3800_v58  ;;  %v6722_v50 = vld [vmem:[#allocation17_spill] sm:$0xff]  ;;  %v6723_v52 = vld [vmem:[#allocation18_spill] sm:$0xff]  ;;  %v6724_v53 = vld [vmem:[#allocation19_spill] sm:$0xff] }
 0x674   :  { %4338 = vpow2.f32 %v3801_v42 }
 0x675   :  { %4340 = vtanh.f32 %v1598_v41  ;;  %v5557_v41 = vld [vmem:[%s6656_s8 + $0x80] ss:$16 sps:$4 sm:$0xff]  }
 0x67c   :  { %v4335_v23 = vpop.eup %4334 }
 0x67d   :  { %v4337_v27 = vpop.eup %4336  ;;  %v1603_v28 = vadd.f32 1.0, %v4335_v23 }
 0x67e   :  { %v1609_v33 = vadd.f32 1.0, %v4337_v27  ;;  %v4339_v24 = vpop.eup %4338 }
 0x67f   :  { %4342 = vrcp.f32 %v1603_v28  ;;  %v4341_v39 = vpop.eup %4340  ;;  %v1616_v12 = vadd.f32 1.0, %v4339_v24 }
 0x680   :  { %4344 = vrcp.f32 %v1609_v33 }
 0x681   :  { %4346 = vrcp.f32 %v1616_v12 }
 0x689   :  { %v4343_v45 = vpop.eup %4342 }
 0x68a   :  { %v4345_v44 = vpop.eup %4344  ;;  %v1620_v7 = vmul.f32 %v4343_v45, %v4341_v39 }
 0x68b   :  { %v1619_v16 = vmul.f32 %v4345_v44, %v5393_v20  ;;  %v4347_v26 = vpop.eup %4346  ;;  %v5503_v20 = vld [vmem:[%s6656_s8 + $0x4c] ss:$16 sps:$4 sm:$0xff]  }
 0x68d   :  { %v5449_v17 = vadd.f32 %v1620_v7, %v1619_v16 }
 0x68f   :  { %4348 = vtanh.f32 %v5449_v17 }
 0x699   :  { %v4349_v48 = vpop.eup %4348 }
 0x69a   :  { %v5452_v9 = vmul.f32 %v4349_v48, %v4347_v26 }
 0x69c   :  { %v1628_v29 = vpack.c.bf16 %v5452_v9, %v5452_v9 }
 0x69e   :  { %1662 = vmatmul.mubr.bf16.vlgmr.msra.gmra.mrb[40].mxu1 %v1628_v29  ;;  %1703 = vmatmul.mubr.bf16.vlgmr.msra.gmra.mrb[48].mxu0 %v1628_v29  ;;  %v4567_v29 = vld [vmem:[%s6656_s8 + $0xa8] ss:$16 sps:$4 sm:$0xff]  }
 0x69f   :  { %1745 = vmatpush1.bf16.msra.mxu1 %v5459_v4  ;;  %1786 = vmatpush1.bf16.msra.mxu0 %v5465_v30 }
 0x6a0   :  { %1746 = vmatprep.subr.bf16.mxu1 %v5471_v43  ;;  %1787 = vmatprep.subr.bf16.mxu0 %v5477_v18 }
 0x6a1   :  { %1776 = vmatprep.mubr.bf16.mxu1 %v6709_v22  ;;  %1817 = vmatprep.mubr.bf16.mxu0 %v6709_v22 }
 0x6a3   :  { %1747 = vmatpush1.bf16.msra.mxu1 %v5485_v15  ;;  %1788 = vmatpush1.bf16.msra.mxu0 %v5491_v10 }
 0x6a4   :  { %1748 = vmatprep.subr.bf16.mxu1 %v5497_v19  ;;  %1789 = vmatprep.subr.bf16.mxu0 %v5503_v20 }
 0x6a7   :  { %1749 = vmatpush1.bf16.msra.mxu1 %v5509_v8  ;;  %1790 = vmatpush1.bf16.msra.mxu0 %v5515_v14 }
 0x6a8   :  { %1750 = vmatprep.subr.bf16.mxu1 %v5521_v0  ;;  %1791 = vmatprep.subr.bf16.mxu0 %v5527_v34 }
 0x6ab   :  { %1751 = vmatpush1.bf16.msra.mxu1 %v5533_v35  ;;  %1792 = vmatpush1.bf16.msra.mxu0 %v5539_v36 }
 0x6ac   :  { %1752 = vmatprep.subr.bf16.mxu1 %v5545_v38  ;;  %1793 = vmatprep.subr.bf16.mxu0 %v5551_v40 }
 0x6af   :  { %1753 = vmatpush1.bf16.msra.mxu1 %v5557_v41  ;;  %1794 = vmatpush1.bf16.msra.mxu0 %v5563_v46 }
 0x6b0   :  { %1754 = vmatprep.subr.bf16.mxu1 %v5569_v47  ;;  %1795 = vmatprep.subr.bf16.mxu0 %v5575_v49 }
 0x6b3   :  { %1755 = vmatpush1.bf16.msra.mxu1 %v5061_v59  ;;  %1796 = vmatpush1.bf16.msra.mxu0 %v5066_v60 }
 0x6b4   :  { %1756 = vmatprep.subr.bf16.mxu1 %v5073_v61  ;;  %1797 = vmatprep.subr.bf16.mxu0 %v5078_v62  ;;  %v6721_v61 = vld [vmem:[#allocation16_spill] sm:$0xff] }
 0x6b7   :  { %1757 = vmatpush1.bf16.msra.mxu1 %v5087_v63  ;;  %1798 = vmatpush1.bf16.msra.mxu0 %v5092_v1 }
 0x6b8   :  { %1758 = vmatprep.subr.bf16.mxu1 %v5099_v2  ;;  %1799 = vmatprep.subr.bf16.mxu0 %v5104_v3 }
 0x6bb   :  { %1759 = vmatpush1.bf16.msra.mxu1 %v5114_v5  ;;  %1800 = vmatpush1.bf16.msra.mxu0 %v5119_v6 }
 0x6bc   :  { %1859 = vmatprep.subr.bf16.mxu1 %v5435_v31  ;;  %1900 = vmatprep.subr.bf16.mxu0 %v5441_v32 }
 0x771   :  { %v1663_v59 = vpop.f32.mrb[40].mxu1  ;;  %v1704_v60 = vpop.f32.mrb[48].mxu0 }
 0x772   :  { %v1711_v62 = vadd.f32 %v1663_v59, %v6721_v61  ;;  %v1713_v63 = vadd.f32 %v1704_v60, %v6722_v50  ;;  %v1665_v51 = vpop.f32.mrb[41].mxu1  ;;  %v1706_v1 = vpop.f32.mrb[49].mxu0  ;;  %v6728_v59 = vld [vmem:[#allocation23_spill] sm:$0xff] }
 0x773   :  { %v1712_v2 = vadd.f32 %v1665_v51, %v6723_v52  ;;  %v1714_v3 = vadd.f32 %v1706_v1, %v6724_v53  ;;  %v1667_v54 = vpop.f32.mrb[42].mxu1  ;;  %v1708_v5 = vpop.f32.mrb[50].mxu0 }
 0x774   :  { %v3802_v55 = vmul.f32 -1.442695, %v1711_v62  ;;  %v1668_v6 = vpop.f32.mrb[43].mxu1  ;;  %v1709_v56 = vpop.f32.mrb[51].mxu0 }
 0x775   :  { %v3803_v31 = vmul.f32 -1.442695, %v1712_v2  ;;  %v3804_v32 = vmul.f32 -1.442695, %v1714_v3 }
 0x776   :  { %4350 = vpow2.f32 %v3802_v55 }
 0x777   :  { %4352 = vpow2.f32 %v3803_v31 }
 0x778   :  { %4354 = vpow2.f32 %v3804_v32 }
 0x779   :  { %4356 = vtanh.f32 %v1713_v63 }
 0x780   :  { %v4351_v57 = vpop.eup %4350 }
 0x781   :  { %v4353_v58 = vpop.eup %4352  ;;  %v1718_v42 = vadd.f32 1.0, %v4351_v57 }
 0x782   :  { %v1724_v23 = vadd.f32 1.0, %v4353_v58  ;;  %v4355_v27 = vpop.eup %4354 }
 0x783   :  { %4358 = vrcp.f32 %v1718_v42  ;;  %v4357_v28 = vpop.eup %4356  ;;  %v1731_v45 = vadd.f32 1.0, %v4355_v27 }
 0x784   :  { %4360 = vrcp.f32 %v1724_v23 }
 0x785   :  { %4362 = vrcp.f32 %v1731_v45  ;;  %v4177_v45 = vld [vmem:[%s6660_s10 + $0x2c] ss:$16 sps:$4 sm:$0xff]  }
 0x78d   :  { %v4359_v33 = vpop.eup %4358 }
 0x78e   :  { %v4361_v24 = vpop.eup %4360  ;;  %v1735_v39 = vmul.f32 %v4359_v33, %v4357_v28  ;;  %v4166_v28 = vld [vmem:[%s6660_s10] ss:$16 sps:$4 sm:$0xff]   ;;  %v4169_v33 = vld [vmem:[%s6660_s10 + $0x8] ss:$16 sps:$4 sm:$0xff]  }
 0x78f   :  { %v1734_v44 = vmul.f32 %v4361_v24, %v5449_v17  ;;  %v4363_v12 = vpop.eup %4362  ;;  %v4566_v17 = vld [vmem:[%s6656_s8 + $0xa0] ss:$16 sps:$4 sm:$0xff]  }
 0x791   :  { %v5595_v7 = vadd.f32 %v1735_v39, %v1734_v44  ;;  %v4174_v39 = vld [vmem:[%s6660_s10 + $0x24] ss:$16 sps:$4 sm:$0xff]   ;;  %v4172_v44 = vld [vmem:[%s6660_s10 + $0x20] ss:$16 sps:$4 sm:$0xff]  }
 0x793   :  { %4364 = vtanh.f32 %v5595_v7 }
 0x79d   :  { %v4365_v16 = vpop.eup %4364 }
 0x79e   :  { %v5598_v26 = vmul.f32 %v4365_v16, %v4363_v12  ;;  %v4180_v12 = vld [vmem:[%s6660_s10 + $0x44] ss:$16 sps:$4 sm:$0xff]   ;;  %v4183_v16 = vld [vmem:[%s6660_s10 + $0x4c] ss:$16 sps:$4 sm:$0xff]  }
 0x7a0   :  { %v1743_v48 = vpack.c.bf16 %v5598_v26, %v5598_v26 }
 0x7a2   :  { %1777 = vmatmul.mubr.bf16.vlgmr.msra.gmra.mrb[44].mxu1 %v1743_v48  ;;  %1818 = vmatmul.mubr.bf16.vlgmr.msra.gmra.mrb[52].mxu0 %v1743_v48  ;;  %v4178_v48 = vld [vmem:[%s6660_s10 + $0x40] ss:$16 sps:$4 sm:$0xff]  }
 0x7a3   :  { %1860 = vmatpush1.bf16.msra.mxu1 %v5459_v4  ;;  %1901 = vmatpush1.bf16.msra.mxu0 %v5465_v30  ;;  %v4568_v4 = vld [vmem:[%s6656_s8 + $0xc4] ss:$16 sps:$4 sm:$0xff]   ;;  %v4569_v30 = vld [vmem:[%s6656_s8 + $0xcc] ss:$16 sps:$4 sm:$0xff]  }
 0x7a4   :  { %1861 = vmatprep.subr.bf16.mxu1 %v5471_v43  ;;  %1902 = vmatprep.subr.bf16.mxu0 %v5477_v18  ;;  %v4570_v43 = vld [vmem:[%s6656_s8 + $0xc0] ss:$16 sps:$4 sm:$0xff]   ;;  %v4571_v18 = vld [vmem:[%s6656_s8 + $0xc8] ss:$16 sps:$4 sm:$0xff]  }
 0x7a5   :  { %1891 = vmatprep.mubr.bf16.mxu1 %v6709_v22  ;;  %1932 = vmatprep.mubr.bf16.mxu0 %v6709_v22 }
 0x7a7   :  { %1862 = vmatpush1.bf16.msra.mxu1 %v5485_v15  ;;  %1903 = vmatpush1.bf16.msra.mxu0 %v5491_v10  ;;  %v4572_v15 = vld [vmem:[%s6656_s8 + $0xe4] ss:$16 sps:$4 sm:$0xff]   ;;  %v4573_v10 = vld [vmem:[%s6656_s8 + $0xec] ss:$16 sps:$4 sm:$0xff]  }
 0x7a8   :  { %1863 = vmatprep.subr.bf16.mxu1 %v5497_v19  ;;  %1904 = vmatprep.subr.bf16.mxu0 %v5503_v20  ;;  %v4574_v19 = vld [vmem:[%s6656_s8 + $0xe0] ss:$16 sps:$4 sm:$0xff]   ;;  %v4575_v20 = vld [vmem:[%s6656_s8 + $0xe8] ss:$16 sps:$4 sm:$0xff]  }
 0x7ab   :  { %1864 = vmatpush1.bf16.msra.mxu1 %v5509_v8  ;;  %1905 = vmatpush1.bf16.msra.mxu0 %v5515_v14  ;;  %v4168_v8 = vld [vmem:[%s6660_s10 + $0x4] ss:$16 sps:$4 sm:$0xff]   ;;  %v4171_v14 = vld [vmem:[%s6660_s10 + $0xc] ss:$16 sps:$4 sm:$0xff]  }
 0x7ac   :  { %1865 = vmatprep.subr.bf16.mxu1 %v5521_v0  ;;  %1906 = vmatprep.subr.bf16.mxu0 %v5527_v34 }
 0x7af   :  { %1866 = vmatpush1.bf16.msra.mxu1 %v5533_v35  ;;  %1907 = vmatpush1.bf16.msra.mxu0 %v5539_v36  ;;  %v6725_v35 = vld [vmem:[#allocation20_spill] sm:$0xff] }
 0x7b0   :  { %1867 = vmatprep.subr.bf16.mxu1 %v5545_v38  ;;  %1908 = vmatprep.subr.bf16.mxu0 %v5551_v40  ;;  %v6726_v38 = vld [vmem:[#allocation21_spill] sm:$0xff] }
 0x7b3   :  { %1868 = vmatpush1.bf16.msra.mxu1 %v5557_v41  ;;  %1909 = vmatpush1.bf16.msra.mxu0 %v5563_v46 }
 0x7b4   :  { %1869 = vmatprep.subr.bf16.mxu1 %v5569_v47  ;;  %1910 = vmatprep.subr.bf16.mxu0 %v5575_v49  ;;  %v6727_v47 = vld [vmem:[#allocation22_spill] sm:$0xff] }
 0x7b7   :  { %1870 = vmatpush1.bf16.msra.mxu1 %v4566_v17  ;;  %1911 = vmatpush1.bf16.msra.mxu0 %v4567_v29  ;;  %v4181_v17 = vld [vmem:[%s6660_s10 + $0x48] ss:$16 sps:$4 sm:$0xff]   ;;  %v4186_v29 = vld [vmem:[%s6660_s10 + $0x64] ss:$16 sps:$4 sm:$0xff]  }
 0x7b8   :  { %1871 = vmatprep.subr.bf16.mxu1 %v4568_v4  ;;  %1912 = vmatprep.subr.bf16.mxu0 %v4569_v30  ;;  %v4189_v4 = vld [vmem:[%s6660_s10 + $0x6c] ss:$16 sps:$4 sm:$0xff]   ;;  %v4184_v30 = vld [vmem:[%s6660_s10 + $0x60] ss:$16 sps:$4 sm:$0xff]  }
 0x7bb   :  { %1872 = vmatpush1.bf16.msra.mxu1 %v4570_v43  ;;  %1913 = vmatpush1.bf16.msra.mxu0 %v4571_v18  ;;  %v4187_v43 = vld [vmem:[%s6660_s10 + $0x68] ss:$16 sps:$4 sm:$0xff]   ;;  %v4192_v18 = vld [vmem:[%s6660_s10 + $0x84] ss:$16 sps:$4 sm:$0xff]  }
 0x7bc   :  { %1873 = vmatprep.subr.bf16.mxu1 %v4572_v15  ;;  %1914 = vmatprep.subr.bf16.mxu0 %v4573_v10  ;;  %v4195_v15 = vld [vmem:[%s6660_s10 + $0x8c] ss:$16 sps:$4 sm:$0xff]   ;;  %v4190_v10 = vld [vmem:[%s6660_s10 + $0x80] ss:$16 sps:$4 sm:$0xff]  }
 0x7bf   :  { %1874 = vmatpush1.bf16.msra.mxu1 %v4574_v19  ;;  %1915 = vmatpush1.bf16.msra.mxu0 %v4575_v20  ;;  %v4193_v19 = vld [vmem:[%s6660_s10 + $0x88] ss:$16 sps:$4 sm:$0xff]   ;;  %v4198_v20 = vld [vmem:[%s6660_s10 + $0xa4] ss:$16 sps:$4 sm:$0xff]  }
 0x7c0   :  { %2221 = vmatprep.subr.bf16.mxu1 %v4168_v8  ;;  %2294 = vmatprep.subr.bf16.mxu0 %v4171_v14  ;;  %v4201_v8 = vld [vmem:[%s6660_s10 + $0xac] ss:$16 sps:$4 sm:$0xff]   ;;  %v4196_v14 = vld [vmem:[%s6660_s10 + $0xa0] ss:$16 sps:$4 sm:$0xff]  }
 0x875   :  { %v1778_v0 = vpop.f32.mrb[44].mxu1  ;;  %v1819_v34 = vpop.f32.mrb[52].mxu0 }
 0x876   :  { %v1826_v36 = vadd.f32 %v1778_v0, %v6725_v35  ;;  %v1828_v40 = vadd.f32 %v1819_v34, %v6726_v38  ;;  %v1780_v41 = vpop.f32.mrb[45].mxu1  ;;  %v1821_v46 = vpop.f32.mrb[53].mxu0  ;;  %v4199_v0 = vld [vmem:[%s6660_s10 + $0xa8] ss:$16 sps:$4 sm:$0xff]   ;;  %v4204_v34 = vld [vmem:[%s6660_s10 + $0xc4] ss:$16 sps:$4 sm:$0xff]  }
 0x877   :  { %v1827_v49 = vadd.f32 %v1780_v41, %v6727_v47  ;;  %v1829_v60 = vadd.f32 %v1821_v46, %v6728_v59  ;;  %v1782_v61 = vpop.f32.mrb[46].mxu1  ;;  %v1823_v62 = vpop.f32.mrb[54].mxu0  ;;  %v4207_v35 = vld [vmem:[%s6660_s10 + $0xcc] ss:$16 sps:$4 sm:$0xff]   ;;  %v4205_v38 = vld [vmem:[%s6660_s10 + $0xc8] ss:$16 sps:$4 sm:$0xff]   ;;  %v1972_v59 = vpack.c.bf16 %v5396_v11, %v5350_v37 }
 0x878   :  { %v3805_v50 = vmul.f32 -1.442695, %v1826_v36  ;;  %v1783_v63 = vpop.f32.mrb[47].mxu1  ;;  %v1824_v51 = vpop.f32.mrb[55].mxu0  ;;  %v4202_v36 = vld [vmem:[%s6660_s10 + $0xc0] ss:$16 sps:$4 sm:$0xff]  }
 0x879   :  { %v3806_v1 = vmul.f32 -1.442695, %v1827_v49  ;;  %v3807_v52 = vmul.f32 -1.442695, %v1829_v60  ;;  %v4213_v41 = vld [vmem:[%s6660_s10 + $0xec] ss:$16 sps:$4 sm:$0xff]   ;;  %v1971_v49 = vpack.c.bf16 %v5304_v25, %v5258_v13  ;;  %v1973_v60 = vpack.c.bf16 %v5598_v26, %v5452_v9 }
 0x87a   :  { %4366 = vpow2.f32 %v3805_v50  ;;  %v4208_v46 = vld [vmem:[%s6660_s10 + $0xe0] ss:$16 sps:$4 sm:$0xff]   ;;  %v4211_v47 = vld [vmem:[%s6660_s10 + $0xe8] ss:$16 sps:$4 sm:$0xff]   ;;  %v5779_v13 = vld [vmem:[%s6661_s11 + $0x4] ss:$16 sps:$4 sm:$0xff]  }
 0x87b   :  { %4368 = vpow2.f32 %v3806_v1  ;;  %v5784_v25 = vld [vmem:[%s6661_s11] ss:$16 sps:$4 sm:$0xff]   ;;  %v5790_v37 = vld [vmem:[%s6661_s11 + $0xc] ss:$16 sps:$4 sm:$0xff]   ;;  %v5795_v11 = vld [vmem:[%s6661_s11 + $0x8] ss:$16 sps:$4 sm:$0xff]  }
 0x87c   :  { %4370 = vpow2.f32 %v3807_v52  ;;  %v5802_v9 = vld [vmem:[%s6661_s11 + $0x24] ss:$16 sps:$4 sm:$0xff]   ;;  %v5807_v26 = vld [vmem:[%s6661_s11 + $0x2c] ss:$16 sps:$4 sm:$0xff]   ;;  %v5813_v61 = vld [vmem:[%s6661_s11 + $0x20] ss:$16 sps:$4 sm:$0xff]  }
 0x87d   :  { %4372 = vtanh.f32 %v1828_v40  ;;  %v4210_v40 = vld [vmem:[%s6660_s10 + $0xe4] ss:$16 sps:$4 sm:$0xff]   ;;  %v5818_v62 = vld [vmem:[%s6661_s11 + $0x28] ss:$16 sps:$4 sm:$0xff]   ;;  %v5831_v63 = vld [vmem:[%s6661_s11 + $0x4c] ss:$16 sps:$4 sm:$0xff]  }
 0x87e   :  { %v5826_v50 = vld [vmem:[%s6661_s11 + $0x44] ss:$16 sps:$4 sm:$0xff]   ;;  %v5837_v51 = vld [vmem:[%s6661_s11 + $0x40] ss:$16 sps:$4 sm:$0xff]   ;;  %v5842_v1 = vld [vmem:[%s6661_s11 + $0x48] ss:$16 sps:$4 sm:$0xff]  }
 0x87f   :  { %v5850_v52 = vld [vmem:[%s6661_s11 + $0x64] ss:$16 sps:$4 sm:$0xff]  }
 0x884   :  { %v4367_v2 = vpop.eup %4366 }
 0x885   :  { %v4369_v53 = vpop.eup %4368  ;;  %v1833_v3 = vadd.f32 1.0, %v4367_v2  ;;  %v5855_v2 = vld [vmem:[%s6661_s11 + $0x60] ss:$16 sps:$4 sm:$0xff]  }
 0x886   :  { %v1839_v54 = vadd.f32 1.0, %v4369_v53  ;;  %v4371_v5 = vpop.eup %4370  ;;  %v5860_v53 = vld [vmem:[%s6661_s11 + $0x6c] ss:$16 sps:$4 sm:$0xff]  }
 0x887   :  { %4374 = vrcp.f32 %v1833_v3  ;;  %v4373_v55 = vpop.eup %4372  ;;  %v1846_v32 = vadd.f32 1.0, %v4371_v5  ;;  %v5866_v3 = vld [vmem:[%s6661_s11 + $0x68] ss:$16 sps:$4 sm:$0xff]   ;;  %v5879_v5 = vld [vmem:[%s6661_s11 + $0x8c] ss:$16 sps:$4 sm:$0xff]  }
 0x888   :  { %4376 = vrcp.f32 %v1839_v54  ;;  %v5874_v54 = vld [vmem:[%s6661_s11 + $0x84] ss:$16 sps:$4 sm:$0xff]  }
 0x889   :  { %4378 = vrcp.f32 %v1846_v32  ;;  %v5908_v32 = vld [vmem:[%s6661_s11 + $0xac] ss:$16 sps:$4 sm:$0xff]  }
 0x891   :  { %v4375_v6 = vpop.eup %4374 }
 0x892   :  { %v4377_v56 = vpop.eup %4376  ;;  %v1850_v31 = vmul.f32 %v4375_v6, %v4373_v55  ;;  %v5885_v55 = vld [vmem:[%s6661_s11 + $0x80] ss:$16 sps:$4 sm:$0xff]   ;;  %v5890_v6 = vld [vmem:[%s6661_s11 + $0x88] ss:$16 sps:$4 sm:$0xff]  }
 0x893   :  { %v1849_v57 = vmul.f32 %v4377_v56, %v5595_v7  ;;  %v4379_v42 = vpop.eup %4378  ;;  %v4175_v7 = vld [vmem:[%s6660_s10 + $0x28] ss:$16 sps:$4 sm:$0xff]   ;;  %v5898_v56 = vld [vmem:[%s6661_s11 + $0xa4] ss:$16 sps:$4 sm:$0xff]  }
 0x895   :  { %v5665_v58 = vadd.f32 %v1850_v31, %v1849_v57  ;;  %v5903_v31 = vld [vmem:[%s6661_s11 + $0xa0] ss:$16 sps:$4 sm:$0xff]   ;;  %v5914_v57 = vld [vmem:[%s6661_s11 + $0xa8] ss:$16 sps:$4 sm:$0xff]  }
 0x897   :  { %4380 = vtanh.f32 %v5665_v58 }
 0x8a1   :  { %v4381_v23 = vpop.eup %4380 }
 0x8a2   :  { %v5668_v27 = vmul.f32 %v4381_v23, %v4379_v42  ;;  %v5922_v42 = vld [vmem:[%s6661_s11 + $0xc4] ss:$16 sps:$4 sm:$0xff]   ;;  %v5927_v23 = vld [vmem:[%s6661_s11 + $0xcc] ss:$16 sps:$4 sm:$0xff]  }
 0x8a4   :  { %v1858_v24 = vpack.c.bf16 %v5668_v27, %v5668_v27 }
 0x8a6   :  { %1892 = vmatmul.mubr.bf16.vlgmr.msra.gmra.mrb[48].mxu1 %v1858_v24  ;;  %1933 = vmatmul.mubr.bf16.vlgmr.msra.gmra.mrb[56].mxu0 %v1858_v24  ;;  %v5946_v24 = vld [vmem:[%s6661_s11 + $0xe4] ss:$16 sps:$4 sm:$0xff]  }
 0x8a7   :  { %2222 = vmatpush1.bf16.msra.mxu1 %v4166_v28  ;;  %2295 = vmatpush1.bf16.msra.mxu0 %v4169_v33  ;;  %v5933_v28 = vld [vmem:[%s6661_s11 + $0xc0] ss:$16 sps:$4 sm:$0xff]   ;;  %v5938_v33 = vld [vmem:[%s6661_s11 + $0xc8] ss:$16 sps:$4 sm:$0xff]  }
 0x8a8   :  { %2223 = vmatprep.subr.bf16.mxu1 %v4174_v39  ;;  %2296 = vmatprep.subr.bf16.mxu0 %v4177_v45  ;;  %v5951_v39 = vld [vmem:[%s6661_s11 + $0xe0] ss:$16 sps:$4 sm:$0xff]   ;;  %v5956_v45 = vld [vmem:[%s6661_s11 + $0xec] ss:$16 sps:$4 sm:$0xff]  }
 0x8a9   :  { %2253 = vmatprep.mubr.bf16.mxu1 %v6709_v22  ;;  %2326 = vmatprep.mubr.bf16.mxu0 %v6709_v22 }
 0x8ab   :  { %2224 = vmatpush1.bf16.msra.mxu1 %v4172_v44  ;;  %2297 = vmatpush1.bf16.msra.mxu0 %v4175_v7  ;;  %v5962_v44 = vld [vmem:[%s6661_s11 + $0xe8] ss:$16 sps:$4 sm:$0xff]  }
 0x8ac   :  { %2225 = vmatprep.subr.bf16.mxu1 %v4180_v12  ;;  %2298 = vmatprep.subr.bf16.mxu0 %v4183_v16  ;;  %v6729_v16 = vld [vmem:[#allocation24_spill] sm:$0xff] }
 0x8af   :  { %2226 = vmatpush1.bf16.msra.mxu1 %v4178_v48  ;;  %2299 = vmatpush1.bf16.msra.mxu0 %v4181_v17  ;;  %v6730_v17 = vld [vmem:[#allocation25_spill] sm:$0xff] }
 0x8b0   :  { %2227 = vmatprep.subr.bf16.mxu1 %v4186_v29  ;;  %2300 = vmatprep.subr.bf16.mxu0 %v4189_v4 }
 0x8b3   :  { %2228 = vmatpush1.bf16.msra.mxu1 %v4184_v30  ;;  %2301 = vmatpush1.bf16.msra.mxu0 %v4187_v43  ;;  %v6731_v43 = vld [vmem:[#allocation26_spill] sm:$0xff] }
 0x8b4   :  { %2229 = vmatprep.subr.bf16.mxu1 %v4192_v18  ;;  %2302 = vmatprep.subr.bf16.mxu0 %v4195_v15  ;;  %v6732_v15 = vld [vmem:[#allocation27_spill] sm:$0xff] }
 0x8b7   :  { %2230 = vmatpush1.bf16.msra.mxu1 %v4190_v10  ;;  %2303 = vmatpush1.bf16.msra.mxu0 %v4193_v19 }
 0x8b8   :  { %2231 = vmatprep.subr.bf16.mxu1 %v4198_v20  ;;  %2304 = vmatprep.subr.bf16.mxu0 %v4201_v8 }
 0x8bb   :  { %2232 = vmatpush1.bf16.msra.mxu1 %v4196_v14  ;;  %2305 = vmatpush1.bf16.msra.mxu0 %v4199_v0 }
 0x8bc   :  { %2233 = vmatprep.subr.bf16.mxu1 %v4204_v34  ;;  %2306 = vmatprep.subr.bf16.mxu0 %v4207_v35 }
 0x8bf   :  { %2234 = vmatpush1.bf16.msra.mxu1 %v4202_v36  ;;  %2307 = vmatpush1.bf16.msra.mxu0 %v4205_v38 }
 0x8c0   :  { %2235 = vmatprep.subr.bf16.mxu1 %v4210_v40  ;;  %2308 = vmatprep.subr.bf16.mxu0 %v4213_v41 }
 0x8c3   :  { %2236 = vmatpush1.bf16.msra.mxu1 %v4208_v46  ;;  %2309 = vmatpush1.bf16.msra.mxu0 %v4211_v47 }
 0x8c4   :  { %2563 = vmatprep.subr.bf16.mxu1 %v5779_v13  ;;  %2604 = vmatprep.subr.bf16.mxu0 %v5790_v37 }
 0x8c6   :  { %2254 = vmatmul.mubr.bf16.vlgmr.msra.gmra.mrb[52].mxu1 %v1971_v49  ;;  %2327 = vmatmul.mubr.bf16.vlgmr.msra.gmra.mrb[60].mxu0 %v1971_v49 }
 0x8c7   :  { %2263 = vmatprep.mubr.bf16.mxu1 %v6709_v22  ;;  %2336 = vmatprep.mubr.bf16.mxu0 %v6709_v22 }
 0x8c8   :  { %2564 = vmatpush1.bf16.msra.mxu1 %v5784_v25  ;;  %2605 = vmatpush1.bf16.msra.mxu0 %v5795_v11 }
 0x8c9   :  { %2565 = vmatprep.subr.bf16.mxu1 %v5802_v9  ;;  %2606 = vmatprep.subr.bf16.mxu0 %v5807_v26 }
 0x8cc   :  { %2566 = vmatpush1.bf16.msra.mxu1 %v5813_v61  ;;  %2607 = vmatpush1.bf16.msra.mxu0 %v5818_v62 }
 0x8cd   :  { %2567 = vmatprep.subr.bf16.mxu1 %v5826_v50  ;;  %2608 = vmatprep.subr.bf16.mxu0 %v5831_v63 }
 0x8ce   :  { %2264 = vmatmul.mubr.bf16.gmra.mrb[56].mxu1 %v1972_v59  ;;  %2337 = vmatmul.mubr.bf16.gmra.mrb[64].mxu0 %v1972_v59 }
 0x8cf   :  { %2273 = vmatprep.mubr.bf16.mxu1 %v6709_v22  ;;  %2346 = vmatprep.mubr.bf16.mxu0 %v6709_v22 }
 0x8d0   :  { %2568 = vmatpush1.bf16.msra.mxu1 %v5837_v51  ;;  %2609 = vmatpush1.bf16.msra.mxu0 %v5842_v1 }
 0x8d1   :  { %2569 = vmatprep.subr.bf16.mxu1 %v5850_v52  ;;  %2610 = vmatprep.subr.bf16.mxu0 %v5860_v53 }
 0x8d4   :  { %2570 = vmatpush1.bf16.msra.mxu1 %v5855_v2  ;;  %2611 = vmatpush1.bf16.msra.mxu0 %v5866_v3 }
 0x8d5   :  { %2571 = vmatprep.subr.bf16.mxu1 %v5874_v54  ;;  %2612 = vmatprep.subr.bf16.mxu0 %v5879_v5 }
 0x8d6   :  { %2274 = vmatmul.mubr.bf16.gmra.mrb[60].mxu1 %v1973_v60  ;;  %2347 = vmatmul.mubr.bf16.gmra.mrb[68].mxu0 %v1973_v60 }
 0x8d7   :  { %2283 = vmatprep.mubr.bf16.mxu1 %v6709_v22  ;;  %2356 = vmatprep.mubr.bf16.mxu0 %v6709_v22 }
 0x8d8   :  { %2572 = vmatpush1.bf16.msra.mxu1 %v5885_v55  ;;  %2613 = vmatpush1.bf16.msra.mxu0 %v5890_v6 }
 0x8d9   :  { %2573 = vmatprep.subr.bf16.mxu1 %v5898_v56  ;;  %2614 = vmatprep.subr.bf16.mxu0 %v5908_v32 }
 0x8dc   :  { %2574 = vmatpush1.bf16.msra.mxu1 %v5903_v31  ;;  %2615 = vmatpush1.bf16.msra.mxu0 %v5914_v57 }
 0x8dd   :  { %2575 = vmatprep.subr.bf16.mxu1 %v5922_v42  ;;  %2616 = vmatprep.subr.bf16.mxu0 %v5927_v23 }
 0x8e0   :  { %2576 = vmatpush1.bf16.msra.mxu1 %v5933_v28  ;;  %2617 = vmatpush1.bf16.msra.mxu0 %v5938_v33 }
 0x8e1   :  { %2577 = vmatprep.subr.bf16.mxu1 %v5946_v24  ;;  %2618 = vmatprep.subr.bf16.mxu0 %v5956_v45 }
 0x8e4   :  { %2578 = vmatpush1.bf16.msra.mxu1 %v5951_v39  ;;  %2619 = vmatpush1.bf16.msra.mxu0 %v5962_v44 }
 0x8e5   :  { %2678 = vmatprep.subr.bf16.mxu1 %v5779_v13  ;;  %2719 = vmatprep.subr.bf16.mxu0 %v5790_v37 }
 0x979   :  { %v1893_v7 = vpop.f32.mrb[48].mxu1  ;;  %v1934_v12 = vpop.f32.mrb[56].mxu0 }
 0x97a   :  { %v1941_v48 = vadd.f32 %v1893_v7, %v6729_v16  ;;  %v1943_v29 = vadd.f32 %v1934_v12, %v6730_v17  ;;  %v1895_v4 = vpop.f32.mrb[49].mxu1  ;;  %v1936_v30 = vpop.f32.mrb[57].mxu0 }
 0x97b   :  { %v1942_v18 = vadd.f32 %v1895_v4, %v6731_v43  ;;  %v1944_v10 = vadd.f32 %v1936_v30, %v6732_v15  ;;  %v1897_v19 = vpop.f32.mrb[50].mxu1  ;;  %v1938_v20 = vpop.f32.mrb[58].mxu0 }
 0x97c   :  { %v3808_v8 = vmul.f32 -1.442695, %v1941_v48  ;;  %v1898_v14 = vpop.f32.mrb[51].mxu1  ;;  %v1939_v0 = vpop.f32.mrb[59].mxu0 }
 0x97d   :  { %v3809_v34 = vmul.f32 -1.442695, %v1942_v18  ;;  %v3810_v35 = vmul.f32 -1.442695, %v1944_v10 }
 0x97e   :  { %4382 = vpow2.f32 %v3808_v8 }
 0x97f   :  { %4384 = vpow2.f32 %v3809_v34 }
 0x980   :  { %4386 = vpow2.f32 %v3810_v35 }
 0x981   :  { %4388 = vtanh.f32 %v1943_v29 }
 0x988   :  { %v4383_v36 = vpop.eup %4382 }
 0x989   :  { %v4385_v38 = vpop.eup %4384  ;;  %v1948_v40 = vadd.f32 1.0, %v4383_v36 }
 0x98a   :  { %v1954_v41 = vadd.f32 1.0, %v4385_v38  ;;  %v4387_v46 = vpop.eup %4386 }
 0x98b   :  { %4390 = vrcp.f32 %v1948_v40  ;;  %v4389_v47 = vpop.eup %4388  ;;  %v1961_v7 = vadd.f32 1.0, %v4387_v46 }
 0x98c   :  { %4392 = vrcp.f32 %v1954_v41 }
 0x98d   :  { %4394 = vrcp.f32 %v1961_v7 }
 0x995   :  { %v4391_v49 = vpop.eup %4390 }
 0x996   :  { %v4393_v59 = vpop.eup %4392  ;;  %v1965_v60 = vmul.f32 %v4391_v49, %v4389_v47 }
 0x997   :  { %v1964_v12 = vmul.f32 %v4393_v59, %v5665_v58  ;;  %v4395_v0 = vpop.eup %4394 }
 0x999   :  { %v1966_v16 = vadd.f32 %v1965_v60, %v1964_v12  ;;  %v5975_v48 = vpop.f32.mrb[52].mxu1  ;;  %v5977_v17 = vpop.f32.mrb[60].mxu0  ;;  %v6749_v12 = vld [vmem:[#allocation3_spill] sm:$0xff] }
 0x99a   :  { %v5979_v4 = vpop.f32.mrb[53].mxu1  ;;  %v5981_v29 = vpop.f32.mrb[61].mxu0 }
 0x99b   :  { %1970 = vst [vmem:[%s6662_s17] sm:$0xff] %v1966_v16  ;;  %v5986_v30 = vpop.f32.mrb[54].mxu1  ;;  %v5988_v43 = vpop.f32.mrb[62].mxu0  ;;  %4396 = vtanh.f32 %v1966_v16  ;;  %v2039_v16 = vld [vmem:[%s6664_s12] sm:$0xf] }
 0x99c   :  { %v5990_v58 = vpop.f32.mrb[55].mxu1  ;;  %v5992_v18 = vpop.f32.mrb[63].mxu0 }
 0x9a1   :  { %v5994_v15 = vpop.f32.mrb[56].mxu1  ;;  %v5996_v10 = vpop.f32.mrb[64].mxu0 }
 0x9a2   :  { %6733 = vst [vmem:[#allocation5_spill] sm:$0xff] %v5994_v15  ;;  %6734 = vst [vmem:[#allocation6_spill] sm:$0xff] %v5996_v10  ;;  %v5998_v19 = vpop.f32.mrb[57].mxu1  ;;  %v6000_v20 = vpop.f32.mrb[65].mxu0 }
 0x9a3   :  { %6735 = vst [vmem:[#allocation7_spill] sm:$0xff] %v5998_v19  ;;  %6736 = vst [vmem:[#allocation8_spill] sm:$0xff] %v6000_v20  ;;  %v6002_v8 = vpop.f32.mrb[58].mxu1  ;;  %v6004_v14 = vpop.f32.mrb[66].mxu0 }
 0x9a4   :  { %6737 = vst [vmem:[#allocation9_spill] sm:$0xff] %v6002_v8  ;;  %6738 = vst [vmem:[#allocation10_spill] sm:$0xff] %v6004_v14  ;;  %v6006_v34 = vpop.f32.mrb[59].mxu1  ;;  %v6008_v35 = vpop.f32.mrb[67].mxu0 }
 0x9a5   :  { %6739 = vst [vmem:[#allocation11_spill] sm:$0xff] %v6006_v34  ;;  %6740 = vst [vmem:[#allocation12_spill] sm:$0xff] %v6008_v35  ;;  %v4397_v36 = vpop.eup %4396 }
 0x9a6   :  { %v1968_v38 = vmul.f32 %v4397_v36, %v4395_v0 }
 0x9a8   :  { %1969 = vst [vmem:[%s6663_s16] sm:$0xff] %v1968_v38  ;;  %v1974_v40 = vpack.c.bf16 %v1968_v38, %v5668_v27 }
 0x9a9   :  { %v6014_v41 = vpop.f32.mrb[60].mxu1  ;;  %v6016_v46 = vpop.f32.mrb[68].mxu0 }
 0x9aa   :  { %6741 = vst [vmem:[#allocation13_spill] sm:$0xff] %v6014_v41  ;;  %6742 = vst [vmem:[#allocation14_spill] sm:$0xff] %v6016_v46  ;;  %v6018_v47 = vpop.f32.mrb[61].mxu1  ;;  %v6020_v49 = vpop.f32.mrb[69].mxu0  ;;  %2284 = vmatmul.mubr.bf16.gmra.mrb[64].mxu1 %v1974_v40  ;;  %2357 = vmatmul.mubr.bf16.gmra.mrb[72].mxu0 %v1974_v40 }
 0x9ab   :  { %6743 = vst [vmem:[#allocation15_spill] sm:$0xff] %v6018_v47  ;;  %6744 = vst [vmem:[#allocation16_spill] sm:$0xff] %v6020_v49  ;;  %v6022_v59 = vpop.f32.mrb[62].mxu1  ;;  %v6024_v60 = vpop.f32.mrb[70].mxu0  ;;  %2595 = vmatprep.mubr.bf16.mxu1 %v6709_v22  ;;  %2636 = vmatprep.mubr.bf16.mxu0 %v6709_v22 }
 0x9ac   :  { %6745 = vst [vmem:[#allocation17_spill] sm:$0xff] %v6022_v59  ;;  %6746 = vst [vmem:[#allocation18_spill] sm:$0xff] %v6024_v60  ;;  %v6028_v7 = vpop.f32.mrb[63].mxu1  ;;  %v6030_v27 = vpop.f32.mrb[71].mxu0 }
 0x9ad   :  { %6747 = vst [vmem:[#allocation19_spill] sm:$0xff] %v6028_v7  ;;  %6748 = vst [vmem:[#allocation20_spill] sm:$0xff] %v6030_v27  ;;  %v6756_v7 = vld [vmem:[#allocation4_spill] sm:$0xff] }
 0x9ae   :  { %v6757_v60 = vsub.s32 0, %v6756_v7  ;;  %v6758_v49 = vsub.s32 2, %v6756_v7 }
 0x9b0   :  { %v6085_v59 = vrot.slane %v2039_v16, %v6757_v60  ;;  %v6089_v47 = vrot.slane %v2039_v16, %v6758_v49 }
 0x9b2   :  { %2596 = vmatmul.mubr.bf16.vlgmr.msra.gmra.mrb[68].mxu1 %v6749_v12  ;;  %2637 = vmatmul.mubr.bf16.vlgmr.msra.gmra.mrb[76].mxu0 %v6749_v12  ;;  %v2256_v60 = vadd.f32 %v5975_v48, %v6085_v59 }
 0x9b3   :  { %2679 = vmatpush1.bf16.msra.mxu1 %v5784_v25  ;;  %2720 = vmatpush1.bf16.msra.mxu0 %v5795_v11 }
 0x9b4   :  { %2680 = vmatprep.subr.bf16.mxu1 %v5802_v9  ;;  %2721 = vmatprep.subr.bf16.mxu0 %v5807_v26 }
 0x9b5   :  { %2710 = vmatprep.mubr.bf16.mxu1 %v6709_v22  ;;  %2751 = vmatprep.mubr.bf16.mxu0 %v6709_v22 }
 0x9b7   :  { %2681 = vmatpush1.bf16.msra.mxu1 %v5813_v61  ;;  %2722 = vmatpush1.bf16.msra.mxu0 %v5818_v62 }
 0x9b8   :  { %2682 = vmatprep.subr.bf16.mxu1 %v5826_v50  ;;  %2723 = vmatprep.subr.bf16.mxu0 %v5831_v63 }
 0x9bb   :  { %2683 = vmatpush1.bf16.msra.mxu1 %v5837_v51  ;;  %2724 = vmatpush1.bf16.msra.mxu0 %v5842_v1 }
 0x9bc   :  { %2684 = vmatprep.subr.bf16.mxu1 %v5850_v52  ;;  %2725 = vmatprep.subr.bf16.mxu0 %v5860_v53 }
 0x9bf   :  { %2685 = vmatpush1.bf16.msra.mxu1 %v5855_v2  ;;  %2726 = vmatpush1.bf16.msra.mxu0 %v5866_v3 }
 0x9c0   :  { %2686 = vmatprep.subr.bf16.mxu1 %v5874_v54  ;;  %2727 = vmatprep.subr.bf16.mxu0 %v5879_v5 }
 0x9c3   :  { %2687 = vmatpush1.bf16.msra.mxu1 %v5885_v55  ;;  %2728 = vmatpush1.bf16.msra.mxu0 %v5890_v6 }
 0x9c4   :  { %2688 = vmatprep.subr.bf16.mxu1 %v5898_v56  ;;  %2729 = vmatprep.subr.bf16.mxu0 %v5908_v32 }
 0x9c7   :  { %2689 = vmatpush1.bf16.msra.mxu1 %v5903_v31  ;;  %2730 = vmatpush1.bf16.msra.mxu0 %v5914_v57 }
 0x9c8   :  { %2690 = vmatprep.subr.bf16.mxu1 %v5922_v42  ;;  %2731 = vmatprep.subr.bf16.mxu0 %v5927_v23 }
 0x9cb   :  { %2691 = vmatpush1.bf16.msra.mxu1 %v5933_v28  ;;  %2732 = vmatpush1.bf16.msra.mxu0 %v5938_v33 }
 0x9cc   :  { %2692 = vmatprep.subr.bf16.mxu1 %v5946_v24  ;;  %2733 = vmatprep.subr.bf16.mxu0 %v5956_v45 }
 0x9cf   :  { %2693 = vmatpush1.bf16.msra.mxu1 %v5951_v39  ;;  %2734 = vmatpush1.bf16.msra.mxu0 %v5962_v44 }
 0x9d0   :  { %2793 = vmatprep.subr.bf16.mxu1 %v5779_v13  ;;  %2834 = vmatprep.subr.bf16.mxu0 %v5790_v37 }
 0xa7d   :  { %v6071_v0 = vpop.f32.mrb[64].mxu1  ;;  %v6073_v36 = vpop.f32.mrb[72].mxu0 }
 0xa7e   :  { %6750 = vst [vmem:[#allocation21_spill] sm:$0xff] %v6071_v0  ;;  %6751 = vst [vmem:[#allocation22_spill] sm:$0xff] %v6073_v36  ;;  %v6075_v38 = vpop.f32.mrb[65].mxu1  ;;  %v6077_v40 = vpop.f32.mrb[73].mxu0 }
 0xa7f   :  { %6752 = vst [vmem:[#allocation23_spill] sm:$0xff] %v6075_v38  ;;  %6753 = vst [vmem:[#allocation24_spill] sm:$0xff] %v6077_v40  ;;  %v6079_v12 = vpop.f32.mrb[66].mxu1  ;;  %v6081_v27 = vpop.f32.mrb[74].mxu0  ;;  %v6761_v38 = vsub.s32 1, %v6756_v7 }
 0xa80   :  { %6754 = vst [vmem:[#allocation25_spill] sm:$0xff] %v6079_v12  ;;  %6755 = vst [vmem:[#allocation26_spill] sm:$0xff] %v6081_v27  ;;  %v6091_v46 = vpop.f32.mrb[67].mxu1  ;;  %v6093_v0 = vpop.f32.mrb[75].mxu0  ;;  %v6762_v12 = vsub.s32 3, %v6756_v7  ;;  %v2329_v27 = vadd.f32 %v5977_v17, %v6089_v47 }
 0xa81   :  { %6759 = vst [vmem:[#allocation27_spill] sm:$0xff] %v6091_v46  ;;  %6760 = vst [vmem:[#allocation3_spill] sm:$0xff] %v6093_v0  ;;  %v6097_v36 = vrot.slane %v2039_v16, %v6761_v38 }
 0xa82   :  { %v6101_v40 = vrot.slane %v2039_v16, %v6762_v12 }
 0xa83   :  { %v2258_v49 = vadd.f32 %v5979_v4, %v6097_v36 }
 0xa84   :  { %v2331_v0 = vadd.f32 %v5981_v29, %v6101_v40 }
 0xa85   :  { %v2597_v46 = vpop.f32.mrb[68].mxu1  ;;  %v2638_v41 = vpop.f32.mrb[76].mxu0 }
 0xa86   :  { %v2645_v38 = vadd.f32 %v2597_v46, %v2256_v60  ;;  %v2647_v35 = vadd.f32 %v2638_v41, %v2329_v27  ;;  %v2599_v34 = vpop.f32.mrb[69].mxu1  ;;  %v2640_v7 = vpop.f32.mrb[77].mxu0 }
 0xa87   :  { %v2646_v16 = vadd.f32 %v2599_v34, %v2258_v49  ;;  %v2648_v12 = vadd.f32 %v2640_v7, %v2331_v0  ;;  %v2601_v14 = vpop.f32.mrb[70].mxu1  ;;  %v2642_v8 = vpop.f32.mrb[78].mxu0  ;;  %v2335_v7 = vadd.f32 %v5992_v18, %v6101_v40 }
 0xa88   :  { %v3875_v48 = vmul.f32 -1.442695, %v2645_v38  ;;  %v2602_v20 = vpop.f32.mrb[71].mxu1  ;;  %v2643_v19 = vpop.f32.mrb[79].mxu0  ;;  %v2262_v38 = vadd.f32 %v5990_v58, %v6097_v36 }
 0xa89   :  { %v3876_v17 = vmul.f32 -1.442695, %v2646_v16  ;;  %v3877_v4 = vmul.f32 -1.442695, %v2648_v12 }
 0xa8a   :  { %4398 = vpow2.f32 %v3875_v48 }
 0xa8b   :  { %4400 = vpow2.f32 %v3876_v17 }
 0xa8c   :  { %4402 = vpow2.f32 %v3877_v4 }
 0xa8d   :  { %4404 = vtanh.f32 %v2647_v35  ;;  %v2333_v35 = vadd.f32 %v5988_v43, %v6089_v47 }
 0xa94   :  { %v4399_v10 = vpop.eup %4398 }
 0xa95   :  { %v4401_v15 = vpop.eup %4400  ;;  %v2652_v29 = vadd.f32 1.0, %v4399_v10 }
 0xa96   :  { %v2658_v46 = vadd.f32 1.0, %v4401_v15  ;;  %v4403_v41 = vpop.eup %4402 }
 0xa97   :  { %4406 = vrcp.f32 %v2652_v29  ;;  %v4405_v34 = vpop.eup %4404  ;;  %v2665_v0 = vadd.f32 1.0, %v4403_v41 }
 0xa98   :  { %4408 = vrcp.f32 %v2658_v46 }
 0xa99   :  { %4410 = vrcp.f32 %v2665_v0 }
 0xaa1   :  { %v4407_v27 = vpop.eup %4406 }
 0xaa2   :  { %v4409_v14 = vpop.eup %4408  ;;  %v2669_v8 = vmul.f32 %v4407_v27, %v4405_v34 }
 0xaa3   :  { %v2668_v19 = vmul.f32 %v4409_v14, %v5252_v21  ;;  %v4411_v60 = vpop.eup %4410  ;;  %v2260_v21 = vadd.f32 %v5986_v30, %v6085_v59 }
 0xaa5   :  { %v6112_v20 = vadd.f32 %v2669_v8, %v2668_v19 }
 0xaa7   :  { %4412 = vtanh.f32 %v6112_v20 }
 0xab1   :  { %v4413_v10 = vpop.eup %4412 }
 0xab2   :  { %v6115_v49 = vmul.f32 %v4413_v10, %v4411_v60 }
 0xab4   :  { %v2677_v15 = vpack.c.bf16 %v6115_v49, %v6115_v49 }
 0xab6   :  { %2711 = vmatmul.mubr.bf16.vlgmr.msra.gmra.mrb[72].mxu1 %v2677_v15  ;;  %2752 = vmatmul.mubr.bf16.vlgmr.msra.gmra.mrb[80].mxu0 %v2677_v15 }
 0xab7   :  { %2794 = vmatpush1.bf16.msra.mxu1 %v5784_v25  ;;  %2835 = vmatpush1.bf16.msra.mxu0 %v5795_v11 }
 0xab8   :  { %2795 = vmatprep.subr.bf16.mxu1 %v5802_v9  ;;  %2836 = vmatprep.subr.bf16.mxu0 %v5807_v26 }
 0xab9   :  { %2825 = vmatprep.mubr.bf16.mxu1 %v6709_v22  ;;  %2866 = vmatprep.mubr.bf16.mxu0 %v6709_v22 }
 0xabb   :  { %2796 = vmatpush1.bf16.msra.mxu1 %v5813_v61  ;;  %2837 = vmatpush1.bf16.msra.mxu0 %v5818_v62 }
 0xabc   :  { %2797 = vmatprep.subr.bf16.mxu1 %v5826_v50  ;;  %2838 = vmatprep.subr.bf16.mxu0 %v5831_v63 }
 0xabf   :  { %2798 = vmatpush1.bf16.msra.mxu1 %v5837_v51  ;;  %2839 = vmatpush1.bf16.msra.mxu0 %v5842_v1 }
 0xac0   :  { %2799 = vmatprep.subr.bf16.mxu1 %v5850_v52  ;;  %2840 = vmatprep.subr.bf16.mxu0 %v5860_v53 }
 0xac3   :  { %2800 = vmatpush1.bf16.msra.mxu1 %v5855_v2  ;;  %2841 = vmatpush1.bf16.msra.mxu0 %v5866_v3 }
 0xac4   :  { %2801 = vmatprep.subr.bf16.mxu1 %v5874_v54  ;;  %2842 = vmatprep.subr.bf16.mxu0 %v5879_v5 }
 0xac7   :  { %2802 = vmatpush1.bf16.msra.mxu1 %v5885_v55  ;;  %2843 = vmatpush1.bf16.msra.mxu0 %v5890_v6 }
 0xac8   :  { %2803 = vmatprep.subr.bf16.mxu1 %v5898_v56  ;;  %2844 = vmatprep.subr.bf16.mxu0 %v5908_v32 }
 0xacb   :  { %2804 = vmatpush1.bf16.msra.mxu1 %v5903_v31  ;;  %2845 = vmatpush1.bf16.msra.mxu0 %v5914_v57 }
 0xacc   :  { %2805 = vmatprep.subr.bf16.mxu1 %v5922_v42  ;;  %2846 = vmatprep.subr.bf16.mxu0 %v5927_v23 }
 0xacf   :  { %2806 = vmatpush1.bf16.msra.mxu1 %v5933_v28  ;;  %2847 = vmatpush1.bf16.msra.mxu0 %v5938_v33 }
 0xad0   :  { %2807 = vmatprep.subr.bf16.mxu1 %v5946_v24  ;;  %2848 = vmatprep.subr.bf16.mxu0 %v5956_v45 }
 0xad3   :  { %2808 = vmatpush1.bf16.msra.mxu1 %v5951_v39  ;;  %2849 = vmatpush1.bf16.msra.mxu0 %v5962_v44 }
 0xad4   :  { %2908 = vmatprep.subr.bf16.mxu1 %v5779_v13  ;;  %2949 = vmatprep.subr.bf16.mxu0 %v5790_v37 }
 0xb89   :  { %v2712_v16 = vpop.f32.mrb[72].mxu1  ;;  %v2753_v12 = vpop.f32.mrb[80].mxu0 }
 0xb8a   :  { %v2760_v48 = vadd.f32 %v2712_v16, %v2260_v21  ;;  %v2762_v17 = vadd.f32 %v2753_v12, %v2333_v35  ;;  %v2714_v4 = vpop.f32.mrb[73].mxu1  ;;  %v2755_v29 = vpop.f32.mrb[81].mxu0 }
 0xb8b   :  { %v2761_v46 = vadd.f32 %v2714_v4, %v2262_v38  ;;  %v2763_v41 = vadd.f32 %v2755_v29, %v2335_v7  ;;  %v2716_v34 = vpop.f32.mrb[74].mxu1  ;;  %v2757_v27 = vpop.f32.mrb[82].mxu0 }
 0xb8c   :  { %v3878_v30 = vmul.f32 -1.442695, %v2760_v48  ;;  %v2717_v14 = vpop.f32.mrb[75].mxu1  ;;  %v2758_v8 = vpop.f32.mrb[83].mxu0  ;;  %v6765_v27 = vld [vmem:[#allocation7_spill] sm:$0xff] }
 0xb8d   :  { %v3879_v43 = vmul.f32 -1.442695, %v2761_v46  ;;  %v3880_v58 = vmul.f32 -1.442695, %v2763_v41  ;;  %v6764_v41 = vld [vmem:[#allocation6_spill] sm:$0xff]  ;;  %v6766_v14 = vld [vmem:[#allocation8_spill] sm:$0xff] }
 0xb8e   :  { %4414 = vpow2.f32 %v3878_v30  ;;  %v2339_v34 = vadd.f32 %v6764_v41, %v6089_v47  ;;  %v2268_v30 = vadd.f32 %v6765_v27, %v6097_v36  ;;  %v2341_v8 = vadd.f32 %v6766_v14, %v6101_v40 }
 0xb8f   :  { %4416 = vpow2.f32 %v3879_v43 }
 0xb90   :  { %4418 = vpow2.f32 %v3880_v58 }
 0xb91   :  { %4420 = vtanh.f32 %v2762_v17 }
 0xb98   :  { %v4415_v0 = vpop.eup %4414 }
 0xb99   :  { %v4417_v19 = vpop.eup %4416  ;;  %v2767_v18 = vadd.f32 1.0, %v4415_v0 }
 0xb9a   :  { %v2773_v60 = vadd.f32 1.0, %v4417_v19  ;;  %v4419_v10 = vpop.eup %4418 }
 0xb9b   :  { %4422 = vrcp.f32 %v2767_v18  ;;  %v4421_v15 = vpop.eup %4420  ;;  %v2780_v7 = vadd.f32 1.0, %v4419_v10 }
 0xb9c   :  { %4424 = vrcp.f32 %v2773_v60 }
 0xb9d   :  { %4426 = vrcp.f32 %v2780_v7 }
 0xba5   :  { %v4423_v21 = vpop.eup %4422 }
 0xba6   :  { %v4425_v35 = vpop.eup %4424  ;;  %v2784_v38 = vmul.f32 %v4423_v21, %v4421_v15 }
 0xba7   :  { %v2783_v16 = vmul.f32 %v4425_v35, %v6112_v20  ;;  %v4427_v48 = vpop.eup %4426  ;;  %v6763_v20 = vld [vmem:[#allocation5_spill] sm:$0xff] }
 0xba8   :  { %v2266_v46 = vadd.f32 %v6763_v20, %v6085_v59 }
 0xba9   :  { %v6162_v12 = vadd.f32 %v2784_v38, %v2783_v16 }
 0xbab   :  { %4428 = vtanh.f32 %v6162_v12 }
 0xbb5   :  { %v4429_v4 = vpop.eup %4428 }
 0xbb6   :  { %v6165_v29 = vmul.f32 %v4429_v4, %v4427_v48 }
 0xbb8   :  { %v2792_v17 = vpack.c.bf16 %v6165_v29, %v6165_v29 }
 0xbba   :  { %2826 = vmatmul.mubr.bf16.vlgmr.msra.gmra.mrb[76].mxu1 %v2792_v17  ;;  %2867 = vmatmul.mubr.bf16.vlgmr.msra.gmra.mrb[84].mxu0 %v2792_v17 }
 0xbbb   :  { %2909 = vmatpush1.bf16.msra.mxu1 %v5784_v25  ;;  %2950 = vmatpush1.bf16.msra.mxu0 %v5795_v11 }
 0xbbc   :  { %2910 = vmatprep.subr.bf16.mxu1 %v5802_v9  ;;  %2951 = vmatprep.subr.bf16.mxu0 %v5807_v26 }
 0xbbd   :  { %2940 = vmatprep.mubr.bf16.mxu1 %v6709_v22  ;;  %2981 = vmatprep.mubr.bf16.mxu0 %v6709_v22 }
 0xbbf   :  { %2911 = vmatpush1.bf16.msra.mxu1 %v5813_v61  ;;  %2952 = vmatpush1.bf16.msra.mxu0 %v5818_v62 }
 0xbc0   :  { %2912 = vmatprep.subr.bf16.mxu1 %v5826_v50  ;;  %2953 = vmatprep.subr.bf16.mxu0 %v5831_v63 }
 0xbc3   :  { %2913 = vmatpush1.bf16.msra.mxu1 %v5837_v51  ;;  %2954 = vmatpush1.bf16.msra.mxu0 %v5842_v1 }
 0xbc4   :  { %2914 = vmatprep.subr.bf16.mxu1 %v5850_v52  ;;  %2955 = vmatprep.subr.bf16.mxu0 %v5860_v53 }
 0xbc7   :  { %2915 = vmatpush1.bf16.msra.mxu1 %v5855_v2  ;;  %2956 = vmatpush1.bf16.msra.mxu0 %v5866_v3 }
 0xbc8   :  { %2916 = vmatprep.subr.bf16.mxu1 %v5874_v54  ;;  %2957 = vmatprep.subr.bf16.mxu0 %v5879_v5 }
 0xbcb   :  { %2917 = vmatpush1.bf16.msra.mxu1 %v5885_v55  ;;  %2958 = vmatpush1.bf16.msra.mxu0 %v5890_v6 }
 0xbcc   :  { %2918 = vmatprep.subr.bf16.mxu1 %v5898_v56  ;;  %2959 = vmatprep.subr.bf16.mxu0 %v5908_v32 }
 0xbcf   :  { %2919 = vmatpush1.bf16.msra.mxu1 %v5903_v31  ;;  %2960 = vmatpush1.bf16.msra.mxu0 %v5914_v57 }
 0xbd0   :  { %2920 = vmatprep.subr.bf16.mxu1 %v5922_v42  ;;  %2961 = vmatprep.subr.bf16.mxu0 %v5927_v23 }
 0xbd3   :  { %2921 = vmatpush1.bf16.msra.mxu1 %v5933_v28  ;;  %2962 = vmatpush1.bf16.msra.mxu0 %v5938_v33 }
 0xbd4   :  { %2922 = vmatprep.subr.bf16.mxu1 %v5946_v24  ;;  %2963 = vmatprep.subr.bf16.mxu0 %v5956_v45 }
 0xbd7   :  { %2923 = vmatpush1.bf16.msra.mxu1 %v5951_v39  ;;  %2964 = vmatpush1.bf16.msra.mxu0 %v5962_v44 }
 0xbd8   :  { %3023 = vmatprep.subr.bf16.mxu1 %v5779_v13  ;;  %3064 = vmatprep.subr.bf16.mxu0 %v5790_v37 }
 0xc8d   :  { %v2827_v43 = vpop.f32.mrb[76].mxu1  ;;  %v2868_v58 = vpop.f32.mrb[84].mxu0 }
 0xc8e   :  { %v2875_v0 = vadd.f32 %v2827_v43, %v2266_v46  ;;  %v2877_v19 = vadd.f32 %v2868_v58, %v2339_v34  ;;  %v2829_v18 = vpop.f32.mrb[77].mxu1  ;;  %v2870_v60 = vpop.f32.mrb[85].mxu0 }
 0xc8f   :  { %v2876_v10 = vadd.f32 %v2829_v18, %v2268_v30  ;;  %v2878_v15 = vadd.f32 %v2870_v60, %v2341_v8  ;;  %v2831_v21 = vpop.f32.mrb[78].mxu1  ;;  %v2872_v35 = vpop.f32.mrb[86].mxu0 }
 0xc90   :  { %v3881_v38 = vmul.f32 -1.442695, %v2875_v0  ;;  %v2832_v7 = vpop.f32.mrb[79].mxu1  ;;  %v2873_v16 = vpop.f32.mrb[87].mxu0  ;;  %v6768_v21 = vld [vmem:[#allocation10_spill] sm:$0xff] }
 0xc91   :  { %v3882_v48 = vmul.f32 -1.442695, %v2876_v10  ;;  %v3883_v4 = vmul.f32 -1.442695, %v2878_v15  ;;  %v2343_v35 = vadd.f32 %v6768_v21, %v6089_v47  ;;  %v6770_v16 = vld [vmem:[#allocation12_spill] sm:$0xff] }
 0xc92   :  { %4430 = vpow2.f32 %v3881_v38  ;;  %v6769_v38 = vld [vmem:[#allocation11_spill] sm:$0xff] }
 0xc93   :  { %4432 = vpow2.f32 %v3882_v48  ;;  %v2272_v7 = vadd.f32 %v6769_v38, %v6097_v36  ;;  %v2345_v48 = vadd.f32 %v6770_v16, %v6101_v40 }
 0xc94   :  { %4434 = vpow2.f32 %v3883_v4 }
 0xc95   :  { %4436 = vtanh.f32 %v2877_v19 }
 0xc9c   :  { %v4431_v17 = vpop.eup %4430 }
 0xc9d   :  { %v4433_v20 = vpop.eup %4432  ;;  %v2882_v41 = vadd.f32 1.0, %v4431_v17 }
 0xc9e   :  { %v2888_v46 = vadd.f32 1.0, %v4433_v20  ;;  %v4435_v34 = vpop.eup %4434 }
 0xc9f   :  { %4438 = vrcp.f32 %v2882_v41  ;;  %v4437_v27 = vpop.eup %4436  ;;  %v2895_v43 = vadd.f32 1.0, %v4435_v34 }
 0xca0   :  { %4440 = vrcp.f32 %v2888_v46 }
 0xca1   :  { %4442 = vrcp.f32 %v2895_v43 }
 0xca9   :  { %v4439_v30 = vpop.eup %4438 }
 0xcaa   :  { %v4441_v14 = vpop.eup %4440  ;;  %v2899_v8 = vmul.f32 %v4439_v30, %v4437_v27 }
 0xcab   :  { %v2898_v58 = vmul.f32 %v4441_v14, %v6162_v12  ;;  %v4443_v18 = vpop.eup %4442  ;;  %v6767_v12 = vld [vmem:[#allocation9_spill] sm:$0xff] }
 0xcac   :  { %v2270_v15 = vadd.f32 %v6767_v12, %v6085_v59 }
 0xcad   :  { %v6212_v0 = vadd.f32 %v2899_v8, %v2898_v58 }
 0xcaf   :  { %4444 = vtanh.f32 %v6212_v0 }
 0xcb9   :  { %v4445_v60 = vpop.eup %4444 }
 0xcba   :  { %v6215_v10 = vmul.f32 %v4445_v60, %v4443_v18 }
 0xcbc   :  { %v2907_v19 = vpack.c.bf16 %v6215_v10, %v6215_v10 }
 0xcbe   :  { %2941 = vmatmul.mubr.bf16.vlgmr.msra.gmra.mrb[80].mxu1 %v2907_v19  ;;  %2982 = vmatmul.mubr.bf16.vlgmr.msra.gmra.mrb[88].mxu0 %v2907_v19 }
 0xcbf   :  { %3024 = vmatpush1.bf16.msra.mxu1 %v5784_v25  ;;  %3065 = vmatpush1.bf16.msra.mxu0 %v5795_v11 }
 0xcc0   :  { %3025 = vmatprep.subr.bf16.mxu1 %v5802_v9  ;;  %3066 = vmatprep.subr.bf16.mxu0 %v5807_v26 }
 0xcc1   :  { %3055 = vmatprep.mubr.bf16.mxu1 %v6709_v22  ;;  %3096 = vmatprep.mubr.bf16.mxu0 %v6709_v22 }
 0xcc3   :  { %3026 = vmatpush1.bf16.msra.mxu1 %v5813_v61  ;;  %3067 = vmatpush1.bf16.msra.mxu0 %v5818_v62 }
 0xcc4   :  { %3027 = vmatprep.subr.bf16.mxu1 %v5826_v50  ;;  %3068 = vmatprep.subr.bf16.mxu0 %v5831_v63 }
 0xcc7   :  { %3028 = vmatpush1.bf16.msra.mxu1 %v5837_v51  ;;  %3069 = vmatpush1.bf16.msra.mxu0 %v5842_v1 }
 0xcc8   :  { %3029 = vmatprep.subr.bf16.mxu1 %v5850_v52  ;;  %3070 = vmatprep.subr.bf16.mxu0 %v5860_v53 }
 0xccb   :  { %3030 = vmatpush1.bf16.msra.mxu1 %v5855_v2  ;;  %3071 = vmatpush1.bf16.msra.mxu0 %v5866_v3 }
 0xccc   :  { %3031 = vmatprep.subr.bf16.mxu1 %v5874_v54  ;;  %3072 = vmatprep.subr.bf16.mxu0 %v5879_v5 }
 0xccf   :  { %3032 = vmatpush1.bf16.msra.mxu1 %v5885_v55  ;;  %3073 = vmatpush1.bf16.msra.mxu0 %v5890_v6 }
 0xcd0   :  { %3033 = vmatprep.subr.bf16.mxu1 %v5898_v56  ;;  %3074 = vmatprep.subr.bf16.mxu0 %v5908_v32 }
 0xcd3   :  { %3034 = vmatpush1.bf16.msra.mxu1 %v5903_v31  ;;  %3075 = vmatpush1.bf16.msra.mxu0 %v5914_v57 }
 0xcd4   :  { %3035 = vmatprep.subr.bf16.mxu1 %v5922_v42  ;;  %3076 = vmatprep.subr.bf16.mxu0 %v5927_v23 }
 0xcd7   :  { %3036 = vmatpush1.bf16.msra.mxu1 %v5933_v28  ;;  %3077 = vmatpush1.bf16.msra.mxu0 %v5938_v33 }
 0xcd8   :  { %3037 = vmatprep.subr.bf16.mxu1 %v5946_v24  ;;  %3078 = vmatprep.subr.bf16.mxu0 %v5956_v45 }
 0xcdb   :  { %3038 = vmatpush1.bf16.msra.mxu1 %v5951_v39  ;;  %3079 = vmatpush1.bf16.msra.mxu0 %v5962_v44 }
 0xcdc   :  { %3138 = vmatprep.subr.bf16.mxu1 %v5779_v13  ;;  %3179 = vmatprep.subr.bf16.mxu0 %v5790_v37 }
 0xd91   :  { %v2942_v4 = vpop.f32.mrb[80].mxu1  ;;  %v2983_v17 = vpop.f32.mrb[88].mxu0 }
 0xd92   :  { %v2990_v20 = vadd.f32 %v2942_v4, %v2270_v15  ;;  %v2992_v41 = vadd.f32 %v2983_v17, %v2343_v35  ;;  %v2944_v46 = vpop.f32.mrb[81].mxu1  ;;  %v2985_v13 = vpop.f32.mrb[89].mxu0 }
 0xd93   :  { %v2991_v34 = vadd.f32 %v2944_v46, %v2272_v7  ;;  %v2993_v37 = vadd.f32 %v2985_v13, %v2345_v48  ;;  %v2946_v27 = vpop.f32.mrb[82].mxu1  ;;  %v2987_v30 = vpop.f32.mrb[90].mxu0 }
 0xd94   :  { %v3884_v14 = vmul.f32 -1.442695, %v2990_v20  ;;  %v2947_v8 = vpop.f32.mrb[83].mxu1  ;;  %v2988_v43 = vpop.f32.mrb[91].mxu0 }
 0xd95   :  { %v3885_v58 = vmul.f32 -1.442695, %v2991_v34  ;;  %v3886_v18 = vmul.f32 -1.442695, %v2993_v37 }
 0xd96   :  { %4446 = vpow2.f32 %v3884_v14 }
 0xd97   :  { %4448 = vpow2.f32 %v3885_v58 }
 0xd98   :  { %4450 = vpow2.f32 %v3886_v18 }
 0xd99   :  { %4452 = vtanh.f32 %v2992_v41 }
 0xda0   :  { %v4447_v60 = vpop.eup %4446 }
 0xda1   :  { %v4449_v19 = vpop.eup %4448  ;;  %v2997_v12 = vadd.f32 1.0, %v4447_v60 }
 0xda2   :  { %v3003_v15 = vadd.f32 1.0, %v4449_v19  ;;  %v4451_v21 = vpop.eup %4450  ;;  %v6332_v19 = vld [vmem:[%s6661_s11] ss:$16 sps:$4 sm:$0xff]  }
 0xda3   :  { %4454 = vrcp.f32 %v2997_v12  ;;  %v4453_v35 = vpop.eup %4452  ;;  %v3010_v48 = vadd.f32 1.0, %v4451_v21  ;;  %v6338_v12 = vld [vmem:[%s6661_s11 + $0x8] ss:$16 sps:$4 sm:$0xff]   ;;  %v6350_v21 = vld [vmem:[%s6661_s11 + $0x2c] ss:$16 sps:$4 sm:$0xff]  }
 0xda4   :  { %4456 = vrcp.f32 %v3003_v15  ;;  %v6344_v15 = vld [vmem:[%s6661_s11 + $0x24] ss:$16 sps:$4 sm:$0xff]  }
 0xda5   :  { %4458 = vrcp.f32 %v3010_v48  ;;  %v6382_v48 = vld [vmem:[%s6661_s11 + $0x40] ss:$16 sps:$4 sm:$0xff]  }
 0xdad   :  { %v4455_v38 = vpop.eup %4454 }
 0xdae   :  { %v4457_v7 = vpop.eup %4456  ;;  %v3014_v16 = vmul.f32 %v4455_v38, %v4453_v35  ;;  %v6358_v35 = vld [vmem:[%s6661_s11 + $0x20] ss:$16 sps:$4 sm:$0xff]   ;;  %v6364_v38 = vld [vmem:[%s6661_s11 + $0x28] ss:$16 sps:$4 sm:$0xff]  }
 0xdaf   :  { %v3013_v4 = vmul.f32 %v4457_v7, %v6212_v0  ;;  %v4459_v20 = vpop.eup %4458  ;;  %v6370_v7 = vld [vmem:[%s6661_s11 + $0x44] ss:$16 sps:$4 sm:$0xff]  }
 0xdb1   :  { %v6262_v17 = vadd.f32 %v3014_v16, %v3013_v4  ;;  %v6376_v16 = vld [vmem:[%s6661_s11 + $0x4c] ss:$16 sps:$4 sm:$0xff]   ;;  %v6388_v4 = vld [vmem:[%s6661_s11 + $0x48] ss:$16 sps:$4 sm:$0xff]  }
 0xdb3   :  { %4460 = vtanh.f32 %v6262_v17 }
 0xdbd   :  { %v4461_v46 = vpop.eup %4460 }
 0xdbe   :  { %v6265_v13 = vmul.f32 %v4461_v46, %v4459_v20  ;;  %v6400_v20 = vld [vmem:[%s6661_s11 + $0x6c] ss:$16 sps:$4 sm:$0xff]   ;;  %v6406_v46 = vld [vmem:[%s6661_s11 + $0x60] ss:$16 sps:$4 sm:$0xff]  }
 0xdc0   :  { %v3022_v41 = vpack.c.bf16 %v6265_v13, %v6265_v13 }
 0xdc2   :  { %3056 = vmatmul.mubr.bf16.vlgmr.msra.gmra.mrb[84].mxu1 %v3022_v41  ;;  %3097 = vmatmul.mubr.bf16.vlgmr.msra.gmra.mrb[92].mxu0 %v3022_v41  ;;  %v6412_v41 = vld [vmem:[%s6661_s11 + $0x68] ss:$16 sps:$4 sm:$0xff]  }
 0xdc3   :  { %3139 = vmatpush1.bf16.msra.mxu1 %v5784_v25  ;;  %3180 = vmatpush1.bf16.msra.mxu0 %v5795_v11  ;;  %v6304_v25 = vld [vmem:[%s6661_s11 + $0x4] ss:$16 sps:$4 sm:$0xff]   ;;  %v6310_v11 = vld [vmem:[%s6661_s11 + $0xc] ss:$16 sps:$4 sm:$0xff]  }
 0xdc4   :  { %3140 = vmatprep.subr.bf16.mxu1 %v5802_v9  ;;  %3181 = vmatprep.subr.bf16.mxu0 %v5807_v26  ;;  %v6771_v9 = vld [vmem:[#allocation13_spill] sm:$0xff] }
 0xdc5   :  { %3170 = vmatprep.mubr.bf16.mxu1 %v6709_v22  ;;  %3211 = vmatprep.mubr.bf16.mxu0 %v6709_v22  ;;  %v2276_v26 = vadd.f32 %v6771_v9, %v6085_v59  ;;  %v6418_v9 = vld [vmem:[%s6661_s11 + $0x84] ss:$16 sps:$4 sm:$0xff]  }
 0xdc7   :  { %3141 = vmatpush1.bf16.msra.mxu1 %v5813_v61  ;;  %3182 = vmatpush1.bf16.msra.mxu0 %v5818_v62  ;;  %v6772_v61 = vld [vmem:[#allocation14_spill] sm:$0xff] }
 0xdc8   :  { %3142 = vmatprep.subr.bf16.mxu1 %v5826_v50  ;;  %3183 = vmatprep.subr.bf16.mxu0 %v5831_v63  ;;  %v2349_v62 = vadd.f32 %v6772_v61, %v6089_v47  ;;  %v6773_v50 = vld [vmem:[#allocation15_spill] sm:$0xff] }
 0xdc9   :  { %v2278_v63 = vadd.f32 %v6773_v50, %v6097_v36  ;;  %v6430_v61 = vld [vmem:[%s6661_s11 + $0x80] ss:$16 sps:$4 sm:$0xff]   ;;  %v6442_v50 = vld [vmem:[%s6661_s11 + $0xa4] ss:$16 sps:$4 sm:$0xff]  }
 0xdcb   :  { %3143 = vmatpush1.bf16.msra.mxu1 %v5837_v51  ;;  %3184 = vmatpush1.bf16.msra.mxu0 %v5842_v1  ;;  %v6774_v51 = vld [vmem:[#allocation16_spill] sm:$0xff] }
 0xdcc   :  { %3144 = vmatprep.subr.bf16.mxu1 %v5850_v52  ;;  %3185 = vmatprep.subr.bf16.mxu0 %v5860_v53  ;;  %v2351_v1 = vadd.f32 %v6774_v51, %v6101_v40  ;;  %v6454_v51 = vld [vmem:[%s6661_s11 + $0xa0] ss:$16 sps:$4 sm:$0xff]  }
 0xdcf   :  { %3145 = vmatpush1.bf16.msra.mxu1 %v5855_v2  ;;  %3186 = vmatpush1.bf16.msra.mxu0 %v5866_v3 }
 0xdd0   :  { %3146 = vmatprep.subr.bf16.mxu1 %v5874_v54  ;;  %3187 = vmatprep.subr.bf16.mxu0 %v5879_v5 }
 0xdd3   :  { %3147 = vmatpush1.bf16.msra.mxu1 %v5885_v55  ;;  %3188 = vmatpush1.bf16.msra.mxu0 %v5890_v6 }
 0xdd4   :  { %3148 = vmatprep.subr.bf16.mxu1 %v5898_v56  ;;  %3189 = vmatprep.subr.bf16.mxu0 %v5908_v32 }
 0xdd7   :  { %3149 = vmatpush1.bf16.msra.mxu1 %v5903_v31  ;;  %3190 = vmatpush1.bf16.msra.mxu0 %v5914_v57 }
 0xdd8   :  { %3150 = vmatprep.subr.bf16.mxu1 %v5922_v42  ;;  %3191 = vmatprep.subr.bf16.mxu0 %v5927_v23 }
 0xddb   :  { %3151 = vmatpush1.bf16.msra.mxu1 %v5933_v28  ;;  %3192 = vmatpush1.bf16.msra.mxu0 %v5938_v33 }
 0xddc   :  { %3152 = vmatprep.subr.bf16.mxu1 %v5946_v24  ;;  %3193 = vmatprep.subr.bf16.mxu0 %v5956_v45 }
 0xddf   :  { %3153 = vmatpush1.bf16.msra.mxu1 %v5951_v39  ;;  %3194 = vmatpush1.bf16.msra.mxu0 %v5962_v44 }
 0xde0   :  { %3253 = vmatprep.subr.bf16.mxu1 %v6304_v25  ;;  %3294 = vmatprep.subr.bf16.mxu0 %v6310_v11 }
 0xe95   :  { %v3057_v52 = vpop.f32.mrb[84].mxu1  ;;  %v3098_v2 = vpop.f32.mrb[92].mxu0 }
 0xe96   :  { %v3105_v53 = vadd.f32 %v3057_v52, %v2276_v26  ;;  %v3107_v3 = vadd.f32 %v3098_v2, %v2349_v62  ;;  %v3059_v54 = vpop.f32.mrb[85].mxu1  ;;  %v3100_v5 = vpop.f32.mrb[93].mxu0  ;;  %v6424_v26 = vld [vmem:[%s6661_s11 + $0x8c] ss:$16 sps:$4 sm:$0xff]   ;;  %v6436_v62 = vld [vmem:[%s6661_s11 + $0x88] ss:$16 sps:$4 sm:$0xff]  }
 0xe97   :  { %v3106_v55 = vadd.f32 %v3059_v54, %v2278_v63  ;;  %v3108_v6 = vadd.f32 %v3100_v5, %v2351_v1  ;;  %v3061_v56 = vpop.f32.mrb[86].mxu1  ;;  %v3102_v31 = vpop.f32.mrb[94].mxu0  ;;  %v6448_v63 = vld [vmem:[%s6661_s11 + $0xac] ss:$16 sps:$4 sm:$0xff]   ;;  %v6460_v1 = vld [vmem:[%s6661_s11 + $0xa8] ss:$16 sps:$4 sm:$0xff]  }
 0xe98   :  { %v3887_v32 = vmul.f32 -1.442695, %v3105_v53  ;;  %v3062_v57 = vpop.f32.mrb[87].mxu1  ;;  %v3103_v42 = vpop.f32.mrb[95].mxu0  ;;  %v6466_v52 = vld [vmem:[%s6661_s11 + $0xc4] ss:$16 sps:$4 sm:$0xff]  }
 0xe99   :  { %v3888_v23 = vmul.f32 -1.442695, %v3106_v55  ;;  %v3889_v28 = vmul.f32 -1.442695, %v3108_v6  ;;  %v6472_v2 = vld [vmem:[%s6661_s11 + $0xcc] ss:$16 sps:$4 sm:$0xff]  }
 0xe9a   :  { %4462 = vpow2.f32 %v3887_v32  ;;  %v6478_v53 = vld [vmem:[%s6661_s11 + $0xc0] ss:$16 sps:$4 sm:$0xff]   ;;  %v6490_v54 = vld [vmem:[%s6661_s11 + $0xe4] ss:$16 sps:$4 sm:$0xff]   ;;  %v6496_v5 = vld [vmem:[%s6661_s11 + $0xec] ss:$16 sps:$4 sm:$0xff]  }
 0xe9b   :  { %4464 = vpow2.f32 %v3888_v23  ;;  %v6502_v55 = vld [vmem:[%s6661_s11 + $0xe0] ss:$16 sps:$4 sm:$0xff]   ;;  %v6508_v6 = vld [vmem:[%s6661_s11 + $0xe8] ss:$16 sps:$4 sm:$0xff]  }
 0xe9c   :  { %4466 = vpow2.f32 %v3889_v28  ;;  %v6775_v56 = vld [vmem:[#allocation17_spill] sm:$0xff]  ;;  %v6776_v32 = vld [vmem:[#allocation18_spill] sm:$0xff]  ;;  %v6777_v42 = vld [vmem:[#allocation19_spill] sm:$0xff] }
 0xe9d   :  { %4468 = vtanh.f32 %v3107_v3  ;;  %v6484_v3 = vld [vmem:[%s6661_s11 + $0xc8] ss:$16 sps:$4 sm:$0xff]   ;;  %v2280_v31 = vadd.f32 %v6775_v56, %v6085_v59  ;;  %v2353_v57 = vadd.f32 %v6776_v32, %v6089_v47  ;;  %v2282_v23 = vadd.f32 %v6777_v42, %v6097_v36 }
 0xe9e   :  { %v6778_v28 = vld [vmem:[#allocation20_spill] sm:$0xff] }
 0xea4   :  { %v4463_v33 = vpop.eup %4462 }
 0xea5   :  { %v4465_v24 = vpop.eup %4464  ;;  %v3112_v39 = vadd.f32 1.0, %v4463_v33  ;;  %v2355_v33 = vadd.f32 %v6778_v28, %v6101_v40 }
 0xea6   :  { %v3118_v45 = vadd.f32 1.0, %v4465_v24  ;;  %v4467_v44 = vpop.eup %4466 }
 0xea7   :  { %4470 = vrcp.f32 %v3112_v39  ;;  %v4469_v0 = vpop.eup %4468  ;;  %v3125_v30 = vadd.f32 1.0, %v4467_v44 }
 0xea8   :  { %4472 = vrcp.f32 %v3118_v45 }
 0xea9   :  { %4474 = vrcp.f32 %v3125_v30 }
 0xeb1   :  { %v4471_v34 = vpop.eup %4470 }
 0xeb2   :  { %v4473_v37 = vpop.eup %4472  ;;  %v3129_v27 = vmul.f32 %v4471_v34, %v4469_v0 }
 0xeb3   :  { %v3128_v14 = vmul.f32 %v4473_v37, %v6262_v17  ;;  %v4475_v43 = vpop.eup %4474  ;;  %v6394_v17 = vld [vmem:[%s6661_s11 + $0x64] ss:$16 sps:$4 sm:$0xff]  }
 0xeb5   :  { %v6322_v8 = vadd.f32 %v3129_v27, %v3128_v14 }
 0xeb7   :  { %4476 = vtanh.f32 %v6322_v8 }
 0xec1   :  { %v4477_v58 = vpop.eup %4476 }
 0xec2   :  { %v6325_v18 = vmul.f32 %v4477_v58, %v4475_v43 }
 0xec4   :  { %v3137_v60 = vpack.c.bf16 %v6325_v18, %v6325_v18 }
 0xec6   :  { %3171 = vmatmul.mubr.bf16.vlgmr.msra.gmra.mrb[88].mxu1 %v3137_v60  ;;  %3212 = vmatmul.mubr.bf16.vlgmr.msra.gmra.mrb[96].mxu0 %v3137_v60 }
 0xec7   :  { %3254 = vmatpush1.bf16.msra.mxu1 %v6332_v19  ;;  %3295 = vmatpush1.bf16.msra.mxu0 %v6338_v12 }
 0xec8   :  { %3255 = vmatprep.subr.bf16.mxu1 %v6344_v15  ;;  %3296 = vmatprep.subr.bf16.mxu0 %v6350_v21 }
 0xec9   :  { %3285 = vmatprep.mubr.bf16.mxu1 %v6709_v22  ;;  %3326 = vmatprep.mubr.bf16.mxu0 %v6709_v22 }
 0xecb   :  { %3256 = vmatpush1.bf16.msra.mxu1 %v6358_v35  ;;  %3297 = vmatpush1.bf16.msra.mxu0 %v6364_v38 }
 0xecc   :  { %3257 = vmatprep.subr.bf16.mxu1 %v6370_v7  ;;  %3298 = vmatprep.subr.bf16.mxu0 %v6376_v16 }
 0xecf   :  { %3258 = vmatpush1.bf16.msra.mxu1 %v6382_v48  ;;  %3299 = vmatpush1.bf16.msra.mxu0 %v6388_v4 }
 0xed0   :  { %3259 = vmatprep.subr.bf16.mxu1 %v6394_v17  ;;  %3300 = vmatprep.subr.bf16.mxu0 %v6400_v20 }
 0xed3   :  { %3260 = vmatpush1.bf16.msra.mxu1 %v6406_v46  ;;  %3301 = vmatpush1.bf16.msra.mxu0 %v6412_v41 }
 0xed4   :  { %3261 = vmatprep.subr.bf16.mxu1 %v6418_v9  ;;  %3302 = vmatprep.subr.bf16.mxu0 %v6424_v26 }
 0xed7   :  { %3262 = vmatpush1.bf16.msra.mxu1 %v6430_v61  ;;  %3303 = vmatpush1.bf16.msra.mxu0 %v6436_v62 }
 0xed8   :  { %3263 = vmatprep.subr.bf16.mxu1 %v6442_v50  ;;  %3304 = vmatprep.subr.bf16.mxu0 %v6448_v63 }
 0xedb   :  { %3264 = vmatpush1.bf16.msra.mxu1 %v6454_v51  ;;  %3305 = vmatpush1.bf16.msra.mxu0 %v6460_v1 }
 0xedc   :  { %3265 = vmatprep.subr.bf16.mxu1 %v6466_v52  ;;  %3306 = vmatprep.subr.bf16.mxu0 %v6472_v2 }
 0xedf   :  { %3266 = vmatpush1.bf16.msra.mxu1 %v6478_v53  ;;  %3307 = vmatpush1.bf16.msra.mxu0 %v6484_v3 }
 0xee0   :  { %3267 = vmatprep.subr.bf16.mxu1 %v6490_v54  ;;  %3308 = vmatprep.subr.bf16.mxu0 %v6496_v5 }
 0xee3   :  { %3268 = vmatpush1.bf16.msra.mxu1 %v6502_v55  ;;  %3309 = vmatpush1.bf16.msra.mxu0 %v6508_v6 }
 0xee4   :  { %3368 = vmatprep.subr.bf16.mxu1 %v6304_v25  ;;  %3409 = vmatprep.subr.bf16.mxu0 %v6310_v11 }
 0xf99   :  { %v3172_v24 = vpop.f32.mrb[88].mxu1  ;;  %v3213_v39 = vpop.f32.mrb[96].mxu0 }
 0xf9a   :  { %v3220_v45 = vadd.f32 %v3172_v24, %v2280_v31  ;;  %v3222_v44 = vadd.f32 %v3213_v39, %v2353_v57  ;;  %v3174_v0 = vpop.f32.mrb[89].mxu1  ;;  %v3215_v25 = vpop.f32.mrb[97].mxu0 }
 0xf9b   :  { %v3221_v34 = vadd.f32 %v3174_v0, %v2282_v23  ;;  %v3223_v11 = vadd.f32 %v3215_v25, %v2355_v33  ;;  %v3176_v37 = vpop.f32.mrb[90].mxu1  ;;  %v3217_v27 = vpop.f32.mrb[98].mxu0 }
 0xf9c   :  { %v3890_v30 = vmul.f32 -1.442695, %v3220_v45  ;;  %v3177_v14 = vpop.f32.mrb[91].mxu1  ;;  %v3218_v43 = vpop.f32.mrb[99].mxu0 }
 0xf9d   :  { %v3891_v58 = vmul.f32 -1.442695, %v3221_v34  ;;  %v3892_v60 = vmul.f32 -1.442695, %v3223_v11 }
 0xf9e   :  { %4478 = vpow2.f32 %v3890_v30 }
 0xf9f   :  { %4480 = vpow2.f32 %v3891_v58 }
 0xfa0   :  { %4482 = vpow2.f32 %v3892_v60 }
 0xfa1   :  { %4484 = vtanh.f32 %v3222_v44 }
 0xfa8   :  { %v4479_v56 = vpop.eup %4478 }
 0xfa9   :  { %v4481_v32 = vpop.eup %4480  ;;  %v3227_v42 = vadd.f32 1.0, %v4479_v56 }
 0xfaa   :  { %v3233_v31 = vadd.f32 1.0, %v4481_v32  ;;  %v4483_v57 = vpop.eup %4482  ;;  %v4263_v32 = vld [vmem:[%s6665_s13 + $0x8] sm:$0xff]  }
 0xfab   :  { %4486 = vrcp.f32 %v3227_v42  ;;  %v4485_v23 = vpop.eup %4484  ;;  %v3240_v39 = vadd.f32 1.0, %v4483_v57  ;;  %v3482_v42 = vpack.c.bf16 %v6165_v29, %v6115_v49  ;;  %v4265_v57 = vld [vmem:[%s6665_s13 + $0x18] sm:$0xff]   ;;  %v4266_v49 = vld [vmem:[%s6665_s13 + $0x20] sm:$0xff]   ;;  %v4267_v29 = vld [vmem:[%s6665_s13 + $0x28] sm:$0xff]  }
 0xfac   :  { %4488 = vrcp.f32 %v3233_v31  ;;  %v4264_v31 = vld [vmem:[%s6665_s13 + $0x10] sm:$0xff]  }
 0xfad   :  { %4490 = vrcp.f32 %v3240_v39  ;;  %v6783_v39 = vld [vmem:[#allocation25_spill] sm:$0xff] }
 0xfb5   :  { %v4487_v28 = vpop.eup %4486 }
 0xfb6   :  { %v4489_v33 = vpop.eup %4488  ;;  %v3244_v24 = vmul.f32 %v4487_v28, %v4485_v23  ;;  %v4268_v23 = vld [vmem:[%s6665_s13 + $0x30] sm:$0xff]   ;;  %v4269_v28 = vld [vmem:[%s6665_s13 + $0x38] sm:$0xff]  }
 0xfb7   :  { %v3243_v45 = vmul.f32 %v4489_v33, %v6322_v8  ;;  %v4491_v25 = vpop.eup %4490  ;;  %v6779_v8 = vld [vmem:[#allocation21_spill] sm:$0xff]  ;;  %v3483_v33 = vpack.c.bf16 %v6265_v13, %v6215_v10 }
 0xfb9   :  { %v6522_v0 = vadd.f32 %v3244_v24, %v3243_v45  ;;  %v2290_v45 = vadd.f32 %v6783_v39, %v6085_v59 }
 0xfbb   :  { %4492 = vtanh.f32 %v6522_v0 }
 0xfc5   :  { %v4493_v34 = vpop.eup %4492 }
 0xfc6   :  { %v6525_v11 = vmul.f32 %v4493_v34, %v4491_v25  ;;  %v6785_v34 = vld [vmem:[#allocation27_spill] sm:$0xff] }
 0xfc8   :  { %v3252_v44 = vpack.c.bf16 %v6525_v11, %v6525_v11  ;;  %v3484_v24 = vpack.c.bf16 %v6525_v11, %v6325_v18 }
 0xfca   :  { %3286 = vmatmul.mubr.bf16.vlgmr.msra.gmra.mrb[92].mxu1 %v3252_v44  ;;  %3327 = vmatmul.mubr.bf16.vlgmr.msra.gmra.mrb[100].mxu0 %v3252_v44  ;;  %v2292_v44 = vadd.f32 %v6785_v34, %v6097_v36 }
 0xfcb   :  { %3369 = vmatpush1.bf16.msra.mxu1 %v6332_v19  ;;  %3410 = vmatpush1.bf16.msra.mxu0 %v6338_v12  ;;  %v2286_v19 = vadd.f32 %v6779_v8, %v6085_v59  ;;  %v6780_v12 = vld [vmem:[#allocation22_spill] sm:$0xff] }
 0xfcc   :  { %3370 = vmatprep.subr.bf16.mxu1 %v6344_v15  ;;  %3411 = vmatprep.subr.bf16.mxu0 %v6350_v21  ;;  %v2359_v15 = vadd.f32 %v6780_v12, %v6089_v47  ;;  %v6781_v21 = vld [vmem:[#allocation23_spill] sm:$0xff] }
 0xfcd   :  { %3400 = vmatprep.mubr.bf16.mxu1 %v6709_v22  ;;  %3441 = vmatprep.mubr.bf16.mxu0 %v6709_v22  ;;  %v4262_v22 = vld [vmem:[%s6665_s13] sm:$0xff]  }
 0xfcf   :  { %3371 = vmatpush1.bf16.msra.mxu1 %v6358_v35  ;;  %3412 = vmatpush1.bf16.msra.mxu0 %v6364_v38  ;;  %v2288_v35 = vadd.f32 %v6781_v21, %v6097_v36  ;;  %v6782_v38 = vld [vmem:[#allocation24_spill] sm:$0xff] }
 0xfd0   :  { %3372 = vmatprep.subr.bf16.mxu1 %v6370_v7  ;;  %3413 = vmatprep.subr.bf16.mxu0 %v6376_v16  ;;  %v2361_v7 = vadd.f32 %v6782_v38, %v6101_v40 }
 0xfd3   :  { %3373 = vmatpush1.bf16.msra.mxu1 %v6382_v48  ;;  %3414 = vmatpush1.bf16.msra.mxu0 %v6388_v4 }
 0xfd4   :  { %3374 = vmatprep.subr.bf16.mxu1 %v6394_v17  ;;  %3415 = vmatprep.subr.bf16.mxu0 %v6400_v20 }
 0xfd7   :  { %3375 = vmatpush1.bf16.msra.mxu1 %v6406_v46  ;;  %3416 = vmatpush1.bf16.msra.mxu0 %v6412_v41 }
 0xfd8   :  { %3376 = vmatprep.subr.bf16.mxu1 %v6418_v9  ;;  %3417 = vmatprep.subr.bf16.mxu0 %v6424_v26 }
 0xfdb   :  { %3377 = vmatpush1.bf16.msra.mxu1 %v6430_v61  ;;  %3418 = vmatpush1.bf16.msra.mxu0 %v6436_v62 }
 0xfdc   :  { %3378 = vmatprep.subr.bf16.mxu1 %v6442_v50  ;;  %3419 = vmatprep.subr.bf16.mxu0 %v6448_v63 }
 0xfdf   :  { %3379 = vmatpush1.bf16.msra.mxu1 %v6454_v51  ;;  %3420 = vmatpush1.bf16.msra.mxu0 %v6460_v1 }
 0xfe0   :  { %3380 = vmatprep.subr.bf16.mxu1 %v6466_v52  ;;  %3421 = vmatprep.subr.bf16.mxu0 %v6472_v2 }
 0xfe3   :  { %3381 = vmatpush1.bf16.msra.mxu1 %v6478_v53  ;;  %3422 = vmatpush1.bf16.msra.mxu0 %v6484_v3 }
 0xfe4   :  { %3382 = vmatprep.subr.bf16.mxu1 %v6490_v54  ;;  %3423 = vmatprep.subr.bf16.mxu0 %v6496_v5 }
 0xfe7   :  { %3383 = vmatpush1.bf16.msra.mxu1 %v6502_v55  ;;  %3424 = vmatpush1.bf16.msra.mxu0 %v6508_v6 }
 0xfe8   :  { %4016 = vmatprep.subr.bf16.mxu1 %v4262_v22 }
0x109d   :  { %v3287_v16 = vpop.f32.mrb[92].mxu1  ;;  %v3328_v48 = vpop.f32.mrb[100].mxu0 }
0x109e   :  { %v3335_v4 = vadd.f32 %v3287_v16, %v2286_v19  ;;  %v3337_v17 = vadd.f32 %v3328_v48, %v2359_v15  ;;  %v3289_v20 = vpop.f32.mrb[93].mxu1  ;;  %v3330_v46 = vpop.f32.mrb[101].mxu0 }
0x109f   :  { %v3336_v41 = vadd.f32 %v3289_v20, %v2288_v35  ;;  %v3338_v9 = vadd.f32 %v3330_v46, %v2361_v7  ;;  %v3291_v26 = vpop.f32.mrb[94].mxu1  ;;  %v3332_v61 = vpop.f32.mrb[102].mxu0 }
0x10a0   :  { %v3893_v62 = vmul.f32 -1.442695, %v3335_v4  ;;  %v3292_v50 = vpop.f32.mrb[95].mxu1  ;;  %v3333_v63 = vpop.f32.mrb[103].mxu0 }
0x10a1   :  { %v3894_v51 = vmul.f32 -1.442695, %v3336_v41  ;;  %v3895_v1 = vmul.f32 -1.442695, %v3338_v9 }
0x10a2   :  { %4494 = vpow2.f32 %v3893_v62 }
0x10a3   :  { %4496 = vpow2.f32 %v3894_v51 }
0x10a4   :  { %4498 = vpow2.f32 %v3895_v1 }
0x10a5   :  { %4500 = vtanh.f32 %v3337_v17 }
0x10ac   :  { %v4495_v52 = vpop.eup %4494 }
0x10ad   :  { %v4497_v2 = vpop.eup %4496  ;;  %v3342_v53 = vadd.f32 1.0, %v4495_v52 }
0x10ae   :  { %v3348_v3 = vadd.f32 1.0, %v4497_v2  ;;  %v4499_v54 = vpop.eup %4498 }
0x10af   :  { %4502 = vrcp.f32 %v3342_v53  ;;  %v4501_v5 = vpop.eup %4500  ;;  %v3355_v27 = vadd.f32 1.0, %v4499_v54 }
0x10b0   :  { %4504 = vrcp.f32 %v3348_v3 }
0x10b1   :  { %4506 = vrcp.f32 %v3355_v27 }
0x10b9   :  { %v4503_v55 = vpop.eup %4502 }
0x10ba   :  { %v4505_v6 = vpop.eup %4504  ;;  %v3359_v37 = vmul.f32 %v4503_v55, %v4501_v5  ;;  %v3901_v5 = vld [vmem:[%s6666_s14] ss:$0 sm:$0xff] }
0x10bb   :  { %v3358_v30 = vmul.f32 %v4505_v6, %v6522_v0  ;;  %v4507_v43 = vpop.eup %4506  ;;  %v6784_v0 = vld [vmem:[#allocation26_spill] sm:$0xff] }
0x10bc   :  { %v2363_v25 = vadd.f32 %v6784_v0, %v6089_v47 }
0x10bd   :  { %v6573_v14 = vadd.f32 %v3359_v37, %v3358_v30 }
0x10bf   :  { %4508 = vtanh.f32 %v6573_v14 }
0x10c9   :  { %v4509_v58 = vpop.eup %4508 }
0x10ca   :  { %v6576_v60 = vmul.f32 %v4509_v58, %v4507_v43 }
0x10cc   :  { %v3367_v56 = vpack.c.bf16 %v6576_v60, %v6576_v60 }
0x10ce   :  { %3401 = vmatmul.mubr.bf16.vlgmr.msra.gmra.mrb[96].mxu1 %v3367_v56  ;;  %3442 = vmatmul.mubr.bf16.vlgmr.msra.gmra.mrb[104].mxu0 %v3367_v56 }
0x10cf   :  { %4017 = vmatpush3.bf16.msra.mxu1 %v4262_v22  ;;  %4032 = vmatprep.mubr.bf16.mxu1 %v3482_v42  ;;  %v6786_v22 = vld [vmem:[#allocation3_spill] sm:$0xff] }
0x10d0   :  { %4018 = vmatprep.subr.bf16.mxu1 %v4263_v32  ;;  %v2365_v8 = vadd.f32 %v6786_v22, %v6101_v40 }
0x10d3   :  { %4019 = vmatpush3.bf16.msra.mxu1 %v4263_v32 }
0x10d4   :  { %4020 = vmatprep.subr.bf16.mxu1 %v4264_v31 }
0x10d7   :  { %4021 = vmatpush3.bf16.msra.mxu1 %v4264_v31 }
0x10d8   :  { %4022 = vmatprep.subr.bf16.mxu1 %v4265_v57 }
0x10db   :  { %4023 = vmatpush3.bf16.msra.mxu1 %v4265_v57 }
0x10dc   :  { %4024 = vmatprep.subr.bf16.mxu1 %v4266_v49 }
0x10df   :  { %4025 = vmatpush3.bf16.msra.mxu1 %v4266_v49 }
0x10e0   :  { %4026 = vmatprep.subr.bf16.mxu1 %v4267_v29 }
0x10e3   :  { %4027 = vmatpush3.bf16.msra.mxu1 %v4267_v29 }
0x10e4   :  { %4028 = vmatprep.subr.bf16.mxu1 %v4268_v23 }
0x10e7   :  { %4029 = vmatpush3.bf16.msra.mxu1 %v4268_v23 }
0x10e8   :  { %4030 = vmatprep.subr.bf16.mxu1 %v4269_v28 }
0x10eb   :  { %4031 = vmatpush3.bf16.msra.mxu1 %v4269_v28 }
0x10ee   :  { %4033 = vmatmul.mubr.bf16.vlgmr.msra.gmra.mrb[100].mxu1 %v3483_v33 }
0x10ef   :  { %4036 = vmatprep.mubr.bf16.mxu1 %v3484_v24 }
0x11a1   :  { %v3402_v19 = vpop.f32.mrb[96].mxu1  ;;  %v3443_v12 = vpop.f32.mrb[104].mxu0 }
0x11a2   :  { %v3450_v10 = vadd.f32 %v3402_v19, %v2290_v45  ;;  %v3452_v13 = vadd.f32 %v3443_v12, %v2363_v25  ;;  %v3404_v15 = vpop.f32.mrb[97].mxu1  ;;  %v3445_v18 = vpop.f32.mrb[105].mxu0 }
0x11a3   :  { %v3451_v11 = vadd.f32 %v3404_v15, %v2292_v44  ;;  %v3453_v21 = vadd.f32 %v3445_v18, %v2365_v8  ;;  %v3406_v35 = vpop.f32.mrb[98].mxu1  ;;  %v3447_v38 = vpop.f32.mrb[106].mxu0 }
0x11a4   :  { %v3896_v59 = vmul.f32 -1.442695, %v3450_v10  ;;  %v3407_v7 = vpop.f32.mrb[99].mxu1  ;;  %v3448_v16 = vpop.f32.mrb[107].mxu0 }
0x11a5   :  { %v3897_v47 = vmul.f32 -1.442695, %v3451_v11  ;;  %v3898_v36 = vmul.f32 -1.442695, %v3453_v21 }
0x11a6   :  { %4510 = vpow2.f32 %v3896_v59 }
0x11a7   :  { %4512 = vpow2.f32 %v3897_v47 }
0x11a8   :  { %4514 = vpow2.f32 %v3898_v36 }
0x11a9   :  { %4516 = vtanh.f32 %v3452_v13 }
0x11b0   :  { %v4511_v48 = vpop.eup %4510 }
0x11b1   :  { %v4513_v4 = vpop.eup %4512  ;;  %v3457_v40 = vadd.f32 1.0, %v4511_v48 }
0x11b2   :  { %v3463_v17 = vadd.f32 1.0, %v4513_v4  ;;  %v4515_v20 = vpop.eup %4514 }
0x11b3   :  { %4518 = vrcp.f32 %v3457_v40  ;;  %v4517_v46 = vpop.eup %4516  ;;  %v3470_v61 = vadd.f32 1.0, %v4515_v20 }
0x11b4   :  { %4520 = vrcp.f32 %v3463_v17 }
0x11b5   :  { %4522 = vrcp.f32 %v3470_v61 }
0x11bd   :  { %v4519_v41 = vpop.eup %4518 }
0x11be   :  { %v4521_v9 = vpop.eup %4520  ;;  %v3474_v26 = vmul.f32 %v4519_v41, %v4517_v46 }
0x11bf   :  { %v3473_v62 = vmul.f32 %v4521_v9, %v6573_v14  ;;  %v4523_v2 = vpop.eup %4522 }
0x11c1   :  { %v3475_v50 = vadd.f32 %v3474_v26, %v3473_v62  ;;  %v4034_v63 = vpop.f32.mrb[100].mxu1 }
0x11c2   :  { %v3591_v51 = vpop.f32.mrb[101].mxu1  ;;  %v3600_v6 = vadd.f32 %v4034_v63, %v3901_v5 }
0x11c3   :  { %3900 = vst [vmem:[%s6662_s17 + $0x8] sm:$0xff] %v3475_v50  ;;  %v4035_v1 = vpop.f32.mrb[102].mxu1  ;;  %4524 = vtanh.f32 %v3475_v50  ;;  %v3592_v30 = vadd.f32 %v3901_v5, %v3591_v51 }
0x11c4   :  { %v3594_v52 = vpop.f32.mrb[103].mxu1  ;;  %v3603_v58 = vadd.f32 %v4035_v1, %v3901_v5 }
0x11c5   :  { %v3595_v31 = vadd.f32 %v3901_v5, %v3594_v52 }
0x11cd   :  { %v4525_v53 = vpop.eup %4524 }
0x11ce   :  { %v3477_v3 = vmul.f32 %v4525_v53, %v4523_v2 }
0x11d0   :  { %3899 = vst [vmem:[%s6663_s16 + $0x8] sm:$0xff] %v3477_v3  ;;  %v3485_v54 = vpack.c.bf16 %v3477_v3, %v6576_v60 }
0x11d2   :  { %4037 = vmatmul.mubr.bf16.gmra.mrb[104].mxu1 %v3485_v54 }
0x12a5   :  { %v4038_v55 = vpop.f32.mrb[104].mxu1 }
0x12a6   :  { %v3616_v37 = vadd.f32 %v4038_v55, %v3901_v5  ;;  %v3607_v27 = vpop.f32.mrb[105].mxu1 }
0x12a7   :  { %v3608_v14 = vadd.f32 %v3901_v5, %v3607_v27  ;;  %v4039_v43 = vpop.f32.mrb[106].mxu1 }
0x12a8   :  { %v3624_v56 = vmax.f32 %v3600_v6, %v3616_v37  ;;  %v3619_v32 = vadd.f32 %v4039_v43, %v3901_v5  ;;  %v3610_v42 = vpop.f32.mrb[107].mxu1 }
0x12a9   :  { %v3622_v57 = vmax.f32 %v3592_v30, %v3608_v14  ;;  %v3611_v49 = vadd.f32 %v3901_v5, %v3610_v42 }
0x12aa   :  { %v3625_v60 = vmax.f32 %v3603_v58, %v3619_v32 }
0x12ab   :  { %v3623_v29 = vmax.f32 %v3595_v31, %v3611_v49 }
0x12ac   :  { %v3627_v23 = vmax.f32 %v3624_v56, %v3625_v60 }
0x12ad   :  { %v3626_v28 = vmax.f32 %v3622_v57, %v3623_v29 }
0x12af   :  { %v3628_v33 = vmax.f32 %v3626_v28, %v3627_v23 }
0x12b1   :  { %v3629_v24 = vsub.f32 %v3592_v30, %v3628_v33  ;;  %v3630_v39 = vsub.f32 %v3595_v31, %v3628_v33  ;;  %v3631_v45 = vsub.f32 %v3600_v6, %v3628_v33  ;;  %v3632_v0 = vsub.f32 %v3603_v58, %v3628_v33 }
0x12b2   :  { %v3633_v25 = vsub.f32 %v3608_v14, %v3628_v33  ;;  %v3634_v34 = vsub.f32 %v3611_v49, %v3628_v33  ;;  %v3635_v44 = vsub.f32 %v3616_v37, %v3628_v33  ;;  %v3636_v22 = vsub.f32 %v3619_v32, %v3628_v33 }
0x12b3   :  { %v3637_v8 = vmul.f32 1.442695, %v3629_v24  ;;  %v3639_v19 = vmul.f32 1.442695, %v3630_v39  ;;  %v3641_v12 = vmul.f32 1.442695, %v3631_v45 }
0x12b4   :  { %v3643_v10 = vmul.f32 1.442695, %v3632_v0  ;;  %v3645_v13 = vmul.f32 1.442695, %v3633_v25  ;;  %v3647_v15 = vmul.f32 1.442695, %v3634_v34 }
0x12b5   :  { %4526 = vpow2.f32 %v3637_v8  ;;  %v3649_v18 = vmul.f32 1.442695, %v3635_v44  ;;  %v3651_v11 = vmul.f32 1.442695, %v3636_v22 }
0x12b6   :  { %4528 = vpow2.f32 %v3639_v19 }
0x12b7   :  { %4530 = vpow2.f32 %v3641_v12 }
0x12b8   :  { %4532 = vpow2.f32 %v3643_v10 }
0x12b9   :  { %4534 = vpow2.f32 %v3645_v13 }
0x12ba   :  { %4536 = vpow2.f32 %v3647_v15 }
0x12bb   :  { %4538 = vpow2.f32 %v3649_v18 }
0x12bc   :  { %4540 = vpow2.f32 %v3651_v11 }
0x12bf   :  { %v4527_v21 = vpop.eup %4526 }
0x12c0   :  { %v4529_v35 = vpop.eup %4528 }
0x12c1   :  { %v3653_v38 = vadd.f32 %v4529_v35, %v4527_v21  ;;  %v4531_v59 = vpop.eup %4530 }
0x12c2   :  { %v4533_v16 = vpop.eup %4532 }
0x12c3   :  { %v3654_v7 = vadd.f32 %v4531_v59, %v3653_v38  ;;  %v4535_v36 = vpop.eup %4534 }
0x12c4   :  { %v4537_v4 = vpop.eup %4536 }
0x12c5   :  { %v3655_v47 = vadd.f32 %v4533_v16, %v3654_v7  ;;  %v4539_v17 = vpop.eup %4538 }
0x12c6   :  { %v4541_v46 = vpop.eup %4540 }
0x12c7   :  { %v3656_v48 = vadd.f32 %v4535_v36, %v3655_v47 }
0x12c9   :  { %v3657_v40 = vadd.f32 %v4537_v4, %v3656_v48 }
0x12cb   :  { %v3658_v20 = vadd.f32 %v4539_v17, %v3657_v40 }
0x12cd   :  { %v3659_v41 = vadd.f32 %v4541_v46, %v3658_v20 }
0x12cf   :  { %4542 = vrcp.f32 %v3659_v41 }
0x12d9   :  { %v4543_v9 = vpop.eup %4542 }
0x12da   :  { %v3661_v26 = vmul.f32 %v4543_v9, %v4527_v21  ;;  %v3662_v61 = vmul.f32 %v4543_v9, %v4529_v35  ;;  %v3663_v62 = vmul.f32 %v4543_v9, %v4531_v59  ;;  %v3664_v50 = vmul.f32 %v4543_v9, %v4533_v16 }
0x12db   :  { %v3665_v63 = vmul.f32 %v4543_v9, %v4535_v36  ;;  %v3666_v51 = vmul.f32 %v4543_v9, %v4537_v4  ;;  %v3667_v1 = vmul.f32 %v4543_v9, %v4539_v17  ;;  %v3668_v52 = vmul.f32 %v4543_v9, %v4541_v46 }
0x12dc   :  { %3669 = vst [vmem:[%s6667_s15] sm:$0xff] %v3661_v26  ;;  %3670 = vst [vmem:[%s6667_s15 + $0x8] sm:$0xff] %v3662_v61 }
0x12dd   :  { %3671 = vst [vmem:[%s6667_s15 + $0x10] sm:$0xff] %v3663_v62  ;;  %3672 = vst [vmem:[%s6667_s15 + $0x18] sm:$0xff] %v3664_v50 }
0x12de   :  { %3673 = vst [vmem:[%s6667_s15 + $0x20] sm:$0xff] %v3665_v63  ;;  %3674 = vst [vmem:[%s6667_s15 + $0x28] sm:$0xff] %v3666_v51 }
0x12df   :  { %3675 = vst [vmem:[%s6667_s15 + $0x30] sm:$0xff] %v3667_v1  ;;  %3676 = vst [vmem:[%s6667_s15 + $0x38] sm:$0xff] %v3668_v52 }

</bundles_post_ra>
